<compile_context>
chip_gen: v7x
topology: tpu7x:2x2x1
jax: 0.10.0
libtpu: 0.0.40
codegen_flags: <defaults>
</compile_context>

<pallas_src>
import numpy as np
import jax
import jax.numpy as jnp
from jax.experimental import pallas as pl
from jax.experimental.pallas import tpu as pltpu

# ----- hyper-params (mirror TreeRecurrentTagger.__init__) -----
H = 32             # hidden_size
C = 4              # num_classes
SYN = 50           # hidden_syn_size (hard-coded to 50 in the module)
SYN_PAD = 64       # SYN zero-padded so concat boundaries are lane aligned
SYNTAX_SIZE = 16   # syntax_size (num syntax labels)
B = 2              # batch size (trees)
L = 8              # leaves per tree
DSIZE = 2 * L - 1  # nodes per proper binary tree
NI = DSIZE - L     # internal nodes per tree

F_LEAF = C + SYN   # leaf2node in-features  [cue one-hot | pos_emb]
F_LEAF_PAD = 64
N_ROWS = B * DSIZE # merged node-table rows (both trees stacked)


# ---------------------------------------------------------------------------
# Pallas kernel
# ---------------------------------------------------------------------------
def tree_tagger_kernel(up_sched_ref, down_sched_ref, leaf_rows_ref,   # SMEM scalar prefetch
                       leaf_in_ref, up_syn_ref, down_csyn_ref, root_syn_ref,
                       w_leaf_ref, b_leaf_ref,
                       wc_syn_ref, wc_lr_ref, b_comp_ref,
                       wg_u_ref, wg_syn_ref, b_grev_ref,
                       wd_c_ref, wd_p_ref, b_dec_ref,
                       w_cls_ref, b_cls_ref,
                       out_ref,
                       u_ref, d_ref):                                  # VMEM scratch tables
    def mm(a, b):
        # default MXU precision (review: HIGHEST forces multi-pass emulation)
        return jnp.dot(a, b, preferred_element_type=jnp.float32)

    # ---- hoist every SMEM schedule read above the serial loops ----
    # (scalar slots are otherwise idle while the head matmuls run; keeps
    #  sld -> address compute off the per-node critical path)
    leaf_row = [leaf_rows_ref[k] for k in range(B * L)]
    up_idx = [up_sched_ref[k] for k in range(3 * NI * B)]
    down_idx = [down_sched_ref[k] for k in range(3 * NI * B)]

    # loop-invariant weights
    wc_lr = wc_lr_ref[...]     # (2H, H)   rows = [left | right]
    wd_p = wd_p_ref[...]       # (2H, 2H)  rows = [parent_down | parent_up]

    # ---- hoisted off-chain matmuls: per-step syntax contributions (+bias) ----
    up_syn_c = mm(up_syn_ref[...], wc_syn_ref[...]) + b_comp_ref[...]       # (NI*B, H)
    down_syn_c = mm(down_csyn_ref[...], wd_c_ref[...]) + b_dec_ref[...]     # (NI*B, 2H)
    grev_c = mm(root_syn_ref[...], wg_syn_ref[...]) + b_grev_ref[...]       # (B, H)

    # ---- leaf2node, scattered directly into the upward table (no scat matmul) ----
    x_emb = mm(leaf_in_ref[...], w_leaf_ref[...]) + b_leaf_ref[...]         # (B*L, H)
    for j in range(B * L):
        u_ref[pl.ds(leaf_row[j], 1), :] = x_emb[j:j + 1, :]

    # ---- rec_traverse_up: both trees advance in lockstep; 1 matmul / level ----
    for t in range(NI):
        rows = []
        for b in range(B):
            k = (t * B + b) * 3
            rows.append(jnp.concatenate(
                [u_ref[pl.ds(up_idx[k + 1], 1), :],       # left child
                 u_ref[pl.ds(up_idx[k + 2], 1), :]],      # right child
                axis=-1))                                  # (1, 2H)
        lhs = jnp.concatenate(rows, axis=0)                                  # (B, 2H)
        pe = jnp.tanh(mm(lhs, wc_lr) + up_syn_c[t * B:(t + 1) * B, :])       # (B, H)
        for b in range(B):
            u_ref[pl.ds(up_idx[(t * B + b) * 3], 1), :] = pe[b:b + 1, :]

    # ---- global_reverse at each tree root (rows b*DSIZE are static) ----
    root_up = jnp.concatenate(
        [u_ref[b * DSIZE:b * DSIZE + 1, :] for b in range(B)], axis=0)       # (B, H)
    gd = jnp.tanh(mm(root_up, wg_u_ref[...]) + grev_c)                       # (B, H)
    for b in range(B):
        d_ref[b * DSIZE:b * DSIZE + 1, :] = gd[b:b + 1, :]
    # NOTE: no zero-fill of d_ref -- every row is written before the classifier
    # reads it (roots above, every other node exactly once by the loop below).

    # ---- rec_traverse_down: lockstep, 1 matmul / level ----
    for t in range(NI):
        rows = []
        for b in range(B):
            p = down_idx[(t * B + b) * 3]
            rows.append(jnp.concatenate(
                [d_ref[pl.ds(p, 1), :], u_ref[pl.ds(p, 1), :]], axis=-1))    # (1, 2H)
        lhs = jnp.concatenate(rows, axis=0)                                   # (B, 2H)
        ch = jnp.tanh(mm(lhs, wd_p) + down_syn_c[t * B:(t + 1) * B, :])       # (B, 2H)
        for b in range(B):
            k = (t * B + b) * 3
            d_ref[pl.ds(down_idx[k + 1], 1), :] = ch[b:b + 1, :H]
            d_ref[pl.ds(down_idx[k + 2], 1), :] = ch[b:b + 1, H:]

    # ---- classifier over every node of every tree: one (N,2H)@(2H,C) matmul ----
    tree_data = jnp.concatenate([d_ref[...], u_ref[...]], axis=-1)            # (N_ROWS, 2H)
    out_ref[...] = jnp.tanh(mm(tree_data, w_cls_ref[...]) + b_cls_ref[...])


# ---------------------------------------------------------------------------
# Wrapper
# ---------------------------------------------------------------------------
def run_tagger(up_sched, down_sched, leaf_rows, leaf_in, up_syn, down_csyn,
               root_syn, params):
    def full(shape):
        return pl.BlockSpec(shape, lambda i, *_: (0,) * len(shape))

    grid_spec = pltpu.PrefetchScalarGridSpec(
        num_scalar_prefetch=3,
        grid=(1,),                               # single step; trees batched in-kernel
        in_specs=[
            full((B * L, F_LEAF_PAD)),           # leaf_in  [cue_oh | pos_emb | 0-pad]
            full((NI * B, SYN_PAD)),             # per-up-step parent syntax rows
            full((NI * B, 2 * SYN_PAD)),         # per-down-step [cons_l | cons_r] rows
            full((B, SYN_PAD)),                  # root syntax rows
            full((F_LEAF_PAD, H)), full((1, H)),                                 # leaf2node
            full((SYN_PAD, H)), full((2 * H, H)), full((1, H)),                  # compose
            full((H, H)), full((SYN_PAD, H)), full((1, H)),                      # global_reverse
            full((2 * SYN_PAD, 2 * H)), full((2 * H, 2 * H)), full((1, 2 * H)),  # decompose
            full((2 * H, C)), full((1, C)),                                      # classifier
        ],
        out_specs=full((N_ROWS, C)),
        scratch_shapes=[pltpu.VMEM((N_ROWS, H), jnp.float32),   # upward table
                        pltpu.VMEM((N_ROWS, H), jnp.float32)],  # downward table
    )
    fn = pl.pallas_call(
        tree_tagger_kernel,
        grid_spec=grid_spec,
        out_shape=jax.ShapeDtypeStruct((N_ROWS, C), jnp.float32),
        compiler_params=pltpu.CompilerParams(dimension_semantics=("arbitrary",)),
    )
    out = fn(up_sched, down_sched, leaf_rows, leaf_in, up_syn, down_csyn,
             root_syn, *params)
    return out.reshape(B, DSIZE, C)


# ---------------------------------------------------------------------------
# Host-side glue: trees, adjacency, schedules, embedding gathers
# ---------------------------------------------------------------------------
def build_tree_children(kind):
    if kind == "heap":
        return {k: (2 * k + 1, 2 * k + 2) for k in range(DSIZE) if 2 * k + 2 < DSIZE}
    return {k: (k + 1, k + 2) for k in range(0, DSIZE - 2, 2)}   # caterpillar


def make_adj(children):
    A = np.zeros((DSIZE, DSIZE), np.float32)
    for p, (l, r) in children.items():
        A[p, l] = 1.0
        A[p, r] = 1.0
    return A


def schedules_from_adj(A, leaves):
    leaves = set(int(v) for v in leaves)
    order = []

    def rec(p):
        if p in leaves:
            return
        cs = np.where(A[p] == 1)[0]
        l, r = int(cs[0]), int(cs[1])
        rec(l)
        rec(r)
        order.append((p, l, r))

    rec(0)
    return order, order[::-1]   # up (children first), down (parents first)


if __name__ == "__main__":
    key = jax.random.PRNGKey(0)
    (k_syn, k_leaf, k_comp, k_grev, k_dec, k_cls,
     k_x, k_cue, k_pos) = jax.random.split(key, 9)

    def linear(k, out_dim, in_dim):
        kw, kb = jax.random.split(k)
        bound = 1.0 / np.sqrt(in_dim)
        w = jax.random.uniform(kw, (out_dim, in_dim), jnp.float32, -bound, bound)
        b = jax.random.uniform(kb, (out_dim,), jnp.float32, -bound, bound)
        return np.asarray(w), np.asarray(b)

    # deterministic parameters (nn.Linear / nn.Embedding shapes)
    syn_table = np.asarray(jax.random.normal(k_syn, (SYNTAX_SIZE, SYN), jnp.float32))
    w_leaf, b_leaf = linear(k_leaf, H, F_LEAF)
    w_comp, b_comp = linear(k_comp, H, SYN + 2 * H)
    w_grev, b_grev = linear(k_grev, H, H + SYN)
    w_dec, b_dec = linear(k_dec, 2 * H, 2 * SYN + 2 * H)
    w_cls, b_cls = linear(k_cls, C, 2 * H)

    # synthetic module inputs: forward(x, word_index, cue, adj, pos, pre_embs)
    x = np.asarray(jax.random.randint(k_x, (B, DSIZE), 0, SYNTAX_SIZE))
    cue = np.asarray(jax.random.randint(k_cue, (B, DSIZE), 0, C))
    pos = np.asarray(jax.random.randint(k_pos, (B, L), 0, SYNTAX_SIZE))

    trees = [build_tree_children("heap"), build_tree_children("caterpillar")]
    word_index = []
    adj = np.zeros((B, 2, DSIZE, DSIZE), np.float32)
    for i, ch in enumerate(trees):
        internal = set(ch.keys())
        word_index.append(np.array(sorted(n for n in range(DSIZE) if n not in internal),
                                   np.int32))
        adj[i, 1] = make_adj(ch)

    # ---- host glue: one-hots, embedding gathers, per-step syntax rows, schedules ----
    leaf_in = np.zeros((B * L, F_LEAF_PAD), np.float32)
    up_syn = np.zeros((NI, B, SYN_PAD), np.float32)
    down_csyn = np.zeros((NI, B, 2 * SYN_PAD), np.float32)
    root_syn = np.zeros((B, SYN_PAD), np.float32)
    up_sched = np.zeros((NI, B, 3), np.int32)
    down_sched = np.zeros((NI, B, 3), np.int32)
    leaf_rows = np.zeros((B * L,), np.int32)
    node_syn_all, child_syn_all, up_loc_all, down_loc_all = [], [], [], []
    for b in range(B):
        w_idx = word_index[b]
        pos_emb = syn_table[pos[b]]                               # (L, SYN)
        cue_oh = np.eye(C, dtype=np.float32)[cue[b][w_idx]]       # (L, C) one-hot
        leaf_in[b * L:(b + 1) * L, :C] = cue_oh
        leaf_in[b * L:(b + 1) * L, C:C + SYN] = pos_emb
        leaf_rows[b * L:(b + 1) * L] = w_idx + b * DSIZE
        node_syn = syn_table[x[b]]                                # (DSIZE, SYN)
        child_syn = node_syn.copy()
        child_syn[w_idx] = pos_emb                                # get_child_syntax semantics
        root_syn[b, :SYN] = node_syn[0]
        up_loc, down_loc = schedules_from_adj(adj[b, 1], w_idx)
        assert len(up_loc) == NI
        for t, (p, l, r) in enumerate(up_loc):
            up_syn[t, b, :SYN] = node_syn[p]
            up_sched[t, b] = (p + b * DSIZE, l + b * DSIZE, r + b * DSIZE)
        for t, (p, l, r) in enumerate(down_loc):
            down_csyn[t, b, :SYN] = child_syn[l]
            down_csyn[t, b, SYN_PAD:SYN_PAD + SYN] = child_syn[r]
            down_sched[t, b] = (p + b * DSIZE, l + b * DSIZE, r + b * DSIZE)
        node_syn_all.append(node_syn)
        child_syn_all.append(child_syn)
        up_loc_all.append(up_loc)
        down_loc_all.append(down_loc)

    # ---- weights: transpose to (in,out), zero-pad SYN 50->64, split at the now
    #      lane-aligned concat boundaries (no sublane-crossing slices in-kernel) ----
    wT_comp, wT_grev, wT_dec = w_comp.T, w_grev.T, w_dec.T
    w_leaf_pad = np.zeros((F_LEAF_PAD, H), np.float32)
    w_leaf_pad[:F_LEAF] = w_leaf.T
    wc_syn_pad = np.zeros((SYN_PAD, H), np.float32)
    wc_syn_pad[:SYN] = wT_comp[:SYN]
    wc_lr = np.ascontiguousarray(wT_comp[SYN:])                  # (2H, H)
    wg_u = np.ascontiguousarray(wT_grev[:H])                     # (H, H)
    wg_syn_pad = np.zeros((SYN_PAD, H), np.float32)
    wg_syn_pad[:SYN] = wT_grev[H:]
    wd_c_pad = np.zeros((2 * SYN_PAD, 2 * H), np.float32)
    wd_c_pad[:SYN] = wT_dec[:SYN]
    wd_c_pad[SYN_PAD:SYN_PAD + SYN] = wT_dec[SYN:2 * SYN]
    wd_p = np.ascontiguousarray(wT_dec[2 * SYN:])                # (2H, 2H)
    wT_cls = np.ascontiguousarray(w_cls.T)                       # (2H, C)  [down|up] rows

    params = tuple(jnp.asarray(p) for p in (
        w_leaf_pad, b_leaf[None, :],
        wc_syn_pad, wc_lr, b_comp[None, :],
        wg_u, wg_syn_pad, b_grev[None, :],
        wd_c_pad, wd_p, b_dec[None, :],
        wT_cls, b_cls[None, :]))

    out = run_tagger(jnp.asarray(up_sched.reshape(-1)),
                     jnp.asarray(down_sched.reshape(-1)),
                     jnp.asarray(leaf_rows),
                     jnp.asarray(leaf_in),
                     jnp.asarray(up_syn.reshape(NI * B, SYN_PAD)),
                     jnp.asarray(down_csyn.reshape(NI * B, 2 * SYN_PAD)),
                     jnp.asarray(root_syn),
                     params)
    out = np.asarray(jax.block_until_ready(out))

    # ---- float64 numpy reference (eval-mode PyTorch semantics) ----
    ref = np.zeros((B, DSIZE, C))
    for b in range(B):
        w_idx = word_index[b]
        in_emb = leaf_in[b * L:(b + 1) * L, :F_LEAF].astype(np.float64)
        x_emb = in_emb @ w_leaf.T + b_leaf
        U = np.zeros((DSIZE, H))
        U[w_idx] = x_emb
        ns = node_syn_all[b].astype(np.float64)
        cs = child_syn_all[b].astype(np.float64)
        for p, l, r in up_loc_all[b]:
            U[p] = np.tanh(np.concatenate([ns[p], U[l], U[r]]) @ w_comp.T + b_comp)
        gd = np.tanh(np.concatenate([U[0], ns[0]]) @ w_grev.T + b_grev)
        D = np.zeros((DSIZE, H))
        D[0] = gd
        for p, l, r in down_loc_all[b]:
            chv = np.tanh(np.concatenate([cs[l], cs[r], D[p], U[p]]) @ w_dec.T + b_dec)
            D[l] = chv[:H]
            D[r] = chv[H:]
        ref[b] = np.tanh(np.concatenate([D, U], axis=-1) @ w_cls.T + b_cls)

    # default MXU precision (bf16-rounded operands, f32 accumulate) through a
    # 7-deep tanh recursion per direction -> relaxed tolerance
    np.testing.assert_allclose(out, ref.astype(np.float32), atol=3e-2, rtol=3e-2)
    print("KERNEL_OK")
</pallas_src>

<mosaic_0001>
module attributes {stable_mosaic.version = 11 : i64} {
  func.func @tree_tagger_kernel(%arg0: i32, %arg1: memref<42xi32, #tpu.memory_space<smem>>, %arg2: memref<42xi32, #tpu.memory_space<smem>>, %arg3: memref<16xi32, #tpu.memory_space<smem>>, %arg4: memref<16x64xf32, #tpu.memory_space<vmem>>, %arg5: memref<14x64xf32, #tpu.memory_space<vmem>>, %arg6: memref<14x128xf32, #tpu.memory_space<vmem>>, %arg7: memref<2x64xf32, #tpu.memory_space<vmem>>, %arg8: memref<64x32xf32, #tpu.memory_space<vmem>>, %arg9: memref<1x32xf32, #tpu.memory_space<vmem>>, %arg10: memref<64x32xf32, #tpu.memory_space<vmem>>, %arg11: memref<64x32xf32, #tpu.memory_space<vmem>>, %arg12: memref<1x32xf32, #tpu.memory_space<vmem>>, %arg13: memref<32x32xf32, #tpu.memory_space<vmem>>, %arg14: memref<64x32xf32, #tpu.memory_space<vmem>>, %arg15: memref<1x32xf32, #tpu.memory_space<vmem>>, %arg16: memref<128x64xf32, #tpu.memory_space<vmem>>, %arg17: memref<64x64xf32, #tpu.memory_space<vmem>>, %arg18: memref<1x64xf32, #tpu.memory_space<vmem>>, %arg19: memref<64x4xf32, #tpu.memory_space<vmem>>, %arg20: memref<1x4xf32, #tpu.memory_space<vmem>>, %arg21: memref<30x4xf32, #tpu.memory_space<vmem>>, %arg22: memref<30x32xf32, #tpu.memory_space<vmem>>, %arg23: memref<30x32xf32, #tpu.memory_space<vmem>>) attributes {dimension_semantics = [#tpu.dimension_semantics<arbitrary>], iteration_bounds = array<i64: 1>, scalar_prefetch = 3 : i64, scratch_operands = 2 : i64, tpu.core_type = #tpu.core_type<tc>, window_params = [{pipeline_mode = #tpu.pipeline_mode<synchronous>, transform_indices = @transform_0, window_bounds = array<i64: 16, 64>}, {pipeline_mode = #tpu.pipeline_mode<synchronous>, transform_indices = @transform_1, window_bounds = array<i64: 14, 64>}, {pipeline_mode = #tpu.pipeline_mode<synchronous>, transform_indices = @transform_2, window_bounds = array<i64: 14, 128>}, {pipeline_mode = #tpu.pipeline_mode<synchronous>, transform_indices = @transform_3, window_bounds = array<i64: 2, 64>}, {pipeline_mode = #tpu.pipeline_mode<synchronous>, transform_indices = @transform_4, window_bounds = array<i64: 64, 32>}, {pipeline_mode = #tpu.pipeline_mode<synchronous>, transform_indices = @transform_5, window_bounds = array<i64: 1, 32>}, {pipeline_mode = #tpu.pipeline_mode<synchronous>, transform_indices = @transform_6, window_bounds = array<i64: 64, 32>}, {pipeline_mode = #tpu.pipeline_mode<synchronous>, transform_indices = @transform_7, window_bounds = array<i64: 64, 32>}, {pipeline_mode = #tpu.pipeline_mode<synchronous>, transform_indices = @transform_8, window_bounds = array<i64: 1, 32>}, {pipeline_mode = #tpu.pipeline_mode<synchronous>, transform_indices = @transform_9, window_bounds = array<i64: 32, 32>}, {pipeline_mode = #tpu.pipeline_mode<synchronous>, transform_indices = @transform_10, window_bounds = array<i64: 64, 32>}, {pipeline_mode = #tpu.pipeline_mode<synchronous>, transform_indices = @transform_11, window_bounds = array<i64: 1, 32>}, {pipeline_mode = #tpu.pipeline_mode<synchronous>, transform_indices = @transform_12, window_bounds = array<i64: 128, 64>}, {pipeline_mode = #tpu.pipeline_mode<synchronous>, transform_indices = @transform_13, window_bounds = array<i64: 64, 64>}, {pipeline_mode = #tpu.pipeline_mode<synchronous>, transform_indices = @transform_14, window_bounds = array<i64: 1, 64>}, {pipeline_mode = #tpu.pipeline_mode<synchronous>, transform_indices = @transform_15, window_bounds = array<i64: 64, 4>}, {pipeline_mode = #tpu.pipeline_mode<synchronous>, transform_indices = @transform_16, window_bounds = array<i64: 1, 4>}, {pipeline_mode = #tpu.pipeline_mode<synchronous>, transform_indices = @transform_17, window_bounds = array<i64: 30, 4>}]} {
    %c0 = arith.constant 0 : index
    %0 = memref.load %arg3[%c0] : memref<16xi32, #tpu.memory_space<smem>>
    %c1 = arith.constant 1 : index
    %1 = memref.load %arg3[%c1] : memref<16xi32, #tpu.memory_space<smem>>
    %c2 = arith.constant 2 : index
    %2 = memref.load %arg3[%c2] : memref<16xi32, #tpu.memory_space<smem>>
    %c3 = arith.constant 3 : index
    %3 = memref.load %arg3[%c3] : memref<16xi32, #tpu.memory_space<smem>>
    %c4 = arith.constant 4 : index
    %4 = memref.load %arg3[%c4] : memref<16xi32, #tpu.memory_space<smem>>
    %c5 = arith.constant 5 : index
    %5 = memref.load %arg3[%c5] : memref<16xi32, #tpu.memory_space<smem>>
    %c6 = arith.constant 6 : index
    %6 = memref.load %arg3[%c6] : memref<16xi32, #tpu.memory_space<smem>>
    %c7 = arith.constant 7 : index
    %7 = memref.load %arg3[%c7] : memref<16xi32, #tpu.memory_space<smem>>
    %c8 = arith.constant 8 : index
    %8 = memref.load %arg3[%c8] : memref<16xi32, #tpu.memory_space<smem>>
    %c9 = arith.constant 9 : index
    %9 = memref.load %arg3[%c9] : memref<16xi32, #tpu.memory_space<smem>>
    %c10 = arith.constant 10 : index
    %10 = memref.load %arg3[%c10] : memref<16xi32, #tpu.memory_space<smem>>
    %c11 = arith.constant 11 : index
    %11 = memref.load %arg3[%c11] : memref<16xi32, #tpu.memory_space<smem>>
    %c12 = arith.constant 12 : index
    %12 = memref.load %arg3[%c12] : memref<16xi32, #tpu.memory_space<smem>>
    %c13 = arith.constant 13 : index
    %13 = memref.load %arg3[%c13] : memref<16xi32, #tpu.memory_space<smem>>
    %c14 = arith.constant 14 : index
    %14 = memref.load %arg3[%c14] : memref<16xi32, #tpu.memory_space<smem>>
    %c15 = arith.constant 15 : index
    %15 = memref.load %arg3[%c15] : memref<16xi32, #tpu.memory_space<smem>>
    %c0_0 = arith.constant 0 : index
    %16 = memref.load %arg1[%c0_0] : memref<42xi32, #tpu.memory_space<smem>>
    %c1_1 = arith.constant 1 : index
    %17 = memref.load %arg1[%c1_1] : memref<42xi32, #tpu.memory_space<smem>>
    %c2_2 = arith.constant 2 : index
    %18 = memref.load %arg1[%c2_2] : memref<42xi32, #tpu.memory_space<smem>>
    %c3_3 = arith.constant 3 : index
    %19 = memref.load %arg1[%c3_3] : memref<42xi32, #tpu.memory_space<smem>>
    %c4_4 = arith.constant 4 : index
    %20 = memref.load %arg1[%c4_4] : memref<42xi32, #tpu.memory_space<smem>>
    %c5_5 = arith.constant 5 : index
    %21 = memref.load %arg1[%c5_5] : memref<42xi32, #tpu.memory_space<smem>>
    %c6_6 = arith.constant 6 : index
    %22 = memref.load %arg1[%c6_6] : memref<42xi32, #tpu.memory_space<smem>>
    %c7_7 = arith.constant 7 : index
    %23 = memref.load %arg1[%c7_7] : memref<42xi32, #tpu.memory_space<smem>>
    %c8_8 = arith.constant 8 : index
    %24 = memref.load %arg1[%c8_8] : memref<42xi32, #tpu.memory_space<smem>>
    %c9_9 = arith.constant 9 : index
    %25 = memref.load %arg1[%c9_9] : memref<42xi32, #tpu.memory_space<smem>>
    %c10_10 = arith.constant 10 : index
    %26 = memref.load %arg1[%c10_10] : memref<42xi32, #tpu.memory_space<smem>>
    %c11_11 = arith.constant 11 : index
    %27 = memref.load %arg1[%c11_11] : memref<42xi32, #tpu.memory_space<smem>>
    %c12_12 = arith.constant 12 : index
    %28 = memref.load %arg1[%c12_12] : memref<42xi32, #tpu.memory_space<smem>>
    %c13_13 = arith.constant 13 : index
    %29 = memref.load %arg1[%c13_13] : memref<42xi32, #tpu.memory_space<smem>>
    %c14_14 = arith.constant 14 : index
    %30 = memref.load %arg1[%c14_14] : memref<42xi32, #tpu.memory_space<smem>>
    %c15_15 = arith.constant 15 : index
    %31 = memref.load %arg1[%c15_15] : memref<42xi32, #tpu.memory_space<smem>>
    %c16 = arith.constant 16 : index
    %32 = memref.load %arg1[%c16] : memref<42xi32, #tpu.memory_space<smem>>
    %c17 = arith.constant 17 : index
    %33 = memref.load %arg1[%c17] : memref<42xi32, #tpu.memory_space<smem>>
    %c18 = arith.constant 18 : index
    %34 = memref.load %arg1[%c18] : memref<42xi32, #tpu.memory_space<smem>>
    %c19 = arith.constant 19 : index
    %35 = memref.load %arg1[%c19] : memref<42xi32, #tpu.memory_space<smem>>
    %c20 = arith.constant 20 : index
    %36 = memref.load %arg1[%c20] : memref<42xi32, #tpu.memory_space<smem>>
    %c21 = arith.constant 21 : index
    %37 = memref.load %arg1[%c21] : memref<42xi32, #tpu.memory_space<smem>>
    %c22 = arith.constant 22 : index
    %38 = memref.load %arg1[%c22] : memref<42xi32, #tpu.memory_space<smem>>
    %c23 = arith.constant 23 : index
    %39 = memref.load %arg1[%c23] : memref<42xi32, #tpu.memory_space<smem>>
    %c24 = arith.constant 24 : index
    %40 = memref.load %arg1[%c24] : memref<42xi32, #tpu.memory_space<smem>>
    %c25 = arith.constant 25 : index
    %41 = memref.load %arg1[%c25] : memref<42xi32, #tpu.memory_space<smem>>
    %c26 = arith.constant 26 : index
    %42 = memref.load %arg1[%c26] : memref<42xi32, #tpu.memory_space<smem>>
    %c27 = arith.constant 27 : index
    %43 = memref.load %arg1[%c27] : memref<42xi32, #tpu.memory_space<smem>>
    %c28 = arith.constant 28 : index
    %44 = memref.load %arg1[%c28] : memref<42xi32, #tpu.memory_space<smem>>
    %c29 = arith.constant 29 : index
    %45 = memref.load %arg1[%c29] : memref<42xi32, #tpu.memory_space<smem>>
    %c30 = arith.constant 30 : index
    %46 = memref.load %arg1[%c30] : memref<42xi32, #tpu.memory_space<smem>>
    %c31 = arith.constant 31 : index
    %47 = memref.load %arg1[%c31] : memref<42xi32, #tpu.memory_space<smem>>
    %c32 = arith.constant 32 : index
    %48 = memref.load %arg1[%c32] : memref<42xi32, #tpu.memory_space<smem>>
    %c33 = arith.constant 33 : index
    %49 = memref.load %arg1[%c33] : memref<42xi32, #tpu.memory_space<smem>>
    %c34 = arith.constant 34 : index
    %50 = memref.load %arg1[%c34] : memref<42xi32, #tpu.memory_space<smem>>
    %c35 = arith.constant 35 : index
    %51 = memref.load %arg1[%c35] : memref<42xi32, #tpu.memory_space<smem>>
    %c36 = arith.constant 36 : index
    %52 = memref.load %arg1[%c36] : memref<42xi32, #tpu.memory_space<smem>>
    %c37 = arith.constant 37 : index
    %53 = memref.load %arg1[%c37] : memref<42xi32, #tpu.memory_space<smem>>
    %c38 = arith.constant 38 : index
    %54 = memref.load %arg1[%c38] : memref<42xi32, #tpu.memory_space<smem>>
    %c39 = arith.constant 39 : index
    %55 = memref.load %arg1[%c39] : memref<42xi32, #tpu.memory_space<smem>>
    %c40 = arith.constant 40 : index
    %56 = memref.load %arg1[%c40] : memref<42xi32, #tpu.memory_space<smem>>
    %c41 = arith.constant 41 : index
    %57 = memref.load %arg1[%c41] : memref<42xi32, #tpu.memory_space<smem>>
    %c0_16 = arith.constant 0 : index
    %58 = memref.load %arg2[%c0_16] : memref<42xi32, #tpu.memory_space<smem>>
    %c1_17 = arith.constant 1 : index
    %59 = memref.load %arg2[%c1_17] : memref<42xi32, #tpu.memory_space<smem>>
    %c2_18 = arith.constant 2 : index
    %60 = memref.load %arg2[%c2_18] : memref<42xi32, #tpu.memory_space<smem>>
    %c3_19 = arith.constant 3 : index
    %61 = memref.load %arg2[%c3_19] : memref<42xi32, #tpu.memory_space<smem>>
    %c4_20 = arith.constant 4 : index
    %62 = memref.load %arg2[%c4_20] : memref<42xi32, #tpu.memory_space<smem>>
    %c5_21 = arith.constant 5 : index
    %63 = memref.load %arg2[%c5_21] : memref<42xi32, #tpu.memory_space<smem>>
    %c6_22 = arith.constant 6 : index
    %64 = memref.load %arg2[%c6_22] : memref<42xi32, #tpu.memory_space<smem>>
    %c7_23 = arith.constant 7 : index
    %65 = memref.load %arg2[%c7_23] : memref<42xi32, #tpu.memory_space<smem>>
    %c8_24 = arith.constant 8 : index
    %66 = memref.load %arg2[%c8_24] : memref<42xi32, #tpu.memory_space<smem>>
    %c9_25 = arith.constant 9 : index
    %67 = memref.load %arg2[%c9_25] : memref<42xi32, #tpu.memory_space<smem>>
    %c10_26 = arith.constant 10 : index
    %68 = memref.load %arg2[%c10_26] : memref<42xi32, #tpu.memory_space<smem>>
    %c11_27 = arith.constant 11 : index
    %69 = memref.load %arg2[%c11_27] : memref<42xi32, #tpu.memory_space<smem>>
    %c12_28 = arith.constant 12 : index
    %70 = memref.load %arg2[%c12_28] : memref<42xi32, #tpu.memory_space<smem>>
    %c13_29 = arith.constant 13 : index
    %71 = memref.load %arg2[%c13_29] : memref<42xi32, #tpu.memory_space<smem>>
    %c14_30 = arith.constant 14 : index
    %72 = memref.load %arg2[%c14_30] : memref<42xi32, #tpu.memory_space<smem>>
    %c15_31 = arith.constant 15 : index
    %73 = memref.load %arg2[%c15_31] : memref<42xi32, #tpu.memory_space<smem>>
    %c16_32 = arith.constant 16 : index
    %74 = memref.load %arg2[%c16_32] : memref<42xi32, #tpu.memory_space<smem>>
    %c17_33 = arith.constant 17 : index
    %75 = memref.load %arg2[%c17_33] : memref<42xi32, #tpu.memory_space<smem>>
    %c18_34 = arith.constant 18 : index
    %76 = memref.load %arg2[%c18_34] : memref<42xi32, #tpu.memory_space<smem>>
    %c19_35 = arith.constant 19 : index
    %77 = memref.load %arg2[%c19_35] : memref<42xi32, #tpu.memory_space<smem>>
    %c20_36 = arith.constant 20 : index
    %78 = memref.load %arg2[%c20_36] : memref<42xi32, #tpu.memory_space<smem>>
    %c21_37 = arith.constant 21 : index
    %79 = memref.load %arg2[%c21_37] : memref<42xi32, #tpu.memory_space<smem>>
    %c22_38 = arith.constant 22 : index
    %80 = memref.load %arg2[%c22_38] : memref<42xi32, #tpu.memory_space<smem>>
    %c23_39 = arith.constant 23 : index
    %81 = memref.load %arg2[%c23_39] : memref<42xi32, #tpu.memory_space<smem>>
    %c24_40 = arith.constant 24 : index
    %82 = memref.load %arg2[%c24_40] : memref<42xi32, #tpu.memory_space<smem>>
    %c25_41 = arith.constant 25 : index
    %83 = memref.load %arg2[%c25_41] : memref<42xi32, #tpu.memory_space<smem>>
    %c26_42 = arith.constant 26 : index
    %84 = memref.load %arg2[%c26_42] : memref<42xi32, #tpu.memory_space<smem>>
    %c27_43 = arith.constant 27 : index
    %85 = memref.load %arg2[%c27_43] : memref<42xi32, #tpu.memory_space<smem>>
    %c28_44 = arith.constant 28 : index
    %86 = memref.load %arg2[%c28_44] : memref<42xi32, #tpu.memory_space<smem>>
    %c29_45 = arith.constant 29 : index
    %87 = memref.load %arg2[%c29_45] : memref<42xi32, #tpu.memory_space<smem>>
    %c30_46 = arith.constant 30 : index
    %88 = memref.load %arg2[%c30_46] : memref<42xi32, #tpu.memory_space<smem>>
    %c31_47 = arith.constant 31 : index
    %89 = memref.load %arg2[%c31_47] : memref<42xi32, #tpu.memory_space<smem>>
    %c32_48 = arith.constant 32 : index
    %90 = memref.load %arg2[%c32_48] : memref<42xi32, #tpu.memory_space<smem>>
    %c33_49 = arith.constant 33 : index
    %91 = memref.load %arg2[%c33_49] : memref<42xi32, #tpu.memory_space<smem>>
    %c34_50 = arith.constant 34 : index
    %92 = memref.load %arg2[%c34_50] : memref<42xi32, #tpu.memory_space<smem>>
    %c35_51 = arith.constant 35 : index
    %93 = memref.load %arg2[%c35_51] : memref<42xi32, #tpu.memory_space<smem>>
    %c36_52 = arith.constant 36 : index
    %94 = memref.load %arg2[%c36_52] : memref<42xi32, #tpu.memory_space<smem>>
    %c37_53 = arith.constant 37 : index
    %95 = memref.load %arg2[%c37_53] : memref<42xi32, #tpu.memory_space<smem>>
    %c38_54 = arith.constant 38 : index
    %96 = memref.load %arg2[%c38_54] : memref<42xi32, #tpu.memory_space<smem>>
    %c39_55 = arith.constant 39 : index
    %97 = memref.load %arg2[%c39_55] : memref<42xi32, #tpu.memory_space<smem>>
    %c40_56 = arith.constant 40 : index
    %98 = memref.load %arg2[%c40_56] : memref<42xi32, #tpu.memory_space<smem>>
    %c41_57 = arith.constant 41 : index
    %99 = memref.load %arg2[%c41_57] : memref<42xi32, #tpu.memory_space<smem>>
    %c0_58 = arith.constant 0 : index
    %c0_59 = arith.constant 0 : index
    %100 = vector.load %arg11[%c0_58, %c0_59] : memref<64x32xf32, #tpu.memory_space<vmem>>, vector<64x32xf32>
    %c0_60 = arith.constant 0 : index
    %c0_61 = arith.constant 0 : index
    %101 = vector.load %arg17[%c0_60, %c0_61] : memref<64x64xf32, #tpu.memory_space<vmem>>, vector<64x64xf32>
    %c0_62 = arith.constant 0 : index
    %c0_63 = arith.constant 0 : index
    %102 = vector.load %arg5[%c0_62, %c0_63] : memref<14x64xf32, #tpu.memory_space<vmem>>, vector<14x64xf32>
    %c0_64 = arith.constant 0 : index
    %c0_65 = arith.constant 0 : index
    %103 = vector.load %arg10[%c0_64, %c0_65] : memref<64x32xf32, #tpu.memory_space<vmem>>, vector<64x32xf32>
    %cst = arith.constant dense<0.000000e+00> : vector<14x32xf32>
    %104 = tpu.matmul %102, %103, %cst {dimension_numbers = #tpu.dot_dimension_numbers<[1], [0], [0], [1], [0, 0, 1, 1], [], []>} : vector<14x64xf32>, vector<64x32xf32>, vector<14x32xf32> -> vector<14x32xf32>
    %c0_66 = arith.constant 0 : index
    %c0_67 = arith.constant 0 : index
    %105 = vector.load %arg12[%c0_66, %c0_67] : memref<1x32xf32, #tpu.memory_space<vmem>>, vector<1x32xf32>
    %106 = vector.broadcast %105 : vector<1x32xf32> to vector<14x32xf32>
    %107 = arith.addf %104, %106 : vector<14x32xf32>
    %c0_68 = arith.constant 0 : index
    %c0_69 = arith.constant 0 : index
    %108 = vector.load %arg6[%c0_68, %c0_69] : memref<14x128xf32, #tpu.memory_space<vmem>>, vector<14x128xf32>
    %c0_70 = arith.constant 0 : index
    %c0_71 = arith.constant 0 : index
    %109 = vector.load %arg16[%c0_70, %c0_71] : memref<128x64xf32, #tpu.memory_space<vmem>>, vector<128x64xf32>
    %cst_72 = arith.constant dense<0.000000e+00> : vector<14x64xf32>
    %110 = tpu.matmul %108, %109, %cst_72 {dimension_numbers = #tpu.dot_dimension_numbers<[1], [0], [0], [1], [0, 0, 1, 1], [], []>} : vector<14x128xf32>, vector<128x64xf32>, vector<14x64xf32> -> vector<14x64xf32>
    %c0_73 = arith.constant 0 : index
    %c0_74 = arith.constant 0 : index
    %111 = vector.load %arg18[%c0_73, %c0_74] : memref<1x64xf32, #tpu.memory_space<vmem>>, vector<1x64xf32>
    %112 = vector.broadcast %111 : vector<1x64xf32> to vector<14x64xf32>
    %113 = arith.addf %110, %112 : vector<14x64xf32>
    %c0_75 = arith.constant 0 : index
    %c0_76 = arith.constant 0 : index
    %114 = vector.load %arg7[%c0_75, %c0_76] : memref<2x64xf32, #tpu.memory_space<vmem>>, vector<2x64xf32>
    %c0_77 = arith.constant 0 : index
    %c0_78 = arith.constant 0 : index
    %115 = vector.load %arg14[%c0_77, %c0_78] : memref<64x32xf32, #tpu.memory_space<vmem>>, vector<64x32xf32>
    %cst_79 = arith.constant dense<0.000000e+00> : vector<2x32xf32>
    %116 = tpu.matmul %114, %115, %cst_79 {dimension_numbers = #tpu.dot_dimension_numbers<[1], [0], [0], [1], [0, 0, 1, 1], [], []>} : vector<2x64xf32>, vector<64x32xf32>, vector<2x32xf32> -> vector<2x32xf32>
    %c0_80 = arith.constant 0 : index
    %c0_81 = arith.constant 0 : index
    %117 = vector.load %arg15[%c0_80, %c0_81] : memref<1x32xf32, #tpu.memory_space<vmem>>, vector<1x32xf32>
    %118 = vector.broadcast %117 : vector<1x32xf32> to vector<2x32xf32>
    %119 = arith.addf %116, %118 : vector<2x32xf32>
    %c0_82 = arith.constant 0 : index
    %c0_83 = arith.constant 0 : index
    %120 = vector.load %arg4[%c0_82, %c0_83] : memref<16x64xf32, #tpu.memory_space<vmem>>, vector<16x64xf32>
    %c0_84 = arith.constant 0 : index
    %c0_85 = arith.constant 0 : index
    %121 = vector.load %arg8[%c0_84, %c0_85] : memref<64x32xf32, #tpu.memory_space<vmem>>, vector<64x32xf32>
    %cst_86 = arith.constant dense<0.000000e+00> : vector<16x32xf32>
    %122 = tpu.matmul %120, %121, %cst_86 {dimension_numbers = #tpu.dot_dimension_numbers<[1], [0], [0], [1], [0, 0, 1, 1], [], []>} : vector<16x64xf32>, vector<64x32xf32>, vector<16x32xf32> -> vector<16x32xf32>
    %c0_87 = arith.constant 0 : index
    %c0_88 = arith.constant 0 : index
    %123 = vector.load %arg9[%c0_87, %c0_88] : memref<1x32xf32, #tpu.memory_space<vmem>>, vector<1x32xf32>
    %124 = vector.broadcast %123 : vector<1x32xf32> to vector<16x32xf32>
    %125 = arith.addf %122, %124 : vector<16x32xf32>
    %126 = vector.extract_strided_slice %125 {offsets = [0, 0], sizes = [1, 32], strides = [1, 1]} : vector<16x32xf32> to vector<1x32xf32>
    %127 = arith.index_cast %0 : i32 to index
    %c0_89 = arith.constant 0 : index
    %128 = vector.load %arg22[%127, %c0_89] : memref<30x32xf32, #tpu.memory_space<vmem>>, vector<1x32xf32>
    tpu.vector_store %arg22[%127, %c0_89], %126 {strides = array<i32>} : memref<30x32xf32, #tpu.memory_space<vmem>>, vector<1x32xf32>,
    %129 = vector.extract_strided_slice %125 {offsets = [1, 0], sizes = [1, 32], strides = [1, 1]} : vector<16x32xf32> to vector<1x32xf32>
    %130 = arith.index_cast %1 : i32 to index
    %c0_90 = arith.constant 0 : index
    %131 = vector.load %arg22[%130, %c0_90] : memref<30x32xf32, #tpu.memory_space<vmem>>, vector<1x32xf32>
    tpu.vector_store %arg22[%130, %c0_90], %129 {strides = array<i32>} : memref<30x32xf32, #tpu.memory_space<vmem>>, vector<1x32xf32>,
    %132 = vector.extract_strided_slice %125 {offsets = [2, 0], sizes = [1, 32], strides = [1, 1]} : vector<16x32xf32> to vector<1x32xf32>
    %133 = arith.index_cast %2 : i32 to index
    %c0_91 = arith.constant 0 : index
    %134 = vector.load %arg22[%133, %c0_91] : memref<30x32xf32, #tpu.memory_space<vmem>>, vector<1x32xf32>
    tpu.vector_store %arg22[%133, %c0_91], %132 {strides = array<i32>} : memref<30x32xf32, #tpu.memory_space<vmem>>, vector<1x32xf32>,
    %135 = vector.extract_strided_slice %125 {offsets = [3, 0], sizes = [1, 32], strides = [1, 1]} : vector<16x32xf32> to vector<1x32xf32>
    %136 = arith.index_cast %3 : i32 to index
    %c0_92 = arith.constant 0 : index
    %137 = vector.load %arg22[%136, %c0_92] : memref<30x32xf32, #tpu.memory_space<vmem>>, vector<1x32xf32>
    tpu.vector_store %arg22[%136, %c0_92], %135 {strides = array<i32>} : memref<30x32xf32, #tpu.memory_space<vmem>>, vector<1x32xf32>,
    %138 = vector.extract_strided_slice %125 {offsets = [4, 0], sizes = [1, 32], strides = [1, 1]} : vector<16x32xf32> to vector<1x32xf32>
    %139 = arith.index_cast %4 : i32 to index
    %c0_93 = arith.constant 0 : index
    %140 = vector.load %arg22[%139, %c0_93] : memref<30x32xf32, #tpu.memory_space<vmem>>, vector<1x32xf32>
    tpu.vector_store %arg22[%139, %c0_93], %138 {strides = array<i32>} : memref<30x32xf32, #tpu.memory_space<vmem>>, vector<1x32xf32>,
    %141 = vector.extract_strided_slice %125 {offsets = [5, 0], sizes = [1, 32], strides = [1, 1]} : vector<16x32xf32> to vector<1x32xf32>
    %142 = arith.index_cast %5 : i32 to index
    %c0_94 = arith.constant 0 : index
    %143 = vector.load %arg22[%142, %c0_94] : memref<30x32xf32, #tpu.memory_space<vmem>>, vector<1x32xf32>
    tpu.vector_store %arg22[%142, %c0_94], %141 {strides = array<i32>} : memref<30x32xf32, #tpu.memory_space<vmem>>, vector<1x32xf32>,
    %144 = vector.extract_strided_slice %125 {offsets = [6, 0], sizes = [1, 32], strides = [1, 1]} : vector<16x32xf32> to vector<1x32xf32>
    %145 = arith.index_cast %6 : i32 to index
    %c0_95 = arith.constant 0 : index
    %146 = vector.load %arg22[%145, %c0_95] : memref<30x32xf32, #tpu.memory_space<vmem>>, vector<1x32xf32>
    tpu.vector_store %arg22[%145, %c0_95], %144 {strides = array<i32>} : memref<30x32xf32, #tpu.memory_space<vmem>>, vector<1x32xf32>,
    %147 = vector.extract_strided_slice %125 {offsets = [7, 0], sizes = [1, 32], strides = [1, 1]} : vector<16x32xf32> to vector<1x32xf32>
    %148 = arith.index_cast %7 : i32 to index
    %c0_96 = arith.constant 0 : index
    %149 = vector.load %arg22[%148, %c0_96] : memref<30x32xf32, #tpu.memory_space<vmem>>, vector<1x32xf32>
    tpu.vector_store %arg22[%148, %c0_96], %147 {strides = array<i32>} : memref<30x32xf32, #tpu.memory_space<vmem>>, vector<1x32xf32>,
    %150 = vector.extract_strided_slice %125 {offsets = [8, 0], sizes = [1, 32], strides = [1, 1]} : vector<16x32xf32> to vector<1x32xf32>
    %151 = arith.index_cast %8 : i32 to index
    %c0_97 = arith.constant 0 : index
    %152 = vector.load %arg22[%151, %c0_97] : memref<30x32xf32, #tpu.memory_space<vmem>>, vector<1x32xf32>
    tpu.vector_store %arg22[%151, %c0_97], %150 {strides = array<i32>} : memref<30x32xf32, #tpu.memory_space<vmem>>, vector<1x32xf32>,
    %153 = vector.extract_strided_slice %125 {offsets = [9, 0], sizes = [1, 32], strides = [1, 1]} : vector<16x32xf32> to vector<1x32xf32>
    %154 = arith.index_cast %9 : i32 to index
    %c0_98 = arith.constant 0 : index
    %155 = vector.load %arg22[%154, %c0_98] : memref<30x32xf32, #tpu.memory_space<vmem>>, vector<1x32xf32>
    tpu.vector_store %arg22[%154, %c0_98], %153 {strides = array<i32>} : memref<30x32xf32, #tpu.memory_space<vmem>>, vector<1x32xf32>,
    %156 = vector.extract_strided_slice %125 {offsets = [10, 0], sizes = [1, 32], strides = [1, 1]} : vector<16x32xf32> to vector<1x32xf32>
    %157 = arith.index_cast %10 : i32 to index
    %c0_99 = arith.constant 0 : index
    %158 = vector.load %arg22[%157, %c0_99] : memref<30x32xf32, #tpu.memory_space<vmem>>, vector<1x32xf32>
    tpu.vector_store %arg22[%157, %c0_99], %156 {strides = array<i32>} : memref<30x32xf32, #tpu.memory_space<vmem>>, vector<1x32xf32>,
    %159 = vector.extract_strided_slice %125 {offsets = [11, 0], sizes = [1, 32], strides = [1, 1]} : vector<16x32xf32> to vector<1x32xf32>
    %160 = arith.index_cast %11 : i32 to index
    %c0_100 = arith.constant 0 : index
    %161 = vector.load %arg22[%160, %c0_100] : memref<30x32xf32, #tpu.memory_space<vmem>>, vector<1x32xf32>
    tpu.vector_store %arg22[%160, %c0_100], %159 {strides = array<i32>} : memref<30x32xf32, #tpu.memory_space<vmem>>, vector<1x32xf32>,
    %162 = vector.extract_strided_slice %125 {offsets = [12, 0], sizes = [1, 32], strides = [1, 1]} : vector<16x32xf32> to vector<1x32xf32>
    %163 = arith.index_cast %12 : i32 to index
    %c0_101 = arith.constant 0 : index
    %164 = vector.load %arg22[%163, %c0_101] : memref<30x32xf32, #tpu.memory_space<vmem>>, vector<1x32xf32>
    tpu.vector_store %arg22[%163, %c0_101], %162 {strides = array<i32>} : memref<30x32xf32, #tpu.memory_space<vmem>>, vector<1x32xf32>,
    %165 = vector.extract_strided_slice %125 {offsets = [13, 0], sizes = [1, 32], strides = [1, 1]} : vector<16x32xf32> to vector<1x32xf32>
    %166 = arith.index_cast %13 : i32 to index
    %c0_102 = arith.constant 0 : index
    %167 = vector.load %arg22[%166, %c0_102] : memref<30x32xf32, #tpu.memory_space<vmem>>, vector<1x32xf32>
    tpu.vector_store %arg22[%166, %c0_102], %165 {strides = array<i32>} : memref<30x32xf32, #tpu.memory_space<vmem>>, vector<1x32xf32>,
    %168 = vector.extract_strided_slice %125 {offsets = [14, 0], sizes = [1, 32], strides = [1, 1]} : vector<16x32xf32> to vector<1x32xf32>
    %169 = arith.index_cast %14 : i32 to index
    %c0_103 = arith.constant 0 : index
    %170 = vector.load %arg22[%169, %c0_103] : memref<30x32xf32, #tpu.memory_space<vmem>>, vector<1x32xf32>
    tpu.vector_store %arg22[%169, %c0_103], %168 {strides = array<i32>} : memref<30x32xf32, #tpu.memory_space<vmem>>, vector<1x32xf32>,
    %171 = vector.extract_strided_slice %125 {offsets = [15, 0], sizes = [1, 32], strides = [1, 1]} : vector<16x32xf32> to vector<1x32xf32>
    %172 = arith.index_cast %15 : i32 to index
    %c0_104 = arith.constant 0 : index
    %173 = vector.load %arg22[%172, %c0_104] : memref<30x32xf32, #tpu.memory_space<vmem>>, vector<1x32xf32>
    tpu.vector_store %arg22[%172, %c0_104], %171 {strides = array<i32>} : memref<30x32xf32, #tpu.memory_space<vmem>>, vector<1x32xf32>,
    %174 = arith.index_cast %17 : i32 to index
    %c0_105 = arith.constant 0 : index
    %175 = vector.load %arg22[%174, %c0_105] : memref<30x32xf32, #tpu.memory_space<vmem>>, vector<1x32xf32>
    %176 = arith.index_cast %18 : i32 to index
    %c0_106 = arith.constant 0 : index
    %177 = vector.load %arg22[%176, %c0_106] : memref<30x32xf32, #tpu.memory_space<vmem>>, vector<1x32xf32>
    %178 = tpu.concatenate %175, %177 in 1 : vector<1x32xf32>, vector<1x32xf32> -> vector<1x64xf32>
    %179 = arith.index_cast %20 : i32 to index
    %c0_107 = arith.constant 0 : index
    %180 = vector.load %arg22[%179, %c0_107] : memref<30x32xf32, #tpu.memory_space<vmem>>, vector<1x32xf32>
    %181 = arith.index_cast %21 : i32 to index
    %c0_108 = arith.constant 0 : index
    %182 = vector.load %arg22[%181, %c0_108] : memref<30x32xf32, #tpu.memory_space<vmem>>, vector<1x32xf32>
    %183 = tpu.concatenate %180, %182 in 1 : vector<1x32xf32>, vector<1x32xf32> -> vector<1x64xf32>
    %184 = tpu.concatenate %178, %183 in 0 : vector<1x64xf32>, vector<1x64xf32> -> vector<2x64xf32>
    %cst_109 = arith.constant dense<0.000000e+00> : vector<2x32xf32>
    %185 = tpu.matmul %184, %100, %cst_109 {dimension_numbers = #tpu.dot_dimension_numbers<[1], [0], [0], [1], [0, 0, 1, 1], [], []>} : vector<2x64xf32>, vector<64x32xf32>, vector<2x32xf32> -> vector<2x32xf32>
    %186 = vector.extract_strided_slice %107 {offsets = [0, 0], sizes = [2, 32], strides = [1, 1]} : vector<14x32xf32> to vector<2x32xf32>
    %187 = arith.addf %185, %186 : vector<2x32xf32>
    %188 = math.tanh %187 : vector<2x32xf32>
    %189 = vector.extract_strided_slice %188 {offsets = [0, 0], sizes = [1, 32], strides = [1, 1]} : vector<2x32xf32> to vector<1x32xf32>
    %190 = arith.index_cast %16 : i32 to index
    %c0_110 = arith.constant 0 : index
    %191 = vector.load %arg22[%190, %c0_110] : memref<30x32xf32, #tpu.memory_space<vmem>>, vector<1x32xf32>
    tpu.vector_store %arg22[%190, %c0_110], %189 {strides = array<i32>} : memref<30x32xf32, #tpu.memory_space<vmem>>, vector<1x32xf32>,
    %192 = vector.extract_strided_slice %188 {offsets = [1, 0], sizes = [1, 32], strides = [1, 1]} : vector<2x32xf32> to vector<1x32xf32>
    %193 = arith.index_cast %19 : i32 to index
    %c0_111 = arith.constant 0 : index
    %194 = vector.load %arg22[%193, %c0_111] : memref<30x32xf32, #tpu.memory_space<vmem>>, vector<1x32xf32>
    tpu.vector_store %arg22[%193, %c0_111], %192 {strides = array<i32>} : memref<30x32xf32, #tpu.memory_space<vmem>>, vector<1x32xf32>,
    %195 = arith.index_cast %23 : i32 to index
    %c0_112 = arith.constant 0 : index
    %196 = vector.load %arg22[%195, %c0_112] : memref<30x32xf32, #tpu.memory_space<vmem>>, vector<1x32xf32>
    %197 = arith.index_cast %24 : i32 to index
    %c0_113 = arith.constant 0 : index
    %198 = vector.load %arg22[%197, %c0_113] : memref<30x32xf32, #tpu.memory_space<vmem>>, vector<1x32xf32>
    %199 = tpu.concatenate %196, %198 in 1 : vector<1x32xf32>, vector<1x32xf32> -> vector<1x64xf32>
    %200 = arith.index_cast %26 : i32 to index
    %c0_114 = arith.constant 0 : index
    %201 = vector.load %arg22[%200, %c0_114] : memref<30x32xf32, #tpu.memory_space<vmem>>, vector<1x32xf32>
    %202 = arith.index_cast %27 : i32 to index
    %c0_115 = arith.constant 0 : index
    %203 = vector.load %arg22[%202, %c0_115] : memref<30x32xf32, #tpu.memory_space<vmem>>, vector<1x32xf32>
    %204 = tpu.concatenate %201, %203 in 1 : vector<1x32xf32>, vector<1x32xf32> -> vector<1x64xf32>
    %205 = tpu.concatenate %199, %204 in 0 : vector<1x64xf32>, vector<1x64xf32> -> vector<2x64xf32>
    %cst_116 = arith.constant dense<0.000000e+00> : vector<2x32xf32>
    %206 = tpu.matmul %205, %100, %cst_116 {dimension_numbers = #tpu.dot_dimension_numbers<[1], [0], [0], [1], [0, 0, 1, 1], [], []>} : vector<2x64xf32>, vector<64x32xf32>, vector<2x32xf32> -> vector<2x32xf32>
    %207 = vector.extract_strided_slice %107 {offsets = [2, 0], sizes = [2, 32], strides = [1, 1]} : vector<14x32xf32> to vector<2x32xf32>
    %208 = arith.addf %206, %207 : vector<2x32xf32>
    %209 = math.tanh %208 : vector<2x32xf32>
    %210 = vector.extract_strided_slice %209 {offsets = [0, 0], sizes = [1, 32], strides = [1, 1]} : vector<2x32xf32> to vector<1x32xf32>
    %211 = arith.index_cast %22 : i32 to index
    %c0_117 = arith.constant 0 : index
    %212 = vector.load %arg22[%211, %c0_117] : memref<30x32xf32, #tpu.memory_space<vmem>>, vector<1x32xf32>
    tpu.vector_store %arg22[%211, %c0_117], %210 {strides = array<i32>} : memref<30x32xf32, #tpu.memory_space<vmem>>, vector<1x32xf32>,
    %213 = vector.extract_strided_slice %209 {offsets = [1, 0], sizes = [1, 32], strides = [1, 1]} : vector<2x32xf32> to vector<1x32xf32>
    %214 = arith.index_cast %25 : i32 to index
    %c0_118 = arith.constant 0 : index
    %215 = vector.load %arg22[%214, %c0_118] : memref<30x32xf32, #tpu.memory_space<vmem>>, vector<1x32xf32>
    tpu.vector_store %arg22[%214, %c0_118], %213 {strides = array<i32>} : memref<30x32xf32, #tpu.memory_space<vmem>>, vector<1x32xf32>,
    %216 = arith.index_cast %29 : i32 to index
    %c0_119 = arith.constant 0 : index
    %217 = vector.load %arg22[%216, %c0_119] : memref<30x32xf32, #tpu.memory_space<vmem>>, vector<1x32xf32>
    %218 = arith.index_cast %30 : i32 to index
    %c0_120 = arith.constant 0 : index
    %219 = vector.load %arg22[%218, %c0_120] : memref<30x32xf32, #tpu.memory_space<vmem>>, vector<1x32xf32>
    %220 = tpu.concatenate %217, %219 in 1 : vector<1x32xf32>, vector<1x32xf32> -> vector<1x64xf32>
    %221 = arith.index_cast %32 : i32 to index
    %c0_121 = arith.constant 0 : index
    %222 = vector.load %arg22[%221, %c0_121] : memref<30x32xf32, #tpu.memory_space<vmem>>, vector<1x32xf32>
    %223 = arith.index_cast %33 : i32 to index
    %c0_122 = arith.constant 0 : index
    %224 = vector.load %arg22[%223, %c0_122] : memref<30x32xf32, #tpu.memory_space<vmem>>, vector<1x32xf32>
    %225 = tpu.concatenate %222, %224 in 1 : vector<1x32xf32>, vector<1x32xf32> -> vector<1x64xf32>
    %226 = tpu.concatenate %220, %225 in 0 : vector<1x64xf32>, vector<1x64xf32> -> vector<2x64xf32>
    %cst_123 = arith.constant dense<0.000000e+00> : vector<2x32xf32>
    %227 = tpu.matmul %226, %100, %cst_123 {dimension_numbers = #tpu.dot_dimension_numbers<[1], [0], [0], [1], [0, 0, 1, 1], [], []>} : vector<2x64xf32>, vector<64x32xf32>, vector<2x32xf32> -> vector<2x32xf32>
    %228 = vector.extract_strided_slice %107 {offsets = [4, 0], sizes = [2, 32], strides = [1, 1]} : vector<14x32xf32> to vector<2x32xf32>
    %229 = arith.addf %227, %228 : vector<2x32xf32>
    %230 = math.tanh %229 : vector<2x32xf32>
    %231 = vector.extract_strided_slice %230 {offsets = [0, 0], sizes = [1, 32], strides = [1, 1]} : vector<2x32xf32> to vector<1x32xf32>
    %232 = arith.index_cast %28 : i32 to index
    %c0_124 = arith.constant 0 : index
    %233 = vector.load %arg22[%232, %c0_124] : memref<30x32xf32, #tpu.memory_space<vmem>>, vector<1x32xf32>
    tpu.vector_store %arg22[%232, %c0_124], %231 {strides = array<i32>} : memref<30x32xf32, #tpu.memory_space<vmem>>, vector<1x32xf32>,
    %234 = vector.extract_strided_slice %230 {offsets = [1, 0], sizes = [1, 32], strides = [1, 1]} : vector<2x32xf32> to vector<1x32xf32>
    %235 = arith.index_cast %31 : i32 to index
    %c0_125 = arith.constant 0 : index
    %236 = vector.load %arg22[%235, %c0_125] : memref<30x32xf32, #tpu.memory_space<vmem>>, vector<1x32xf32>
    tpu.vector_store %arg22[%235, %c0_125], %234 {strides = array<i32>} : memref<30x32xf32, #tpu.memory_space<vmem>>, vector<1x32xf32>,
    %237 = arith.index_cast %35 : i32 to index
    %c0_126 = arith.constant 0 : index
    %238 = vector.load %arg22[%237, %c0_126] : memref<30x32xf32, #tpu.memory_space<vmem>>, vector<1x32xf32>
    %239 = arith.index_cast %36 : i32 to index
    %c0_127 = arith.constant 0 : index
    %240 = vector.load %arg22[%239, %c0_127] : memref<30x32xf32, #tpu.memory_space<vmem>>, vector<1x32xf32>
    %241 = tpu.concatenate %238, %240 in 1 : vector<1x32xf32>, vector<1x32xf32> -> vector<1x64xf32>
    %242 = arith.index_cast %38 : i32 to index
    %c0_128 = arith.constant 0 : index
    %243 = vector.load %arg22[%242, %c0_128] : memref<30x32xf32, #tpu.memory_space<vmem>>, vector<1x32xf32>
    %244 = arith.index_cast %39 : i32 to index
    %c0_129 = arith.constant 0 : index
    %245 = vector.load %arg22[%244, %c0_129] : memref<30x32xf32, #tpu.memory_space<vmem>>, vector<1x32xf32>
    %246 = tpu.concatenate %243, %245 in 1 : vector<1x32xf32>, vector<1x32xf32> -> vector<1x64xf32>
    %247 = tpu.concatenate %241, %246 in 0 : vector<1x64xf32>, vector<1x64xf32> -> vector<2x64xf32>
    %cst_130 = arith.constant dense<0.000000e+00> : vector<2x32xf32>
    %248 = tpu.matmul %247, %100, %cst_130 {dimension_numbers = #tpu.dot_dimension_numbers<[1], [0], [0], [1], [0, 0, 1, 1], [], []>} : vector<2x64xf32>, vector<64x32xf32>, vector<2x32xf32> -> vector<2x32xf32>
    %249 = vector.extract_strided_slice %107 {offsets = [6, 0], sizes = [2, 32], strides = [1, 1]} : vector<14x32xf32> to vector<2x32xf32>
    %250 = arith.addf %248, %249 : vector<2x32xf32>
    %251 = math.tanh %250 : vector<2x32xf32>
    %252 = vector.extract_strided_slice %251 {offsets = [0, 0], sizes = [1, 32], strides = [1, 1]} : vector<2x32xf32> to vector<1x32xf32>
    %253 = arith.index_cast %34 : i32 to index
    %c0_131 = arith.constant 0 : index
    %254 = vector.load %arg22[%253, %c0_131] : memref<30x32xf32, #tpu.memory_space<vmem>>, vector<1x32xf32>
    tpu.vector_store %arg22[%253, %c0_131], %252 {strides = array<i32>} : memref<30x32xf32, #tpu.memory_space<vmem>>, vector<1x32xf32>,
    %255 = vector.extract_strided_slice %251 {offsets = [1, 0], sizes = [1, 32], strides = [1, 1]} : vector<2x32xf32> to vector<1x32xf32>
    %256 = arith.index_cast %37 : i32 to index
    %c0_132 = arith.constant 0 : index
    %257 = vector.load %arg22[%256, %c0_132] : memref<30x32xf32, #tpu.memory_space<vmem>>, vector<1x32xf32>
    tpu.vector_store %arg22[%256, %c0_132], %255 {strides = array<i32>} : memref<30x32xf32, #tpu.memory_space<vmem>>, vector<1x32xf32>,
    %258 = arith.index_cast %41 : i32 to index
    %c0_133 = arith.constant 0 : index
    %259 = vector.load %arg22[%258, %c0_133] : memref<30x32xf32, #tpu.memory_space<vmem>>, vector<1x32xf32>
    %260 = arith.index_cast %42 : i32 to index
    %c0_134 = arith.constant 0 : index
    %261 = vector.load %arg22[%260, %c0_134] : memref<30x32xf32, #tpu.memory_space<vmem>>, vector<1x32xf32>
    %262 = tpu.concatenate %259, %261 in 1 : vector<1x32xf32>, vector<1x32xf32> -> vector<1x64xf32>
    %263 = arith.index_cast %44 : i32 to index
    %c0_135 = arith.constant 0 : index
    %264 = vector.load %arg22[%263, %c0_135] : memref<30x32xf32, #tpu.memory_space<vmem>>, vector<1x32xf32>
    %265 = arith.index_cast %45 : i32 to index
    %c0_136 = arith.constant 0 : index
    %266 = vector.load %arg22[%265, %c0_136] : memref<30x32xf32, #tpu.memory_space<vmem>>, vector<1x32xf32>
    %267 = tpu.concatenate %264, %266 in 1 : vector<1x32xf32>, vector<1x32xf32> -> vector<1x64xf32>
    %268 = tpu.concatenate %262, %267 in 0 : vector<1x64xf32>, vector<1x64xf32> -> vector<2x64xf32>
    %cst_137 = arith.constant dense<0.000000e+00> : vector<2x32xf32>
    %269 = tpu.matmul %268, %100, %cst_137 {dimension_numbers = #tpu.dot_dimension_numbers<[1], [0], [0], [1], [0, 0, 1, 1], [], []>} : vector<2x64xf32>, vector<64x32xf32>, vector<2x32xf32> -> vector<2x32xf32>
    %270 = vector.extract_strided_slice %107 {offsets = [8, 0], sizes = [2, 32], strides = [1, 1]} : vector<14x32xf32> to vector<2x32xf32>
    %271 = arith.addf %269, %270 : vector<2x32xf32>
    %272 = math.tanh %271 : vector<2x32xf32>
    %273 = vector.extract_strided_slice %272 {offsets = [0, 0], sizes = [1, 32], strides = [1, 1]} : vector<2x32xf32> to vector<1x32xf32>
    %274 = arith.index_cast %40 : i32 to index
    %c0_138 = arith.constant 0 : index
    %275 = vector.load %arg22[%274, %c0_138] : memref<30x32xf32, #tpu.memory_space<vmem>>, vector<1x32xf32>
    tpu.vector_store %arg22[%274, %c0_138], %273 {strides = array<i32>} : memref<30x32xf32, #tpu.memory_space<vmem>>, vector<1x32xf32>,
    %276 = vector.extract_strided_slice %272 {offsets = [1, 0], sizes = [1, 32], strides = [1, 1]} : vector<2x32xf32> to vector<1x32xf32>
    %277 = arith.index_cast %43 : i32 to index
    %c0_139 = arith.constant 0 : index
    %278 = vector.load %arg22[%277, %c0_139] : memref<30x32xf32, #tpu.memory_space<vmem>>, vector<1x32xf32>
    tpu.vector_store %arg22[%277, %c0_139], %276 {strides = array<i32>} : memref<30x32xf32, #tpu.memory_space<vmem>>, vector<1x32xf32>,
    %279 = arith.index_cast %47 : i32 to index
    %c0_140 = arith.constant 0 : index
    %280 = vector.load %arg22[%279, %c0_140] : memref<30x32xf32, #tpu.memory_space<vmem>>, vector<1x32xf32>
    %281 = arith.index_cast %48 : i32 to index
    %c0_141 = arith.constant 0 : index
    %282 = vector.load %arg22[%281, %c0_141] : memref<30x32xf32, #tpu.memory_space<vmem>>, vector<1x32xf32>
    %283 = tpu.concatenate %280, %282 in 1 : vector<1x32xf32>, vector<1x32xf32> -> vector<1x64xf32>
    %284 = arith.index_cast %50 : i32 to index
    %c0_142 = arith.constant 0 : index
    %285 = vector.load %arg22[%284, %c0_142] : memref<30x32xf32, #tpu.memory_space<vmem>>, vector<1x32xf32>
    %286 = arith.index_cast %51 : i32 to index
    %c0_143 = arith.constant 0 : index
    %287 = vector.load %arg22[%286, %c0_143] : memref<30x32xf32, #tpu.memory_space<vmem>>, vector<1x32xf32>
    %288 = tpu.concatenate %285, %287 in 1 : vector<1x32xf32>, vector<1x32xf32> -> vector<1x64xf32>
    %289 = tpu.concatenate %283, %288 in 0 : vector<1x64xf32>, vector<1x64xf32> -> vector<2x64xf32>
    %cst_144 = arith.constant dense<0.000000e+00> : vector<2x32xf32>
    %290 = tpu.matmul %289, %100, %cst_144 {dimension_numbers = #tpu.dot_dimension_numbers<[1], [0], [0], [1], [0, 0, 1, 1], [], []>} : vector<2x64xf32>, vector<64x32xf32>, vector<2x32xf32> -> vector<2x32xf32>
    %291 = vector.extract_strided_slice %107 {offsets = [10, 0], sizes = [2, 32], strides = [1, 1]} : vector<14x32xf32> to vector<2x32xf32>
    %292 = arith.addf %290, %291 : vector<2x32xf32>
    %293 = math.tanh %292 : vector<2x32xf32>
    %294 = vector.extract_strided_slice %293 {offsets = [0, 0], sizes = [1, 32], strides = [1, 1]} : vector<2x32xf32> to vector<1x32xf32>
    %295 = arith.index_cast %46 : i32 to index
    %c0_145 = arith.constant 0 : index
    %296 = vector.load %arg22[%295, %c0_145] : memref<30x32xf32, #tpu.memory_space<vmem>>, vector<1x32xf32>
    tpu.vector_store %arg22[%295, %c0_145], %294 {strides = array<i32>} : memref<30x32xf32, #tpu.memory_space<vmem>>, vector<1x32xf32>,
    %297 = vector.extract_strided_slice %293 {offsets = [1, 0], sizes = [1, 32], strides = [1, 1]} : vector<2x32xf32> to vector<1x32xf32>
    %298 = arith.index_cast %49 : i32 to index
    %c0_146 = arith.constant 0 : index
    %299 = vector.load %arg22[%298, %c0_146] : memref<30x32xf32, #tpu.memory_space<vmem>>, vector<1x32xf32>
    tpu.vector_store %arg22[%298, %c0_146], %297 {strides = array<i32>} : memref<30x32xf32, #tpu.memory_space<vmem>>, vector<1x32xf32>,
    %300 = arith.index_cast %53 : i32 to index
    %c0_147 = arith.constant 0 : index
    %301 = vector.load %arg22[%300, %c0_147] : memref<30x32xf32, #tpu.memory_space<vmem>>, vector<1x32xf32>
    %302 = arith.index_cast %54 : i32 to index
    %c0_148 = arith.constant 0 : index
    %303 = vector.load %arg22[%302, %c0_148] : memref<30x32xf32, #tpu.memory_space<vmem>>, vector<1x32xf32>
    %304 = tpu.concatenate %301, %303 in 1 : vector<1x32xf32>, vector<1x32xf32> -> vector<1x64xf32>
    %305 = arith.index_cast %56 : i32 to index
    %c0_149 = arith.constant 0 : index
    %306 = vector.load %arg22[%305, %c0_149] : memref<30x32xf32, #tpu.memory_space<vmem>>, vector<1x32xf32>
    %307 = arith.index_cast %57 : i32 to index
    %c0_150 = arith.constant 0 : index
    %308 = vector.load %arg22[%307, %c0_150] : memref<30x32xf32, #tpu.memory_space<vmem>>, vector<1x32xf32>
    %309 = tpu.concatenate %306, %308 in 1 : vector<1x32xf32>, vector<1x32xf32> -> vector<1x64xf32>
    %310 = tpu.concatenate %304, %309 in 0 : vector<1x64xf32>, vector<1x64xf32> -> vector<2x64xf32>
    %cst_151 = arith.constant dense<0.000000e+00> : vector<2x32xf32>
    %311 = tpu.matmul %310, %100, %cst_151 {dimension_numbers = #tpu.dot_dimension_numbers<[1], [0], [0], [1], [0, 0, 1, 1], [], []>} : vector<2x64xf32>, vector<64x32xf32>, vector<2x32xf32> -> vector<2x32xf32>
    %312 = vector.extract_strided_slice %107 {offsets = [12, 0], sizes = [2, 32], strides = [1, 1]} : vector<14x32xf32> to vector<2x32xf32>
    %313 = arith.addf %311, %312 : vector<2x32xf32>
    %314 = math.tanh %313 : vector<2x32xf32>
    %315 = vector.extract_strided_slice %314 {offsets = [0, 0], sizes = [1, 32], strides = [1, 1]} : vector<2x32xf32> to vector<1x32xf32>
    %316 = arith.index_cast %52 : i32 to index
    %c0_152 = arith.constant 0 : index
    %317 = vector.load %arg22[%316, %c0_152] : memref<30x32xf32, #tpu.memory_space<vmem>>, vector<1x32xf32>
    tpu.vector_store %arg22[%316, %c0_152], %315 {strides = array<i32>} : memref<30x32xf32, #tpu.memory_space<vmem>>, vector<1x32xf32>,
    %318 = vector.extract_strided_slice %314 {offsets = [1, 0], sizes = [1, 32], strides = [1, 1]} : vector<2x32xf32> to vector<1x32xf32>
    %319 = arith.index_cast %55 : i32 to index
    %c0_153 = arith.constant 0 : index
    %320 = vector.load %arg22[%319, %c0_153] : memref<30x32xf32, #tpu.memory_space<vmem>>, vector<1x32xf32>
    tpu.vector_store %arg22[%319, %c0_153], %318 {strides = array<i32>} : memref<30x32xf32, #tpu.memory_space<vmem>>, vector<1x32xf32>,
    %c0_154 = arith.constant 0 : index
    %c0_155 = arith.constant 0 : index
    %321 = vector.load %arg22[%c0_154, %c0_155] : memref<30x32xf32, #tpu.memory_space<vmem>>, vector<1x32xf32>
    %c15_156 = arith.constant 15 : index
    %c0_157 = arith.constant 0 : index
    %322 = vector.load %arg22[%c15_156, %c0_157] : memref<30x32xf32, #tpu.memory_space<vmem>>, vector<1x32xf32>
    %323 = tpu.concatenate %321, %322 in 0 : vector<1x32xf32>, vector<1x32xf32> -> vector<2x32xf32>
    %c0_158 = arith.constant 0 : index
    %c0_159 = arith.constant 0 : index
    %324 = vector.load %arg13[%c0_158, %c0_159] : memref<32x32xf32, #tpu.memory_space<vmem>>, vector<32x32xf32>
    %cst_160 = arith.constant dense<0.000000e+00> : vector<2x32xf32>
    %325 = tpu.matmul %323, %324, %cst_160 {dimension_numbers = #tpu.dot_dimension_numbers<[1], [0], [0], [1], [0, 0, 1, 1], [], []>} : vector<2x32xf32>, vector<32x32xf32>, vector<2x32xf32> -> vector<2x32xf32>
    %326 = arith.addf %325, %119 : vector<2x32xf32>
    %327 = math.tanh %326 : vector<2x32xf32>
    %328 = vector.extract_strided_slice %327 {offsets = [0, 0], sizes = [1, 32], strides = [1, 1]} : vector<2x32xf32> to vector<1x32xf32>
    %c0_161 = arith.constant 0 : index
    %c0_162 = arith.constant 0 : index
    %329 = vector.load %arg23[%c0_161, %c0_162] : memref<30x32xf32, #tpu.memory_space<vmem>>, vector<1x32xf32>
    tpu.vector_store %arg23[%c0_161, %c0_162], %328 {strides = array<i32>} : memref<30x32xf32, #tpu.memory_space<vmem>>, vector<1x32xf32>,
    %330 = vector.extract_strided_slice %327 {offsets = [1, 0], sizes = [1, 32], strides = [1, 1]} : vector<2x32xf32> to vector<1x32xf32>
    %c15_163 = arith.constant 15 : index
    %c0_164 = arith.constant 0 : index
    %331 = vector.load %arg23[%c15_163, %c0_164] : memref<30x32xf32, #tpu.memory_space<vmem>>, vector<1x32xf32>
    tpu.vector_store %arg23[%c15_163, %c0_164], %330 {strides = array<i32>} : memref<30x32xf32, #tpu.memory_space<vmem>>, vector<1x32xf32>,
    %332 = arith.index_cast %58 : i32 to index
    %c0_165 = arith.constant 0 : index
    %333 = vector.load %arg23[%332, %c0_165] : memref<30x32xf32, #tpu.memory_space<vmem>>, vector<1x32xf32>
    %334 = arith.index_cast %58 : i32 to index
    %c0_166 = arith.constant 0 : index
    %335 = vector.load %arg22[%334, %c0_166] : memref<30x32xf32, #tpu.memory_space<vmem>>, vector<1x32xf32>
    %336 = tpu.concatenate %333, %335 in 1 : vector<1x32xf32>, vector<1x32xf32> -> vector<1x64xf32>
    %337 = arith.index_cast %61 : i32 to index
    %c0_167 = arith.constant 0 : index
    %338 = vector.load %arg23[%337, %c0_167] : memref<30x32xf32, #tpu.memory_space<vmem>>, vector<1x32xf32>
    %339 = arith.index_cast %61 : i32 to index
    %c0_168 = arith.constant 0 : index
    %340 = vector.load %arg22[%339, %c0_168] : memref<30x32xf32, #tpu.memory_space<vmem>>, vector<1x32xf32>
    %341 = tpu.concatenate %338, %340 in 1 : vector<1x32xf32>, vector<1x32xf32> -> vector<1x64xf32>
    %342 = tpu.concatenate %336, %341 in 0 : vector<1x64xf32>, vector<1x64xf32> -> vector<2x64xf32>
    %cst_169 = arith.constant dense<0.000000e+00> : vector<2x64xf32>
    %343 = tpu.matmul %342, %101, %cst_169 {dimension_numbers = #tpu.dot_dimension_numbers<[1], [0], [0], [1], [0, 0, 1, 1], [], []>} : vector<2x64xf32>, vector<64x64xf32>, vector<2x64xf32> -> vector<2x64xf32>
    %344 = vector.extract_strided_slice %113 {offsets = [0, 0], sizes = [2, 64], strides = [1, 1]} : vector<14x64xf32> to vector<2x64xf32>
    %345 = arith.addf %343, %344 : vector<2x64xf32>
    %346 = math.tanh %345 : vector<2x64xf32>
    %347 = vector.extract_strided_slice %346 {offsets = [0, 0], sizes = [1, 32], strides = [1, 1]} : vector<2x64xf32> to vector<1x32xf32>
    %348 = arith.index_cast %59 : i32 to index
    %c0_170 = arith.constant 0 : index
    %349 = vector.load %arg23[%348, %c0_170] : memref<30x32xf32, #tpu.memory_space<vmem>>, vector<1x32xf32>
    tpu.vector_store %arg23[%348, %c0_170], %347 {strides = array<i32>} : memref<30x32xf32, #tpu.memory_space<vmem>>, vector<1x32xf32>,
    %350 = vector.extract_strided_slice %346 {offsets = [0, 32], sizes = [1, 32], strides = [1, 1]} : vector<2x64xf32> to vector<1x32xf32>
    %351 = arith.index_cast %60 : i32 to index
    %c0_171 = arith.constant 0 : index
    %352 = vector.load %arg23[%351, %c0_171] : memref<30x32xf32, #tpu.memory_space<vmem>>, vector<1x32xf32>
    tpu.vector_store %arg23[%351, %c0_171], %350 {strides = array<i32>} : memref<30x32xf32, #tpu.memory_space<vmem>>, vector<1x32xf32>,
    %353 = vector.extract_strided_slice %346 {offsets = [1, 0], sizes = [1, 32], strides = [1, 1]} : vector<2x64xf32> to vector<1x32xf32>
    %354 = arith.index_cast %62 : i32 to index
    %c0_172 = arith.constant 0 : index
    %355 = vector.load %arg23[%354, %c0_172] : memref<30x32xf32, #tpu.memory_space<vmem>>, vector<1x32xf32>
    tpu.vector_store %arg23[%354, %c0_172], %353 {strides = array<i32>} : memref<30x32xf32, #tpu.memory_space<vmem>>, vector<1x32xf32>,
    %356 = vector.extract_strided_slice %346 {offsets = [1, 32], sizes = [1, 32], strides = [1, 1]} : vector<2x64xf32> to vector<1x32xf32>
    %357 = arith.index_cast %63 : i32 to index
    %c0_173 = arith.constant 0 : index
    %358 = vector.load %arg23[%357, %c0_173] : memref<30x32xf32, #tpu.memory_space<vmem>>, vector<1x32xf32>
    tpu.vector_store %arg23[%357, %c0_173], %356 {strides = array<i32>} : memref<30x32xf32, #tpu.memory_space<vmem>>, vector<1x32xf32>,
    %359 = arith.index_cast %64 : i32 to index
    %c0_174 = arith.constant 0 : index
    %360 = vector.load %arg23[%359, %c0_174] : memref<30x32xf32, #tpu.memory_space<vmem>>, vector<1x32xf32>
    %361 = arith.index_cast %64 : i32 to index
    %c0_175 = arith.constant 0 : index
    %362 = vector.load %arg22[%361, %c0_175] : memref<30x32xf32, #tpu.memory_space<vmem>>, vector<1x32xf32>
    %363 = tpu.concatenate %360, %362 in 1 : vector<1x32xf32>, vector<1x32xf32> -> vector<1x64xf32>
    %364 = arith.index_cast %67 : i32 to index
    %c0_176 = arith.constant 0 : index
    %365 = vector.load %arg23[%364, %c0_176] : memref<30x32xf32, #tpu.memory_space<vmem>>, vector<1x32xf32>
    %366 = arith.index_cast %67 : i32 to index
    %c0_177 = arith.constant 0 : index
    %367 = vector.load %arg22[%366, %c0_177] : memref<30x32xf32, #tpu.memory_space<vmem>>, vector<1x32xf32>
    %368 = tpu.concatenate %365, %367 in 1 : vector<1x32xf32>, vector<1x32xf32> -> vector<1x64xf32>
    %369 = tpu.concatenate %363, %368 in 0 : vector<1x64xf32>, vector<1x64xf32> -> vector<2x64xf32>
    %cst_178 = arith.constant dense<0.000000e+00> : vector<2x64xf32>
    %370 = tpu.matmul %369, %101, %cst_178 {dimension_numbers = #tpu.dot_dimension_numbers<[1], [0], [0], [1], [0, 0, 1, 1], [], []>} : vector<2x64xf32>, vector<64x64xf32>, vector<2x64xf32> -> vector<2x64xf32>
    %371 = vector.extract_strided_slice %113 {offsets = [2, 0], sizes = [2, 64], strides = [1, 1]} : vector<14x64xf32> to vector<2x64xf32>
    %372 = arith.addf %370, %371 : vector<2x64xf32>
    %373 = math.tanh %372 : vector<2x64xf32>
    %374 = vector.extract_strided_slice %373 {offsets = [0, 0], sizes = [1, 32], strides = [1, 1]} : vector<2x64xf32> to vector<1x32xf32>
    %375 = arith.index_cast %65 : i32 to index
    %c0_179 = arith.constant 0 : index
    %376 = vector.load %arg23[%375, %c0_179] : memref<30x32xf32, #tpu.memory_space<vmem>>, vector<1x32xf32>
    tpu.vector_store %arg23[%375, %c0_179], %374 {strides = array<i32>} : memref<30x32xf32, #tpu.memory_space<vmem>>, vector<1x32xf32>,
    %377 = vector.extract_strided_slice %373 {offsets = [0, 32], sizes = [1, 32], strides = [1, 1]} : vector<2x64xf32> to vector<1x32xf32>
    %378 = arith.index_cast %66 : i32 to index
    %c0_180 = arith.constant 0 : index
    %379 = vector.load %arg23[%378, %c0_180] : memref<30x32xf32, #tpu.memory_space<vmem>>, vector<1x32xf32>
    tpu.vector_store %arg23[%378, %c0_180], %377 {strides = array<i32>} : memref<30x32xf32, #tpu.memory_space<vmem>>, vector<1x32xf32>,
    %380 = vector.extract_strided_slice %373 {offsets = [1, 0], sizes = [1, 32], strides = [1, 1]} : vector<2x64xf32> to vector<1x32xf32>
    %381 = arith.index_cast %68 : i32 to index
    %c0_181 = arith.constant 0 : index
    %382 = vector.load %arg23[%381, %c0_181] : memref<30x32xf32, #tpu.memory_space<vmem>>, vector<1x32xf32>
    tpu.vector_store %arg23[%381, %c0_181], %380 {strides = array<i32>} : memref<30x32xf32, #tpu.memory_space<vmem>>, vector<1x32xf32>,
    %383 = vector.extract_strided_slice %373 {offsets = [1, 32], sizes = [1, 32], strides = [1, 1]} : vector<2x64xf32> to vector<1x32xf32>
    %384 = arith.index_cast %69 : i32 to index
    %c0_182 = arith.constant 0 : index
    %385 = vector.load %arg23[%384, %c0_182] : memref<30x32xf32, #tpu.memory_space<vmem>>, vector<1x32xf32>
    tpu.vector_store %arg23[%384, %c0_182], %383 {strides = array<i32>} : memref<30x32xf32, #tpu.memory_space<vmem>>, vector<1x32xf32>,
    %386 = arith.index_cast %70 : i32 to index
    %c0_183 = arith.constant 0 : index
    %387 = vector.load %arg23[%386, %c0_183] : memref<30x32xf32, #tpu.memory_space<vmem>>, vector<1x32xf32>
    %388 = arith.index_cast %70 : i32 to index
    %c0_184 = arith.constant 0 : index
    %389 = vector.load %arg22[%388, %c0_184] : memref<30x32xf32, #tpu.memory_space<vmem>>, vector<1x32xf32>
    %390 = tpu.concatenate %387, %389 in 1 : vector<1x32xf32>, vector<1x32xf32> -> vector<1x64xf32>
    %391 = arith.index_cast %73 : i32 to index
    %c0_185 = arith.constant 0 : index
    %392 = vector.load %arg23[%391, %c0_185] : memref<30x32xf32, #tpu.memory_space<vmem>>, vector<1x32xf32>
    %393 = arith.index_cast %73 : i32 to index
    %c0_186 = arith.constant 0 : index
    %394 = vector.load %arg22[%393, %c0_186] : memref<30x32xf32, #tpu.memory_space<vmem>>, vector<1x32xf32>
    %395 = tpu.concatenate %392, %394 in 1 : vector<1x32xf32>, vector<1x32xf32> -> vector<1x64xf32>
    %396 = tpu.concatenate %390, %395 in 0 : vector<1x64xf32>, vector<1x64xf32> -> vector<2x64xf32>
    %cst_187 = arith.constant dense<0.000000e+00> : vector<2x64xf32>
    %397 = tpu.matmul %396, %101, %cst_187 {dimension_numbers = #tpu.dot_dimension_numbers<[1], [0], [0], [1], [0, 0, 1, 1], [], []>} : vector<2x64xf32>, vector<64x64xf32>, vector<2x64xf32> -> vector<2x64xf32>
    %398 = vector.extract_strided_slice %113 {offsets = [4, 0], sizes = [2, 64], strides = [1, 1]} : vector<14x64xf32> to vector<2x64xf32>
    %399 = arith.addf %397, %398 : vector<2x64xf32>
    %400 = math.tanh %399 : vector<2x64xf32>
    %401 = vector.extract_strided_slice %400 {offsets = [0, 0], sizes = [1, 32], strides = [1, 1]} : vector<2x64xf32> to vector<1x32xf32>
    %402 = arith.index_cast %71 : i32 to index
    %c0_188 = arith.constant 0 : index
    %403 = vector.load %arg23[%402, %c0_188] : memref<30x32xf32, #tpu.memory_space<vmem>>, vector<1x32xf32>
    tpu.vector_store %arg23[%402, %c0_188], %401 {strides = array<i32>} : memref<30x32xf32, #tpu.memory_space<vmem>>, vector<1x32xf32>,
    %404 = vector.extract_strided_slice %400 {offsets = [0, 32], sizes = [1, 32], strides = [1, 1]} : vector<2x64xf32> to vector<1x32xf32>
    %405 = arith.index_cast %72 : i32 to index
    %c0_189 = arith.constant 0 : index
    %406 = vector.load %arg23[%405, %c0_189] : memref<30x32xf32, #tpu.memory_space<vmem>>, vector<1x32xf32>
    tpu.vector_store %arg23[%405, %c0_189], %404 {strides = array<i32>} : memref<30x32xf32, #tpu.memory_space<vmem>>, vector<1x32xf32>,
    %407 = vector.extract_strided_slice %400 {offsets = [1, 0], sizes = [1, 32], strides = [1, 1]} : vector<2x64xf32> to vector<1x32xf32>
    %408 = arith.index_cast %74 : i32 to index
    %c0_190 = arith.constant 0 : index
    %409 = vector.load %arg23[%408, %c0_190] : memref<30x32xf32, #tpu.memory_space<vmem>>, vector<1x32xf32>
    tpu.vector_store %arg23[%408, %c0_190], %407 {strides = array<i32>} : memref<30x32xf32, #tpu.memory_space<vmem>>, vector<1x32xf32>,
    %410 = vector.extract_strided_slice %400 {offsets = [1, 32], sizes = [1, 32], strides = [1, 1]} : vector<2x64xf32> to vector<1x32xf32>
    %411 = arith.index_cast %75 : i32 to index
    %c0_191 = arith.constant 0 : index
    %412 = vector.load %arg23[%411, %c0_191] : memref<30x32xf32, #tpu.memory_space<vmem>>, vector<1x32xf32>
    tpu.vector_store %arg23[%411, %c0_191], %410 {strides = array<i32>} : memref<30x32xf32, #tpu.memory_space<vmem>>, vector<1x32xf32>,
    %413 = arith.index_cast %76 : i32 to index
    %c0_192 = arith.constant 0 : index
    %414 = vector.load %arg23[%413, %c0_192] : memref<30x32xf32, #tpu.memory_space<vmem>>, vector<1x32xf32>
    %415 = arith.index_cast %76 : i32 to index
    %c0_193 = arith.constant 0 : index
    %416 = vector.load %arg22[%415, %c0_193] : memref<30x32xf32, #tpu.memory_space<vmem>>, vector<1x32xf32>
    %417 = tpu.concatenate %414, %416 in 1 : vector<1x32xf32>, vector<1x32xf32> -> vector<1x64xf32>
    %418 = arith.index_cast %79 : i32 to index
    %c0_194 = arith.constant 0 : index
    %419 = vector.load %arg23[%418, %c0_194] : memref<30x32xf32, #tpu.memory_space<vmem>>, vector<1x32xf32>
    %420 = arith.index_cast %79 : i32 to index
    %c0_195 = arith.constant 0 : index
    %421 = vector.load %arg22[%420, %c0_195] : memref<30x32xf32, #tpu.memory_space<vmem>>, vector<1x32xf32>
    %422 = tpu.concatenate %419, %421 in 1 : vector<1x32xf32>, vector<1x32xf32> -> vector<1x64xf32>
    %423 = tpu.concatenate %417, %422 in 0 : vector<1x64xf32>, vector<1x64xf32> -> vector<2x64xf32>
    %cst_196 = arith.constant dense<0.000000e+00> : vector<2x64xf32>
    %424 = tpu.matmul %423, %101, %cst_196 {dimension_numbers = #tpu.dot_dimension_numbers<[1], [0], [0], [1], [0, 0, 1, 1], [], []>} : vector<2x64xf32>, vector<64x64xf32>, vector<2x64xf32> -> vector<2x64xf32>
    %425 = vector.extract_strided_slice %113 {offsets = [6, 0], sizes = [2, 64], strides = [1, 1]} : vector<14x64xf32> to vector<2x64xf32>
    %426 = arith.addf %424, %425 : vector<2x64xf32>
    %427 = math.tanh %426 : vector<2x64xf32>
    %428 = vector.extract_strided_slice %427 {offsets = [0, 0], sizes = [1, 32], strides = [1, 1]} : vector<2x64xf32> to vector<1x32xf32>
    %429 = arith.index_cast %77 : i32 to index
    %c0_197 = arith.constant 0 : index
    %430 = vector.load %arg23[%429, %c0_197] : memref<30x32xf32, #tpu.memory_space<vmem>>, vector<1x32xf32>
    tpu.vector_store %arg23[%429, %c0_197], %428 {strides = array<i32>} : memref<30x32xf32, #tpu.memory_space<vmem>>, vector<1x32xf32>,
    %431 = vector.extract_strided_slice %427 {offsets = [0, 32], sizes = [1, 32], strides = [1, 1]} : vector<2x64xf32> to vector<1x32xf32>
    %432 = arith.index_cast %78 : i32 to index
    %c0_198 = arith.constant 0 : index
    %433 = vector.load %arg23[%432, %c0_198] : memref<30x32xf32, #tpu.memory_space<vmem>>, vector<1x32xf32>
    tpu.vector_store %arg23[%432, %c0_198], %431 {strides = array<i32>} : memref<30x32xf32, #tpu.memory_space<vmem>>, vector<1x32xf32>,
    %434 = vector.extract_strided_slice %427 {offsets = [1, 0], sizes = [1, 32], strides = [1, 1]} : vector<2x64xf32> to vector<1x32xf32>
    %435 = arith.index_cast %80 : i32 to index
    %c0_199 = arith.constant 0 : index
    %436 = vector.load %arg23[%435, %c0_199] : memref<30x32xf32, #tpu.memory_space<vmem>>, vector<1x32xf32>
    tpu.vector_store %arg23[%435, %c0_199], %434 {strides = array<i32>} : memref<30x32xf32, #tpu.memory_space<vmem>>, vector<1x32xf32>,
    %437 = vector.extract_strided_slice %427 {offsets = [1, 32], sizes = [1, 32], strides = [1, 1]} : vector<2x64xf32> to vector<1x32xf32>
    %438 = arith.index_cast %81 : i32 to index
    %c0_200 = arith.constant 0 : index
    %439 = vector.load %arg23[%438, %c0_200] : memref<30x32xf32, #tpu.memory_space<vmem>>, vector<1x32xf32>
    tpu.vector_store %arg23[%438, %c0_200], %437 {strides = array<i32>} : memref<30x32xf32, #tpu.memory_space<vmem>>, vector<1x32xf32>,
    %440 = arith.index_cast %82 : i32 to index
    %c0_201 = arith.constant 0 : index
    %441 = vector.load %arg23[%440, %c0_201] : memref<30x32xf32, #tpu.memory_space<vmem>>, vector<1x32xf32>
    %442 = arith.index_cast %82 : i32 to index
    %c0_202 = arith.constant 0 : index
    %443 = vector.load %arg22[%442, %c0_202] : memref<30x32xf32, #tpu.memory_space<vmem>>, vector<1x32xf32>
    %444 = tpu.concatenate %441, %443 in 1 : vector<1x32xf32>, vector<1x32xf32> -> vector<1x64xf32>
    %445 = arith.index_cast %85 : i32 to index
    %c0_203 = arith.constant 0 : index
    %446 = vector.load %arg23[%445, %c0_203] : memref<30x32xf32, #tpu.memory_space<vmem>>, vector<1x32xf32>
    %447 = arith.index_cast %85 : i32 to index
    %c0_204 = arith.constant 0 : index
    %448 = vector.load %arg22[%447, %c0_204] : memref<30x32xf32, #tpu.memory_space<vmem>>, vector<1x32xf32>
    %449 = tpu.concatenate %446, %448 in 1 : vector<1x32xf32>, vector<1x32xf32> -> vector<1x64xf32>
    %450 = tpu.concatenate %444, %449 in 0 : vector<1x64xf32>, vector<1x64xf32> -> vector<2x64xf32>
    %cst_205 = arith.constant dense<0.000000e+00> : vector<2x64xf32>
    %451 = tpu.matmul %450, %101, %cst_205 {dimension_numbers = #tpu.dot_dimension_numbers<[1], [0], [0], [1], [0, 0, 1, 1], [], []>} : vector<2x64xf32>, vector<64x64xf32>, vector<2x64xf32> -> vector<2x64xf32>
    %452 = vector.extract_strided_slice %113 {offsets = [8, 0], sizes = [2, 64], strides = [1, 1]} : vector<14x64xf32> to vector<2x64xf32>
    %453 = arith.addf %451, %452 : vector<2x64xf32>
    %454 = math.tanh %453 : vector<2x64xf32>
    %455 = vector.extract_strided_slice %454 {offsets = [0, 0], sizes = [1, 32], strides = [1, 1]} : vector<2x64xf32> to vector<1x32xf32>
    %456 = arith.index_cast %83 : i32 to index
    %c0_206 = arith.constant 0 : index
    %457 = vector.load %arg23[%456, %c0_206] : memref<30x32xf32, #tpu.memory_space<vmem>>, vector<1x32xf32>
    tpu.vector_store %arg23[%456, %c0_206], %455 {strides = array<i32>} : memref<30x32xf32, #tpu.memory_space<vmem>>, vector<1x32xf32>,
    %458 = vector.extract_strided_slice %454 {offsets = [0, 32], sizes = [1, 32], strides = [1, 1]} : vector<2x64xf32> to vector<1x32xf32>
    %459 = arith.index_cast %84 : i32 to index
    %c0_207 = arith.constant 0 : index
    %460 = vector.load %arg23[%459, %c0_207] : memref<30x32xf32, #tpu.memory_space<vmem>>, vector<1x32xf32>
    tpu.vector_store %arg23[%459, %c0_207], %458 {strides = array<i32>} : memref<30x32xf32, #tpu.memory_space<vmem>>, vector<1x32xf32>,
    %461 = vector.extract_strided_slice %454 {offsets = [1, 0], sizes = [1, 32], strides = [1, 1]} : vector<2x64xf32> to vector<1x32xf32>
    %462 = arith.index_cast %86 : i32 to index
    %c0_208 = arith.constant 0 : index
    %463 = vector.load %arg23[%462, %c0_208] : memref<30x32xf32, #tpu.memory_space<vmem>>, vector<1x32xf32>
    tpu.vector_store %arg23[%462, %c0_208], %461 {strides = array<i32>} : memref<30x32xf32, #tpu.memory_space<vmem>>, vector<1x32xf32>,
    %464 = vector.extract_strided_slice %454 {offsets = [1, 32], sizes = [1, 32], strides = [1, 1]} : vector<2x64xf32> to vector<1x32xf32>
    %465 = arith.index_cast %87 : i32 to index
    %c0_209 = arith.constant 0 : index
    %466 = vector.load %arg23[%465, %c0_209] : memref<30x32xf32, #tpu.memory_space<vmem>>, vector<1x32xf32>
    tpu.vector_store %arg23[%465, %c0_209], %464 {strides = array<i32>} : memref<30x32xf32, #tpu.memory_space<vmem>>, vector<1x32xf32>,
    %467 = arith.index_cast %88 : i32 to index
    %c0_210 = arith.constant 0 : index
    %468 = vector.load %arg23[%467, %c0_210] : memref<30x32xf32, #tpu.memory_space<vmem>>, vector<1x32xf32>
    %469 = arith.index_cast %88 : i32 to index
    %c0_211 = arith.constant 0 : index
    %470 = vector.load %arg22[%469, %c0_211] : memref<30x32xf32, #tpu.memory_space<vmem>>, vector<1x32xf32>
    %471 = tpu.concatenate %468, %470 in 1 : vector<1x32xf32>, vector<1x32xf32> -> vector<1x64xf32>
    %472 = arith.index_cast %91 : i32 to index
    %c0_212 = arith.constant 0 : index
    %473 = vector.load %arg23[%472, %c0_212] : memref<30x32xf32, #tpu.memory_space<vmem>>, vector<1x32xf32>
    %474 = arith.index_cast %91 : i32 to index
    %c0_213 = arith.constant 0 : index
    %475 = vector.load %arg22[%474, %c0_213] : memref<30x32xf32, #tpu.memory_space<vmem>>, vector<1x32xf32>
    %476 = tpu.concatenate %473, %475 in 1 : vector<1x32xf32>, vector<1x32xf32> -> vector<1x64xf32>
    %477 = tpu.concatenate %471, %476 in 0 : vector<1x64xf32>, vector<1x64xf32> -> vector<2x64xf32>
    %cst_214 = arith.constant dense<0.000000e+00> : vector<2x64xf32>
    %478 = tpu.matmul %477, %101, %cst_214 {dimension_numbers = #tpu.dot_dimension_numbers<[1], [0], [0], [1], [0, 0, 1, 1], [], []>} : vector<2x64xf32>, vector<64x64xf32>, vector<2x64xf32> -> vector<2x64xf32>
    %479 = vector.extract_strided_slice %113 {offsets = [10, 0], sizes = [2, 64], strides = [1, 1]} : vector<14x64xf32> to vector<2x64xf32>
    %480 = arith.addf %478, %479 : vector<2x64xf32>
    %481 = math.tanh %480 : vector<2x64xf32>
    %482 = vector.extract_strided_slice %481 {offsets = [0, 0], sizes = [1, 32], strides = [1, 1]} : vector<2x64xf32> to vector<1x32xf32>
    %483 = arith.index_cast %89 : i32 to index
    %c0_215 = arith.constant 0 : index
    %484 = vector.load %arg23[%483, %c0_215] : memref<30x32xf32, #tpu.memory_space<vmem>>, vector<1x32xf32>
    tpu.vector_store %arg23[%483, %c0_215], %482 {strides = array<i32>} : memref<30x32xf32, #tpu.memory_space<vmem>>, vector<1x32xf32>,
    %485 = vector.extract_strided_slice %481 {offsets = [0, 32], sizes = [1, 32], strides = [1, 1]} : vector<2x64xf32> to vector<1x32xf32>
    %486 = arith.index_cast %90 : i32 to index
    %c0_216 = arith.constant 0 : index
    %487 = vector.load %arg23[%486, %c0_216] : memref<30x32xf32, #tpu.memory_space<vmem>>, vector<1x32xf32>
    tpu.vector_store %arg23[%486, %c0_216], %485 {strides = array<i32>} : memref<30x32xf32, #tpu.memory_space<vmem>>, vector<1x32xf32>,
    %488 = vector.extract_strided_slice %481 {offsets = [1, 0], sizes = [1, 32], strides = [1, 1]} : vector<2x64xf32> to vector<1x32xf32>
    %489 = arith.index_cast %92 : i32 to index
    %c0_217 = arith.constant 0 : index
    %490 = vector.load %arg23[%489, %c0_217] : memref<30x32xf32, #tpu.memory_space<vmem>>, vector<1x32xf32>
    tpu.vector_store %arg23[%489, %c0_217], %488 {strides = array<i32>} : memref<30x32xf32, #tpu.memory_space<vmem>>, vector<1x32xf32>,
    %491 = vector.extract_strided_slice %481 {offsets = [1, 32], sizes = [1, 32], strides = [1, 1]} : vector<2x64xf32> to vector<1x32xf32>
    %492 = arith.index_cast %93 : i32 to index
    %c0_218 = arith.constant 0 : index
    %493 = vector.load %arg23[%492, %c0_218] : memref<30x32xf32, #tpu.memory_space<vmem>>, vector<1x32xf32>
    tpu.vector_store %arg23[%492, %c0_218], %491 {strides = array<i32>} : memref<30x32xf32, #tpu.memory_space<vmem>>, vector<1x32xf32>,
    %494 = arith.index_cast %94 : i32 to index
    %c0_219 = arith.constant 0 : index
    %495 = vector.load %arg23[%494, %c0_219] : memref<30x32xf32, #tpu.memory_space<vmem>>, vector<1x32xf32>
    %496 = arith.index_cast %94 : i32 to index
    %c0_220 = arith.constant 0 : index
    %497 = vector.load %arg22[%496, %c0_220] : memref<30x32xf32, #tpu.memory_space<vmem>>, vector<1x32xf32>
    %498 = tpu.concatenate %495, %497 in 1 : vector<1x32xf32>, vector<1x32xf32> -> vector<1x64xf32>
    %499 = arith.index_cast %97 : i32 to index
    %c0_221 = arith.constant 0 : index
    %500 = vector.load %arg23[%499, %c0_221] : memref<30x32xf32, #tpu.memory_space<vmem>>, vector<1x32xf32>
    %501 = arith.index_cast %97 : i32 to index
    %c0_222 = arith.constant 0 : index
    %502 = vector.load %arg22[%501, %c0_222] : memref<30x32xf32, #tpu.memory_space<vmem>>, vector<1x32xf32>
    %503 = tpu.concatenate %500, %502 in 1 : vector<1x32xf32>, vector<1x32xf32> -> vector<1x64xf32>
    %504 = tpu.concatenate %498, %503 in 0 : vector<1x64xf32>, vector<1x64xf32> -> vector<2x64xf32>
    %cst_223 = arith.constant dense<0.000000e+00> : vector<2x64xf32>
    %505 = tpu.matmul %504, %101, %cst_223 {dimension_numbers = #tpu.dot_dimension_numbers<[1], [0], [0], [1], [0, 0, 1, 1], [], []>} : vector<2x64xf32>, vector<64x64xf32>, vector<2x64xf32> -> vector<2x64xf32>
    %506 = vector.extract_strided_slice %113 {offsets = [12, 0], sizes = [2, 64], strides = [1, 1]} : vector<14x64xf32> to vector<2x64xf32>
    %507 = arith.addf %505, %506 : vector<2x64xf32>
    %508 = math.tanh %507 : vector<2x64xf32>
    %509 = vector.extract_strided_slice %508 {offsets = [0, 0], sizes = [1, 32], strides = [1, 1]} : vector<2x64xf32> to vector<1x32xf32>
    %510 = arith.index_cast %95 : i32 to index
    %c0_224 = arith.constant 0 : index
    %511 = vector.load %arg23[%510, %c0_224] : memref<30x32xf32, #tpu.memory_space<vmem>>, vector<1x32xf32>
    tpu.vector_store %arg23[%510, %c0_224], %509 {strides = array<i32>} : memref<30x32xf32, #tpu.memory_space<vmem>>, vector<1x32xf32>,
    %512 = vector.extract_strided_slice %508 {offsets = [0, 32], sizes = [1, 32], strides = [1, 1]} : vector<2x64xf32> to vector<1x32xf32>
    %513 = arith.index_cast %96 : i32 to index
    %c0_225 = arith.constant 0 : index
    %514 = vector.load %arg23[%513, %c0_225] : memref<30x32xf32, #tpu.memory_space<vmem>>, vector<1x32xf32>
    tpu.vector_store %arg23[%513, %c0_225], %512 {strides = array<i32>} : memref<30x32xf32, #tpu.memory_space<vmem>>, vector<1x32xf32>,
    %515 = vector.extract_strided_slice %508 {offsets = [1, 0], sizes = [1, 32], strides = [1, 1]} : vector<2x64xf32> to vector<1x32xf32>
    %516 = arith.index_cast %98 : i32 to index
    %c0_226 = arith.constant 0 : index
    %517 = vector.load %arg23[%516, %c0_226] : memref<30x32xf32, #tpu.memory_space<vmem>>, vector<1x32xf32>
    tpu.vector_store %arg23[%516, %c0_226], %515 {strides = array<i32>} : memref<30x32xf32, #tpu.memory_space<vmem>>, vector<1x32xf32>,
    %518 = vector.extract_strided_slice %508 {offsets = [1, 32], sizes = [1, 32], strides = [1, 1]} : vector<2x64xf32> to vector<1x32xf32>
    %519 = arith.index_cast %99 : i32 to index
    %c0_227 = arith.constant 0 : index
    %520 = vector.load %arg23[%519, %c0_227] : memref<30x32xf32, #tpu.memory_space<vmem>>, vector<1x32xf32>
    tpu.vector_store %arg23[%519, %c0_227], %518 {strides = array<i32>} : memref<30x32xf32, #tpu.memory_space<vmem>>, vector<1x32xf32>,
    %c0_228 = arith.constant 0 : index
    %c0_229 = arith.constant 0 : index
    %521 = vector.load %arg23[%c0_228, %c0_229] : memref<30x32xf32, #tpu.memory_space<vmem>>, vector<30x32xf32>
    %c0_230 = arith.constant 0 : index
    %c0_231 = arith.constant 0 : index
    %522 = vector.load %arg22[%c0_230, %c0_231] : memref<30x32xf32, #tpu.memory_space<vmem>>, vector<30x32xf32>
    %523 = tpu.concatenate %521, %522 in 1 : vector<30x32xf32>, vector<30x32xf32> -> vector<30x64xf32>
    %c0_232 = arith.constant 0 : index
    %c0_233 = arith.constant 0 : index
    %524 = vector.load %arg19[%c0_232, %c0_233] : memref<64x4xf32, #tpu.memory_space<vmem>>, vector<64x4xf32>
    %cst_234 = arith.constant dense<0.000000e+00> : vector<30x4xf32>
    %525 = tpu.matmul %523, %524, %cst_234 {dimension_numbers = #tpu.dot_dimension_numbers<[1], [0], [0], [1], [0, 0, 1, 1], [], []>} : vector<30x64xf32>, vector<64x4xf32>, vector<30x4xf32> -> vector<30x4xf32>
    %c0_235 = arith.constant 0 : index
    %c0_236 = arith.constant 0 : index
    %526 = vector.load %arg20[%c0_235, %c0_236] : memref<1x4xf32, #tpu.memory_space<vmem>>, vector<1x4xf32>
    %527 = vector.broadcast %526 : vector<1x4xf32> to vector<30x4xf32>
    %528 = arith.addf %525, %527 : vector<30x4xf32>
    %529 = math.tanh %528 : vector<30x4xf32>
    %c0_237 = arith.constant 0 : index
    %c0_238 = arith.constant 0 : index
    %530 = vector.load %arg21[%c0_237, %c0_238] : memref<30x4xf32, #tpu.memory_space<vmem>>, vector<30x4xf32>
    tpu.vector_store %arg21[%c0_237, %c0_238], %529 {strides = array<i32>} : memref<30x4xf32, #tpu.memory_space<vmem>>, vector<30x4xf32>,
    return
  }
  func.func @transform_0(%arg0: i32, %arg1: memref<42xi32, #tpu.memory_space<smem>>, %arg2: memref<42xi32, #tpu.memory_space<smem>>, %arg3: memref<16xi32, #tpu.memory_space<smem>>) -> (i32, i32) {
    %c0_i32 = arith.constant 0 : i32
    %c0_i32_0 = arith.constant 0 : i32
    %c0_i32_1 = arith.constant 0 : i32
    return %c0_i32, %c0_i32_0 : i32, i32
  }
  func.func @transform_1(%arg0: i32, %arg1: memref<42xi32, #tpu.memory_space<smem>>, %arg2: memref<42xi32, #tpu.memory_space<smem>>, %arg3: memref<16xi32, #tpu.memory_space<smem>>) -> (i32, i32) {
    %c0_i32 = arith.constant 0 : i32
    %c0_i32_0 = arith.constant 0 : i32
    %c0_i32_1 = arith.constant 0 : i32
    return %c0_i32, %c0_i32_0 : i32, i32
  }
  func.func @transform_2(%arg0: i32, %arg1: memref<42xi32, #tpu.memory_space<smem>>, %arg2: memref<42xi32, #tpu.memory_space<smem>>, %arg3: memref<16xi32, #tpu.memory_space<smem>>) -> (i32, i32) {
    %c0_i32 = arith.constant 0 : i32
    %c0_i32_0 = arith.constant 0 : i32
    %c0_i32_1 = arith.constant 0 : i32
    return %c0_i32, %c0_i32_0 : i32, i32
  }
  func.func @transform_3(%arg0: i32, %arg1: memref<42xi32, #tpu.memory_space<smem>>, %arg2: memref<42xi32, #tpu.memory_space<smem>>, %arg3: memref<16xi32, #tpu.memory_space<smem>>) -> (i32, i32) {
    %c0_i32 = arith.constant 0 : i32
    %c0_i32_0 = arith.constant 0 : i32
    %c0_i32_1 = arith.constant 0 : i32
    return %c0_i32, %c0_i32_0 : i32, i32
  }
  func.func @transform_4(%arg0: i32, %arg1: memref<42xi32, #tpu.memory_space<smem>>, %arg2: memref<42xi32, #tpu.memory_space<smem>>, %arg3: memref<16xi32, #tpu.memory_space<smem>>) -> (i32, i32) {
    %c0_i32 = arith.constant 0 : i32
    %c0_i32_0 = arith.constant 0 : i32
    %c0_i32_1 = arith.constant 0 : i32
    return %c0_i32, %c0_i32_0 : i32, i32
  }
  func.func @transform_5(%arg0: i32, %arg1: memref<42xi32, #tpu.memory_space<smem>>, %arg2: memref<42xi32, #tpu.memory_space<smem>>, %arg3: memref<16xi32, #tpu.memory_space<smem>>) -> (i32, i32) {
    %c0_i32 = arith.constant 0 : i32
    %c0_i32_0 = arith.constant 0 : i32
    %c0_i32_1 = arith.constant 0 : i32
    return %c0_i32, %c0_i32_0 : i32, i32
  }
  func.func @transform_6(%arg0: i32, %arg1: memref<42xi32, #tpu.memory_space<smem>>, %arg2: memref<42xi32, #tpu.memory_space<smem>>, %arg3: memref<16xi32, #tpu.memory_space<smem>>) -> (i32, i32) {
    %c0_i32 = arith.constant 0 : i32
    %c0_i32_0 = arith.constant 0 : i32
    %c0_i32_1 = arith.constant 0 : i32
    return %c0_i32, %c0_i32_0 : i32, i32
  }
  func.func @transform_7(%arg0: i32, %arg1: memref<42xi32, #tpu.memory_space<smem>>, %arg2: memref<42xi32, #tpu.memory_space<smem>>, %arg3: memref<16xi32, #tpu.memory_space<smem>>) -> (i32, i32) {
    %c0_i32 = arith.constant 0 : i32
    %c0_i32_0 = arith.constant 0 : i32
    %c0_i32_1 = arith.constant 0 : i32
    return %c0_i32, %c0_i32_0 : i32, i32
  }
  func.func @transform_8(%arg0: i32, %arg1: memref<42xi32, #tpu.memory_space<smem>>, %arg2: memref<42xi32, #tpu.memory_space<smem>>, %arg3: memref<16xi32, #tpu.memory_space<smem>>) -> (i32, i32) {
    %c0_i32 = arith.constant 0 : i32
    %c0_i32_0 = arith.constant 0 : i32
    %c0_i32_1 = arith.constant 0 : i32
    return %c0_i32, %c0_i32_0 : i32, i32
  }
  func.func @transform_9(%arg0: i32, %arg1: memref<42xi32, #tpu.memory_space<smem>>, %arg2: memref<42xi32, #tpu.memory_space<smem>>, %arg3: memref<16xi32, #tpu.memory_space<smem>>) -> (i32, i32) {
    %c0_i32 = arith.constant 0 : i32
    %c0_i32_0 = arith.constant 0 : i32
    %c0_i32_1 = arith.constant 0 : i32
    return %c0_i32, %c0_i32_0 : i32, i32
  }
  func.func @transform_10(%arg0: i32, %arg1: memref<42xi32, #tpu.memory_space<smem>>, %arg2: memref<42xi32, #tpu.memory_space<smem>>, %arg3: memref<16xi32, #tpu.memory_space<smem>>) -> (i32, i32) {
    %c0_i32 = arith.constant 0 : i32
    %c0_i32_0 = arith.constant 0 : i32
    %c0_i32_1 = arith.constant 0 : i32
    return %c0_i32, %c0_i32_0 : i32, i32
  }
  func.func @transform_11(%arg0: i32, %arg1: memref<42xi32, #tpu.memory_space<smem>>, %arg2: memref<42xi32, #tpu.memory_space<smem>>, %arg3: memref<16xi32, #tpu.memory_space<smem>>) -> (i32, i32) {
    %c0_i32 = arith.constant 0 : i32
    %c0_i32_0 = arith.constant 0 : i32
    %c0_i32_1 = arith.constant 0 : i32
    return %c0_i32, %c0_i32_0 : i32, i32
  }
  func.func @transform_12(%arg0: i32, %arg1: memref<42xi32, #tpu.memory_space<smem>>, %arg2: memref<42xi32, #tpu.memory_space<smem>>, %arg3: memref<16xi32, #tpu.memory_space<smem>>) -> (i32, i32) {
    %c0_i32 = arith.constant 0 : i32
    %c0_i32_0 = arith.constant 0 : i32
    %c0_i32_1 = arith.constant 0 : i32
    return %c0_i32, %c0_i32_0 : i32, i32
  }
  func.func @transform_13(%arg0: i32, %arg1: memref<42xi32, #tpu.memory_space<smem>>, %arg2: memref<42xi32, #tpu.memory_space<smem>>, %arg3: memref<16xi32, #tpu.memory_space<smem>>) -> (i32, i32) {
    %c0_i32 = arith.constant 0 : i32
    %c0_i32_0 = arith.constant 0 : i32
    %c0_i32_1 = arith.constant 0 : i32
    return %c0_i32, %c0_i32_0 : i32, i32
  }
  func.func @transform_14(%arg0: i32, %arg1: memref<42xi32, #tpu.memory_space<smem>>, %arg2: memref<42xi32, #tpu.memory_space<smem>>, %arg3: memref<16xi32, #tpu.memory_space<smem>>) -> (i32, i32) {
    %c0_i32 = arith.constant 0 : i32
    %c0_i32_0 = arith.constant 0 : i32
    %c0_i32_1 = arith.constant 0 : i32
    return %c0_i32, %c0_i32_0 : i32, i32
  }
  func.func @transform_15(%arg0: i32, %arg1: memref<42xi32, #tpu.memory_space<smem>>, %arg2: memref<42xi32, #tpu.memory_space<smem>>, %arg3: memref<16xi32, #tpu.memory_space<smem>>) -> (i32, i32) {
    %c0_i32 = arith.constant 0 : i32
    %c0_i32_0 = arith.constant 0 : i32
    %c0_i32_1 = arith.constant 0 : i32
    return %c0_i32, %c0_i32_0 : i32, i32
  }
  func.func @transform_16(%arg0: i32, %arg1: memref<42xi32, #tpu.memory_space<smem>>, %arg2: memref<42xi32, #tpu.memory_space<smem>>, %arg3: memref<16xi32, #tpu.memory_space<smem>>) -> (i32, i32) {
    %c0_i32 = arith.constant 0 : i32
    %c0_i32_0 = arith.constant 0 : i32
    %c0_i32_1 = arith.constant 0 : i32
    return %c0_i32, %c0_i32_0 : i32, i32
  }
  func.func @transform_17(%arg0: i32, %arg1: memref<42xi32, #tpu.memory_space<smem>>, %arg2: memref<42xi32, #tpu.memory_space<smem>>, %arg3: memref<16xi32, #tpu.memory_space<smem>>) -> (i32, i32) {
    %c0_i32 = arith.constant 0 : i32
    %c0_i32_0 = arith.constant 0 : i32
    %c0_i32_1 = arith.constant 0 : i32
    return %c0_i32, %c0_i32_0 : i32, i32
  }
}

</mosaic_0001>

<bundles_post_ra>
// kernel: tpu_custom_call.1
= control target key start
LH: loop header
LB: loop body
LE: loop exit
PB: predicated region body
PF: predicated region fallthrough
CT: control target
= control target key end

     0   :  { %s4327_s0 = inlined_call_operand.vmem [shape: s32[42], index: 0, kind: input, shape index: {}]   ;;  %s4328_s3 = inlined_call_operand.vmem [shape: f32[16,64], index: 3, kind: input, shape index: {}]   ;;  %s4329_s4 = inlined_call_operand.vmem [shape: f32[14,64], index: 4, kind: input, shape index: {}]   ;;  %s4330_s5 = inlined_call_operand.vmem [shape: f32[14,128], index: 5, kind: input, shape index: {}]   ;;  %s4331_s6 = inlined_call_operand.vmem [shape: f32[2,64], index: 6, kind: input, shape index: {}]   ;;  %s4332_s7 = inlined_call_operand.vmem [shape: f32[64,32], index: 7, kind: input, shape index: {}]   ;;  %s4333_s8 = inlined_call_operand.vmem [shape: f32[1,32], index: 8, kind: input, shape index: {}]   ;;  %s4334_s9 = inlined_call_operand.vmem [shape: f32[64,32], index: 9, kind: input, shape index: {}]   ;;  %s4335_s10 = inlined_call_operand.vmem [shape: f32[64,32], index: 10, kind: input, shape index: {}]   ;;  %s4336_s11 = inlined_call_operand.vmem [shape: f32[1,32], index: 11, kind: input, shape index: {}]   ;;  %s4337_s12 = inlined_call_operand.vmem [shape: f32[32,32], index: 12, kind: input, shape index: {}]   ;;  %s4338_s13 = inlined_call_operand.vmem [shape: f32[64,32], index: 13, kind: input, shape index: {}]   ;;  %s4339_s14 = inlined_call_operand.vmem [shape: f32[1,32], index: 14, kind: input, shape index: {}]   ;;  %s4340_s15 = inlined_call_operand.vmem [shape: f32[128,64], index: 15, kind: input, shape index: {}]   ;;  %s4341_s16 = inlined_call_operand.vmem [shape: f32[64,64], index: 16, kind: input, shape index: {}]   ;;  %s4342_s17 = inlined_call_operand.vmem [shape: f32[1,64], index: 17, kind: input, shape index: {}]   ;;  %s4343_s18 = inlined_call_operand.vmem [shape: f32[64,4], index: 18, kind: input, shape index: {}]   ;;  %s4344_s19 = inlined_call_operand.vmem [shape: f32[1,4], index: 19, kind: input, shape index: {}]   ;;  %s4345_s20 = inlined_call_operand.vmem [shape: f32[30,4], index: 20, kind: output, shape index: {}]   ;;  %s4346_s1 = inlined_call_operand.vmem [shape: s32[42], index: 1, kind: input, shape index: {}]   ;;  %s4347_s2 = inlined_call_operand.vmem [shape: s32[16], index: 2, kind: input, shape index: {}]  }
   0x1   :  { %4351 = sst [smem:[#allocation9_spill]] %s4327_s0  ;;  %s29_s25 = sshll.u32 %s4346_s1, 4  ;;  %s30_s25 = int_to_ptr.vmem [resolvable:$true] %s29_s25 }
   0x2   :  { %4352 = sst [smem:[#allocation10_spill]] %s4328_s3  ;;  %s4357_s23 = sld [smem:[#allocation9_spill]] }
   0x3   :  { %4353 = sst [smem:[#allocation11_spill]] %s4329_s4 }
   0x4   :  { %4354 = sst [smem:[#allocation12_spill]] %s4330_s5 }
   0x5   :  { %4355 = sst [smem:[#allocation13_spill]] %s4331_s6 }
   0x6   :  { %4356 = sst [smem:[#allocation14_spill]] %s4339_s14 }
   0x8   :  { %s25_s14 = sshll.u32 %s4357_s23, 4  ;;  %s26_s14 = int_to_ptr.vmem [resolvable:$true] %s25_s14 }
   0x9   :  { %s3472_s5 = scalar_lea.vmem %s26_s14, 16  ;;  %p3477_p1 = scmp.lt.s32.totalorder %s26_s14, %s26_s14 }
   0xa   :  { %p3473_p0 = scmp.ne.s32.totalorder %s26_s14, %s3472_s5  ;;  %p3478_p2 = scmp.lt.s32.totalorder %s3472_s5, %s3472_s5 }
   0xc   :  { %p3479_p3 = por %p3478_p2, %p3477_p1 }
   0xe   :  { %p3480_p4 = pnand %p3479_p3, %p3473_p0 }
  0x10   :  { %3483 = shalt.err (!%p3480_p4)  }
  0x11   :  { %s3510_s26 = smov [#allocation5]   ;;  %s3484_s27 = scalar_lea.vmem %s30_s25, 16 }
  0x12   :  { %28 = dma.vmem_to_smem %s26_s14, 16, %s3510_s26, [#allocation4] }
  0x13   :  { %p3485_p5 = scmp.ne.s32.totalorder %s30_s25, %s3484_s27  ;;  %p3489_p6 = scmp.lt.s32.totalorder %s30_s25, %s30_s25 }
  0x14   :  { %p3490_p7 = scmp.lt.s32.totalorder %s3484_s27, %s3484_s27 }
  0x16   :  { %p3491_p8 = por %p3490_p7, %p3489_p6 }
  0x18   :  { %p3492_p9 = pnand %p3491_p8, %p3485_p5 }
  0x1a   :  { %3495 = shalt.err (!%p3492_p9)  }
  0x1b   :  { %s3511_s28 = smov [#allocation6]   ;;  %s33_s29 = sshll.u32 %s4347_s2, 4  ;;  %s34_s29 = int_to_ptr.vmem [resolvable:$true] %s33_s29 }
  0x1c   :  { %32 = dma.vmem_to_smem %s30_s25, 16, %s3511_s28, [#allocation4] }
  0x1d   :  { %s3496_s30 = scalar_lea.vmem %s34_s29, 16  ;;  %p3501_p11 = scmp.lt.s32.totalorder %s34_s29, %s34_s29 }
  0x1e   :  { %p3497_p10 = scmp.ne.s32.totalorder %s34_s29, %s3496_s30  ;;  %p3502_p12 = scmp.lt.s32.totalorder %s3496_s30, %s3496_s30 }
  0x20   :  { %p3503_p13 = por %p3502_p12, %p3501_p11 }
  0x22   :  { %p3504_p0 = pnand %p3503_p13, %p3497_p10 }
  0x24   :  { %3507 = shalt.err (!%p3504_p0)  }
  0x25   :  { %s3512_s14 = smov [#allocation7]  }
  0x26   :  { %36 = dma.vmem_to_smem %s34_s29, 16, %s3512_s14, [#allocation4] }
  0x27   :  { %3508 = dma.done.wait [#allocation4], 48 }
  0x28   :  { %3509 = vsyncadd [#allocation4], 4294967248 }
  0x29   :  { %38 = sfence }
  0x2a   :  { %v191_v0 = vld [vmem:[%s4334_s9] sm:$0xff]  ;;  %v192_v1 = vld [vmem:[%s4334_s9 + $0x8] sm:$0xff]  ;;  %v193_v2 = vld [vmem:[%s4334_s9 + $0x10] sm:$0xff]  ;;  %vm206_vm0 = vcmask 523264   ;;  %s4358_s6 = sld [smem:[#allocation11_spill]]  ;;  %v3513_v17 = vmov 0.0|0.0  }
  0x2b   :  { %v3158_v3 = vpack.c.bf16 %v192_v1, %v191_v0  ;;  %v194_v4 = vld [vmem:[%s4334_s9 + $0x18] sm:$0xff]  ;;  %v195_v6 = vld [vmem:[%s4334_s9 + $0x20] sm:$0xff]  ;;  %v196_v7 = vld [vmem:[%s4334_s9 + $0x28] sm:$0xff]  ;;  %vm3514_vm1 = vmmov 0   ;;  %v3515_v21 = vmov 0.0   ;;  %s4359_s25 = sld [smem:[#allocation13_spill]] }
  0x2c   :  { %v3162_v5 = vpack.c.bf16 %v194_v4, %v193_v2  ;;  %v3166_v9 = vpack.c.bf16 %v196_v7, %v195_v6  ;;  %v197_v10 = vld [vmem:[%s4334_s9 + $0x30] sm:$0xff]  ;;  %v198_v11 = vld [vmem:[%s4334_s9 + $0x38] sm:$0xff]  ;;  %v389_v13 = vld [vmem:[%s4338_s13] sm:$0xff]  ;;  %s4360_s27 = sld [smem:[#allocation10_spill]]  ;;  %s4361_s14 = sld [smem:[#allocation12_spill]]  ;;  %vm576_vm2 = vcmask 253952  }
  0x2d   :  { %3159 = vmatprep.subr.bf16.mxu0 %v3158_v3  ;;  %v3170_v12 = vpack.c.bf16 %v198_v11, %v197_v10  ;;  %v390_v14 = vld [vmem:[%s4338_s13 + $0x8] sm:$0xff]  ;;  %v391_v18 = vld [vmem:[%s4338_s13 + $0x10] sm:$0xff]  ;;  %v392_v19 = vld [vmem:[%s4338_s13 + $0x18] sm:$0xff]  ;;  %s73_s5 = sld [smem:[#allocation7]]  ;;  %s2451_s26 = sld [smem:[#allocation7 + $0x1]]  ;;  %vm579_vm3 = vcmask 254977  }
  0x2e   :  { %3161 = vmatpush3.bf16.msra.mxu0 %v3158_v3  ;;  %v3207_v16 = vpack.c.bf16 %v390_v14, %v389_v13  ;;  %v3210_v20 = vpack.c.bf16 %v392_v19, %v391_v18  ;;  %v393_v22 = vld [vmem:[%s4338_s13 + $0x20] sm:$0xff]  ;;  %v394_v23 = vld [vmem:[%s4338_s13 + $0x28] sm:$0xff]  ;;  %v395_v25 = vld [vmem:[%s4338_s13 + $0x30] sm:$0xff]  ;;  %s2453_s28 = sld [smem:[#allocation7 + $0x3]]  ;;  %s3838_s1 = sld [smem:[#allocation7 + $0x4]]  ;;  %vm582_vm4 = vcmask 256002  }
  0x2f   :  { %3163 = vmatprep.subr.bf16.mxu0 %v3162_v5  ;;  %v3213_v24 = vpack.c.bf16 %v394_v23, %v393_v22  ;;  %v396_v26 = vld [vmem:[%s4338_s13 + $0x38] sm:$0xff]  ;;  %v479_v27 = vld [vmem:[%s4332_s7] sm:$0xff]  ;;  %v480_v28 = vld [vmem:[%s4332_s7 + $0x8] sm:$0xff]  ;;  %s3845_s30 = sld [smem:[#allocation7 + $0x6]]  ;;  %s3847_s0 = sld [smem:[#allocation7 + $0x7]]  ;;  %vm585_vm5 = vcmask 257027  }
  0x30   :  { %v189_v8 = vld [vmem:[%s4358_s6] sm:$0xff]  ;;  %v190_v15 = vld [vmem:[%s4358_s6 + $0x8] sm:$0x3f]  ;;  %v3216_v29 = vpack.c.bf16 %v396_v26, %v395_v25  ;;  %v3218_v30 = vpack.c.bf16 %v480_v28, %v479_v27  ;;  %v481_v31 = vld [vmem:[%s4332_s7 + $0x10] sm:$0xff]  ;;  %s3840_s6 = sld [smem:[#allocation7 + $0x5]]  ;;  %s3849_s21 = sld [smem:[#allocation7 + $0x8]] }
  0x31   :  { %2783 = vmatprep.mubr.msk.f32.mxu0 %vm206_vm0, %v189_v8  ;;  %v482_v32 = vld [vmem:[%s4332_s7 + $0x18] sm:$0xff]  ;;  %v388_v33 = vld [vmem:[%s4359_s25] sm:$0x3]  ;;  %v484_v37 = vld [vmem:[%s4332_s7 + $0x28] sm:$0xff]  ;;  %s3851_s3 = sld [smem:[#allocation7 + $0x9]]  ;;  %s3853_s22 = sld [smem:[#allocation7 + $0xa]] }
  0x32   :  { %3165 = vmatpush3.bf16.msra.mxu0 %v3162_v5  ;;  %v3222_v34 = vpack.c.bf16 %v482_v32, %v481_v31  ;;  %v477_v35 = vld [vmem:[%s4360_s27] sm:$0xff]  ;;  %v485_v39 = vld [vmem:[%s4332_s7 + $0x30] sm:$0xff]  ;;  %v486_v40 = vld [vmem:[%s4332_s7 + $0x38] sm:$0xff]  ;;  %vm588_vm6 = vcmask 258052   ;;  %vm591_vm7 = vcmask 259077   ;;  %s3862_s9 = sld [smem:[#allocation7 + $0xd]] }
  0x33   :  { %3167 = vmatprep.subr.bf16.mxu0 %v3166_v9  ;;  %v483_v36 = vld [vmem:[%s4332_s7 + $0x20] sm:$0xff]  ;;  %v3230_v41 = vpack.c.bf16 %v486_v40, %v485_v39  ;;  %v478_v42 = vld [vmem:[%s4360_s27 + $0x8] sm:$0xff]  ;;  %v292_v45 = vld [vmem:[%s4340_s15 + $0x10] sm:$0xff]  ;;  %s2452_s27 = sld [smem:[#allocation7 + $0x2]]  ;;  %s575_s2 = scalar_lea.vmem [#allocation2], %s73_s5  ;;  %vm594_vm8 = vcmask 260102  }
  0x34   :  { %v3226_v38 = vpack.c.bf16 %v484_v37, %v483_v36  ;;  %v290_v43 = vld [vmem:[%s4340_s15] sm:$0xff]  ;;  %v291_v44 = vld [vmem:[%s4340_s15 + $0x8] sm:$0xff]  ;;  %v293_v47 = vld [vmem:[%s4340_s15 + $0x18] sm:$0xff]  ;;  %s578_s23 = scalar_lea.vmem [#allocation2], %s2451_s26  ;;  %s3859_s7 = sld [smem:[#allocation7 + $0xc]]  ;;  %vm597_vm9 = vcmask 261127  }
  0x35   :  { %v3174_v46 = vpack.c.bf16 %v291_v44, %v290_v43  ;;  %v3178_v48 = vpack.c.bf16 %v293_v47, %v292_v45  ;;  %v294_v49 = vld [vmem:[%s4340_s15 + $0x20] sm:$0xff]  ;;  %v295_v50 = vld [vmem:[%s4340_s15 + $0x28] sm:$0xff]  ;;  %v296_v52 = vld [vmem:[%s4340_s15 + $0x30] sm:$0xff]  ;;  %s584_s13 = scalar_lea.vmem [#allocation2], %s2453_s28  ;;  %s3865_s4 = sld [smem:[#allocation7 + $0xe]]  ;;  %vm623_vm10 = vcmask 261120  }
  0x36   :  { %3169 = vmatpush3.bf16.msra.mxu0 %v3166_v9  ;;  %v3182_v51 = vpack.c.bf16 %v295_v50, %v294_v49  ;;  %v288_v53 = vld [vmem:[%s4361_s14] sm:$0xff]  ;;  %v297_v54 = vld [vmem:[%s4340_s15 + $0x38] sm:$0xff]  ;;  %v174_v56 = vld [vmem:[%s4335_s10 + $0x8] sm:$0xff]  ;;  %s587_s25 = scalar_lea.vmem [#allocation2], %s3838_s1  ;;  %s593_s5 = scalar_lea.vmem [#allocation2], %s3845_s30  ;;  %vm637_vm11 = vcmask 1040384  }
  0x37   :  { %3171 = vmatprep.subr.bf16.mxu0 %v3170_v12  ;;  %3175 = vmatprep.subr.bf16.mxu1 %v3174_v46  ;;  %v173_v55 = vld [vmem:[%s4335_s10] sm:$0xff]  ;;  %v175_v58 = vld [vmem:[%s4335_s10 + $0x10] sm:$0xff]  ;;  %v176_v59 = vld [vmem:[%s4335_s10 + $0x18] sm:$0xff]  ;;  %v3186_v60 = vpack.c.bf16 %v297_v54, %v296_v52  ;;  %s596_s26 = scalar_lea.vmem [#allocation2], %s3847_s0  ;;  %s601_s28 = scalar_lea.vmem [#allocation2], %s3851_s3  ;;  %vm2327_vm12 = vcmask 31744  }
  0x38   :  { %3177 = vmatpush3.bf16.msra.mxu1 %v3174_v46  ;;  %2818 = vmatprep.mubr.f32.mxu1 %v288_v53  ;;  %v3766_v57 = vpack.c.bf16 %v174_v56, %v173_v55  ;;  %v298_v61 = vld [vmem:[%s4340_s15 + $0x40] sm:$0xff]  ;;  %v299_v62 = vld [vmem:[%s4340_s15 + $0x48] sm:$0xff]  ;;  %v3782_v63 = vpack.c.bf16 %v176_v59, %v175_v58  ;;  %v300_v3 = vld [vmem:[%s4340_s15 + $0x50] sm:$0xff]  ;;  %s603_s1 = scalar_lea.vmem [#allocation2], %s3853_s22  ;;  %s2470_s0 = sld [smem:[#allocation5 + $0x5]]  ;;  %vm2331_vm13 = vcmask 29696  }
  0x39   :  { %3179 = vmatprep.subr.bf16.mxu1 %v3178_v48  ;;  %v177_v0 = vld [vmem:[%s4335_s10 + $0x20] sm:$0xff]  ;;  %v178_v1 = vld [vmem:[%s4335_s10 + $0x28] sm:$0xff]  ;;  %v3190_v2 = vpack.c.bf16 %v299_v62, %v298_v61  ;;  %v301_v4 = vld [vmem:[%s4340_s15 + $0x58] sm:$0xff]  ;;  %s581_s24 = scalar_lea.vmem [#allocation2], %s2452_s27  ;;  %s599_s27 = scalar_lea.vmem [#allocation2], %s3849_s21 }
  0x3a   :  { %3173 = vmatpush3.bf16.msra.mxu0 %v3170_v12  ;;  %v3798_v5 = vpack.c.bf16 %v178_v1, %v177_v0  ;;  %v3194_v6 = vpack.c.bf16 %v301_v4, %v300_v3  ;;  %v302_v7 = vld [vmem:[%s4340_s15 + $0x60] sm:$0xff]  ;;  %v303_v8 = vld [vmem:[%s4340_s15 + $0x68] sm:$0xff]  ;;  %v304_v10 = vld [vmem:[%s4340_s15 + $0x70] sm:$0xff]  ;;  %s607_s3 = scalar_lea.vmem [#allocation2], %s3859_s7  ;;  %s609_s22 = scalar_lea.vmem [#allocation2], %s3862_s9 }
  0x3b   :  { %3206 = vmatprep.subr.bf16.mxu0 %v3513_v17  ;;  %v3198_v9 = vpack.c.bf16 %v303_v8, %v302_v7  ;;  %v305_v11 = vld [vmem:[%s4340_s15 + $0x78] sm:$0xff]  ;;  %v289_v13 = vld [vmem:[%s4361_s14 + $0x8] sm:$0x3f]  ;;  %v3829_v14 = vld [vmem:[%s4336_s11] ss:$0 sm:$0xff]  ;;  %s3869_s15 = sld [smem:[#allocation7 + $0xf]] }
  0x3c   :  { %3181 = vmatpush3.bf16.msra.mxu1 %v3178_v48  ;;  %v3202_v12 = vpack.c.bf16 %v305_v11, %v304_v10  ;;  %v2554_v22 = vld [vmem:[%s4333_s8] ss:$0 sm:$0xff]  ;;  %s3856_s8 = sld [smem:[#allocation7 + $0xb]]  ;;  %s590_s14 = scalar_lea.vmem [#allocation2], %s3840_s6  ;;  %v179_v27 = vld [vmem:[%s4335_s10 + $0x30] sm:$0xff]  ;;  %v180_v28 = vld [vmem:[%s4335_s10 + $0x38] sm:$0xff] }
  0x3d   :  { %2784 = vmatmul.mubr.msk.f32.vlgmr.msra.gmra.mrb[0].mxu0 %vm206_vm0, %v190_v15  ;;  %3183 = vmatprep.subr.bf16.mxu1 %v3182_v51  ;;  %s3516_s7 = smov 32   ;;  %s2469_s9 = sld [smem:[#allocation5 + $0x4]]  ;;  %v3913_v40 = vld [vmem:[%s4342_s17] ss:$0 sm:$0xff] }
  0x3e   :  { %3208 = vmatpush3.bf16.msra.mxu0 %v3207_v16  ;;  %2837 = vmatprep.mubr.msk.f32.mxu0 %vm3514_vm1, %v3515_v21  ;;  %s89_s17 = sld [smem:[#allocation5]]  ;;  %s2475_s11 = sld [smem:[#allocation5 + $0xa]] }
  0x3f   :  { %3209 = vmatprep.subr.bf16.mxu0 %v3513_v17  ;;  %s2472_s30 = sld [smem:[#allocation5 + $0x7]] }
  0x40   :  { %3185 = vmatpush3.bf16.msra.mxu1 %v3182_v51 }
  0x41   :  { %3187 = vmatprep.subr.bf16.mxu1 %v3186_v60  ;;  %s613_s10 = scalar_lea.vmem [#allocation2], %s3869_s15 }
  0x42   :  { %3211 = vmatpush3.bf16.msra.mxu0 %v3210_v20  ;;  %s605_s21 = scalar_lea.vmem [#allocation2], %s3856_s8  ;;  %s2467_s8 = sld [smem:[#allocation5 + $0x2]] }
  0x43   :  { %3212 = vmatprep.subr.bf16.mxu0 %v3513_v17 }
  0x44   :  { %3189 = vmatpush3.bf16.msra.mxu1 %v3186_v60 }
  0x45   :  { %3191 = vmatprep.subr.bf16.mxu1 %v3190_v2 }
  0x46   :  { %3214 = vmatpush3.bf16.msra.mxu0 %v3213_v24 }
  0x47   :  { %3215 = vmatprep.subr.bf16.mxu0 %v3513_v17 }
  0x48   :  { %3193 = vmatpush3.bf16.msra.mxu1 %v3190_v2 }
  0x49   :  { %3195 = vmatprep.subr.bf16.mxu1 %v3194_v6 }
  0x4a   :  { %3217 = vmatpush3.bf16.msra.mxu0 %v3216_v29  ;;  %v3891_v29 = vpack.c.bf16 %v180_v28, %v179_v27 }
  0x4b   :  { %3219 = vmatprep.subr.bf16.mxu0 %v3218_v30 }
  0x4c   :  { %3197 = vmatpush3.bf16.msra.mxu1 %v3194_v6 }
  0x4d   :  { %2838 = vmatmul.mubr.msk.f32.vlgmr.msra.gmra.mrb[2].mxu0 %vm206_vm0, %v388_v33  ;;  %3199 = vmatprep.subr.bf16.mxu1 %v3198_v9 }
  0x4e   :  { %3221 = vmatpush3.bf16.msra.mxu0 %v3218_v30  ;;  %2856 = vmatprep.mubr.msk.f32.mxu0 %vm206_vm0, %v477_v35 }
  0x4f   :  { %3223 = vmatprep.subr.bf16.mxu0 %v3222_v34 }
  0x50   :  { %3201 = vmatpush3.bf16.msra.mxu1 %v3198_v9 }
  0x51   :  { %3203 = vmatprep.subr.bf16.mxu1 %v3202_v12 }
  0x52   :  { %3225 = vmatpush3.bf16.msra.mxu0 %v3222_v34 }
  0x53   :  { %3227 = vmatprep.subr.bf16.mxu0 %v3226_v38 }
  0x54   :  { %3205 = vmatpush3.bf16.msra.mxu1 %v3202_v12 }
  0x55   :  { %3234 = vmatprep.subr.bf16.mxu1 %v3513_v17 }
  0x56   :  { %3229 = vmatpush3.bf16.msra.mxu0 %v3226_v38 }
  0x57   :  { %3231 = vmatprep.subr.bf16.mxu0 %v3230_v41  ;;  %2819 = vmatmul.mubr.f32.vlgmr.msra.gmra.mrb[0].mxu1 %v289_v13 }
  0x58   :  { %3236 = vmatpush3.bf16.msra.mxu1 %v3766_v57  ;;  %2875 = vmatprep.mubr.msk.f32.mxu1 %vm3514_vm1, %v3515_v21 }
  0x59   :  { %3237 = vmatprep.subr.bf16.mxu1 %v3513_v17 }
  0x5a   :  { %3233 = vmatpush3.bf16.msra.mxu0 %v3230_v41 }
  0x5b   :  { %3246 = vmatprep.subr.bf16.mxu0 %v3513_v17 }
  0x5c   :  { %3239 = vmatpush3.bf16.msra.mxu1 %v3782_v63 }
  0x5d   :  { %2857 = vmatmul.mubr.msk.f32.vlgmr.msra.gmra.mrb[4].mxu0 %vm206_vm0, %v478_v42  ;;  %3240 = vmatprep.subr.bf16.mxu1 %v3513_v17 }
  0x5e   :  { %2894 = vmatprep.mubr.msk.f32.mxu0 %vm3514_vm1, %v3515_v21  ;;  %3248 = vmatpush3.bf16.msra.mxu0 %v3766_v57 }
  0x5f   :  { %3249 = vmatprep.subr.bf16.mxu0 %v3513_v17 }
  0x60   :  { %3242 = vmatpush3.bf16.msra.mxu1 %v3798_v5 }
  0x61   :  { %3243 = vmatprep.subr.bf16.mxu1 %v3513_v17 }
  0x62   :  { %3251 = vmatpush3.bf16.msra.mxu0 %v3782_v63 }
  0x63   :  { %3252 = vmatprep.subr.bf16.mxu0 %v3513_v17 }
  0x64   :  { %3245 = vmatpush3.bf16.msra.mxu1 %v3891_v29 }
  0x65   :  { %3258 = vmatprep.subr.bf16.mxu1 %v3513_v17 }
  0x66   :  { %3254 = vmatpush3.bf16.msra.mxu0 %v3798_v5 }
  0x67   :  { %3255 = vmatprep.subr.bf16.mxu0 %v3513_v17 }
  0x6a   :  { %3257 = vmatpush3.bf16.msra.mxu0 %v3891_v29 }
  0x6b   :  { %3270 = vmatprep.subr.bf16.mxu0 %v3513_v17 }
 0x110   :  { %v2785_v15 = vpop.f32.mrb[0].mxu0 }
 0x111   :  { %v3832_v16 = vadd.f32 %v2785_v15, %v3829_v14  ;;  %v3834_v18 = vpop.f32.mrb[1].mxu0 }
 0x112   :  { %v3933_v44 = vadd.f32 %v3829_v14, %v3834_v18 }
 0x114   :  { %v740_v60 = vrot.slane %v3933_v44, 2  ;;  %v842_v13 = vrot.slane %v3933_v44, 4 }
 0x120   :  { %v3836_v19 = vpop.f32.mrb[2].mxu0 }
 0x121   :  { %v2839_v20 = vpop.f32.mrb[3].mxu0 }
 0x12a   :  { %v2820_v41 = vpop.f32.mrb[0].mxu1 }
 0x12b   :  { %v3920_v42 = vadd.f32 %v2820_v41, %v3913_v40  ;;  %v3922_v43 = vpop.f32.mrb[1].mxu1 }
 0x130   :  { %v2858_v23 = vpop.f32.mrb[4].mxu0 }
 0x131   :  { %v566_v24 = vpop.f32.mrb[5].mxu0  ;;  %v572_v26 = vadd.f32 %v2858_v23, %v2554_v22 }
 0x132   :  { %v567_v25 = vadd.f32 %v2554_v22, %v566_v24 }
 0x134   :  { %577 = vst.msk [vmem:[%s575_s2] sm:$0x1] %vm576_vm2, %v567_v25  ;;  %s611_s2 = scalar_lea.vmem [#allocation2], %s3865_s4  ;;  %s625_s4 = scalar_lea.vmem [#allocation2], %s2469_s9 }
 0x135   :  { %580 = vst.msk [vmem:[%s578_s23 - $0x1] sm:$0x2] %vm579_vm3, %v567_v25  ;;  %s627_s23 = scalar_lea.vmem [#allocation2], %s2470_s0  ;;  %s726_s0 = scalar_lea.vmem [#allocation2], %s2475_s11 }
 0x136   :  { %583 = vst.msk [vmem:[%s581_s24 - $0x2] sm:$0x4] %vm582_vm4, %v567_v25  ;;  %s617_s24 = scalar_lea.vmem [#allocation2], %s2467_s8  ;;  %s2484_s11 = sld [smem:[#allocation5 + $0x13]] }
 0x137   :  { %586 = vst.msk [vmem:[%s584_s13 - $0x3] sm:$0x8] %vm585_vm5, %v567_v25  ;;  %s2466_s13 = sld [smem:[#allocation5 + $0x1]] }
 0x138   :  { %589 = vst.msk [vmem:[%s587_s25 - $0x4] sm:$0x10] %vm588_vm6, %v567_v25 }
 0x139   :  { %592 = vst.msk [vmem:[%s590_s14 - $0x5] sm:$0x20] %vm591_vm7, %v567_v25  ;;  %s2477_s14 = sld [smem:[#allocation5 + $0xc]] }
 0x13a   :  { %595 = vst.msk [vmem:[%s593_s5 - $0x6] sm:$0x40] %vm594_vm8, %v567_v25  ;;  %s2468_s5 = sld [smem:[#allocation5 + $0x3]] }
 0x13b   :  { %598 = vst.msk [vmem:[%s596_s26 - $0x7] sm:$0x80] %vm597_vm9, %v567_v25  ;;  %s2476_s26 = sld [smem:[#allocation5 + $0xb]] }
 0x13c   :  { %600 = vst.msk [vmem:[%s599_s27] sm:$0x1] %vm576_vm2, %v572_v26  ;;  %s713_s27 = scalar_lea.vmem [#allocation2], %s89_s17  ;;  %s2480_s17 = sld [smem:[#allocation5 + $0xf]] }
 0x13d   :  { %602 = vst.msk [vmem:[%s601_s28 - $0x1] sm:$0x2] %vm579_vm3, %v572_v26  ;;  %s615_s25 = scalar_lea.vmem [#allocation2], %s2466_s13  ;;  %s2481_s13 = sld [smem:[#allocation5 + $0x10]] }
 0x13e   :  { %604 = vst.msk [vmem:[%s603_s1 - $0x2] sm:$0x4] %vm582_vm4, %v572_v26  ;;  %s2473_s1 = sld [smem:[#allocation5 + $0x8]] }
 0x13f   :  { %606 = vst.msk [vmem:[%s605_s21 - $0x3] sm:$0x8] %vm585_vm5, %v572_v26  ;;  %s717_s21 = scalar_lea.vmem [#allocation2], %s2472_s30 }
 0x140   :  { %608 = vst.msk [vmem:[%s607_s3 - $0x4] sm:$0x10] %vm588_vm6, %v572_v26  ;;  %s715_s28 = scalar_lea.vmem [#allocation2], %s2468_s5  ;;  %s2471_s3 = sld [smem:[#allocation5 + $0x6]] }
 0x141   :  { %610 = vst.msk [vmem:[%s609_s22 - $0x5] sm:$0x20] %vm591_vm7, %v572_v26  ;;  %s728_s6 = scalar_lea.vmem [#allocation2], %s2476_s26  ;;  %s2474_s22 = sld [smem:[#allocation5 + $0x9]] }
 0x142   :  { %612 = vst.msk [vmem:[%s611_s2 - $0x6] sm:$0x40] %vm594_vm8, %v572_v26  ;;  %s2482_s2 = sld [smem:[#allocation5 + $0x11]]  ;;  %s2488_s5 = sld [smem:[#allocation5 + $0x17]] }
 0x143   :  { %614 = vst.msk [vmem:[%s613_s10 - $0x7] sm:$0x80] %vm597_vm9, %v572_v26  ;;  %s2479_s10 = sld [smem:[#allocation5 + $0xe]]  ;;  %s2485_s26 = sld [smem:[#allocation5 + $0x14]] }
 0x144   :  { %s719_s29 = scalar_lea.vmem [#allocation2], %s2473_s1 }
 0x146   :  { %s816_s8 = scalar_lea.vmem [#allocation2], %s2471_s3  ;;  %s2486_s3 = sld [smem:[#allocation5 + $0x15]] }
 0x148   :  { %s933_s1 = scalar_lea.vmem [#allocation2], %s2488_s5  ;;  %s2497_s5 = sld [smem:[#allocation5 + $0x20]] }
 0x149   :  { %s822_s9 = scalar_lea.vmem [#allocation2], %s2479_s10 }
 0x14a   :  { %v628_v30 = vld [vmem:[%s627_s23] sm:$0x1]  ;;  %s818_s23 = scalar_lea.vmem [#allocation2], %s2474_s22  ;;  %s2494_s22 = sld [smem:[#allocation5 + $0x1d]] }
 0x14b   :  { %630 = vrot.lane.b32.xlu0 %v628_v30, %s3516_s7  ;;  %v618_v31 = vld [vmem:[%s617_s24] sm:$0x1]  ;;  %s831_s24 = scalar_lea.vmem [#allocation2], %s2482_s2  ;;  %s2491_s2 = sld [smem:[#allocation5 + $0x1a]] }
 0x14c   :  { %v626_v33 = vld [vmem:[%s625_s4] sm:$0x1]  ;;  %s2478_s4 = sld [smem:[#allocation5 + $0xd]] }
 0x14d   :  { %v616_v37 = vld [vmem:[%s615_s25] sm:$0x1]  ;;  %s829_s25 = scalar_lea.vmem [#allocation2], %s2481_s13  ;;  %s2490_s13 = sld [smem:[#allocation5 + $0x19]] }
 0x14f   :  { %620 = vrot.lane.b32.xlu0 %v618_v31, %s3516_s7 }
 0x152   :  { %s820_s15 = scalar_lea.vmem [#allocation2], %s2478_s4 }
 0x1bd   :  { %v631_v32 = vpop.permute.xlu0 %630 }
 0x1be   :  { %v633_v34 = vsel %vm623_vm10, %v626_v33, %v631_v32  ;;  %v944_v33 = vrot.slane %v3933_v44, 6 }
 0x1bf   :  { %v635_v35 = vrot.slane %v633_v34, 7 }
 0x1c1   :  { %v621_v36 = vpop.permute.xlu0 %620 }
 0x1c2   :  { %v624_v38 = vsel %vm623_vm10, %v616_v37, %v621_v36 }
 0x1c3   :  { %v638_v39 = vsel %vm637_vm11, %v624_v38, %v635_v35 }
 0x1c4   :  { %2876 = vmatmul.mubr.msk.f32.vlgmr.msra.gmra.mrb[2].mxu1 %vm206_vm0, %v638_v39 }
 0x1c5   :  { %3260 = vmatpush3.bf16.msra.mxu1 %v3766_v57  ;;  %2913 = vmatprep.mubr.msk.f32.mxu1 %vm3514_vm1, %v3515_v21 }
 0x1c6   :  { %3261 = vmatprep.subr.bf16.mxu1 %v3513_v17 }
 0x1c9   :  { %3263 = vmatpush3.bf16.msra.mxu1 %v3782_v63 }
 0x1ca   :  { %3264 = vmatprep.subr.bf16.mxu1 %v3513_v17 }
 0x1cd   :  { %3266 = vmatpush3.bf16.msra.mxu1 %v3798_v5 }
 0x1ce   :  { %3267 = vmatprep.subr.bf16.mxu1 %v3513_v17 }
 0x1d1   :  { %3269 = vmatpush3.bf16.msra.mxu1 %v3891_v29 }
 0x1d2   :  { %3282 = vmatprep.subr.bf16.mxu1 %v3513_v17 }
 0x297   :  { %v708_v45 = vpop.f32.mrb[2].mxu1 }
 0x298   :  { %v709_v46 = vadd.f32 %v708_v45, %v3933_v44  ;;  %v2877_v47 = vpop.f32.mrb[3].mxu1 }
 0x29a   :  { %3434 = vtanh.f32 %v709_v46 }
 0x2a4   :  { %v3435_v48 = vpop.eup %3434 }
 0x2a5   :  { %714 = vst.msk [vmem:[%s713_s27] sm:$0x1] %vm576_vm2, %v3435_v48  ;;  %s918_s27 = scalar_lea.vmem [#allocation2], %s2477_s14  ;;  %s2492_s14 = sld [smem:[#allocation5 + $0x1b]] }
 0x2a6   :  { %716 = vst.msk [vmem:[%s715_s28 - $0x1] sm:$0x2] %vm579_vm3, %v3435_v48  ;;  %s920_s28 = scalar_lea.vmem [#allocation2], %s2480_s17  ;;  %s2500_s17 = sld [smem:[#allocation5 + $0x23]] }
 0x2ad   :  { %v729_v49 = vld [vmem:[%s728_s6] sm:$0x1]  ;;  %s924_s6 = scalar_lea.vmem [#allocation2], %s2485_s26 }
 0x2ae   :  { %731 = vrot.lane.b32.xlu1 %v729_v49, %s3516_s7  ;;  %v720_v50 = vld [vmem:[%s719_s29] sm:$0x1]  ;;  %s2487_s29 = sld [smem:[#allocation5 + $0x16]] }
 0x2af   :  { %v727_v52 = vld [vmem:[%s726_s0] sm:$0x1]  ;;  %s922_s0 = scalar_lea.vmem [#allocation2], %s2484_s11 }
 0x2b0   :  { %v718_v56 = vld [vmem:[%s717_s21] sm:$0x1]  ;;  %s2483_s21 = sld [smem:[#allocation5 + $0x12]] }
 0x2b2   :  { %722 = vrot.lane.b32.xlu1 %v720_v50, %s3516_s7 }
 0x2b4   :  { %s931_s30 = scalar_lea.vmem [#allocation2], %s2487_s29  ;;  %s2496_s29 = sld [smem:[#allocation5 + $0x1f]] }
 0x2b6   :  { %s1020_s10 = scalar_lea.vmem [#allocation2], %s2483_s21  ;;  %s2498_s21 = sld [smem:[#allocation5 + $0x21]] }
 0x320   :  { %v732_v51 = vpop.permute.xlu1 %731 }
 0x321   :  { %v734_v53 = vsel %vm623_vm10, %v727_v52, %v732_v51 }
 0x322   :  { %v736_v54 = vrot.slane %v734_v53, 7 }
 0x324   :  { %v723_v55 = vpop.permute.xlu1 %722 }
 0x325   :  { %v725_v58 = vsel %vm623_vm10, %v718_v56, %v723_v55 }
 0x326   :  { %v738_v59 = vsel %vm637_vm11, %v725_v58, %v736_v54 }
 0x327   :  { %2895 = vmatmul.mubr.msk.f32.vlgmr.msra.gmra.mrb[6].mxu0 %vm206_vm0, %v738_v59 }
 0x328   :  { %3272 = vmatpush3.bf16.msra.mxu0 %v3766_v57  ;;  %2932 = vmatprep.mubr.msk.f32.mxu0 %vm3514_vm1, %v3515_v21 }
 0x329   :  { %3273 = vmatprep.subr.bf16.mxu0 %v3513_v17 }
 0x32c   :  { %3275 = vmatpush3.bf16.msra.mxu0 %v3782_v63 }
 0x32d   :  { %3276 = vmatprep.subr.bf16.mxu0 %v3513_v17 }
 0x330   :  { %3278 = vmatpush3.bf16.msra.mxu0 %v3798_v5 }
 0x331   :  { %3279 = vmatprep.subr.bf16.mxu0 %v3513_v17 }
 0x334   :  { %3281 = vmatpush3.bf16.msra.mxu0 %v3891_v29 }
 0x335   :  { %3294 = vmatprep.subr.bf16.mxu0 %v3513_v17 }
 0x3fa   :  { %v811_v61 = vpop.f32.mrb[6].mxu0 }
 0x3fb   :  { %v812_v62 = vadd.f32 %v811_v61, %v740_v60  ;;  %v2896_v0 = vpop.f32.mrb[7].mxu0 }
 0x3fd   :  { %3436 = vtanh.f32 %v812_v62  ;;  %v1147_v62 = vrot.slane %v3832_v16, 2 }
 0x407   :  { %v3437_v1 = vpop.eup %3436 }
 0x408   :  { %817 = vst.msk [vmem:[%s816_s8] sm:$0x1] %vm576_vm2, %v3437_v1  ;;  %s1022_s8 = scalar_lea.vmem [#allocation2], %s2486_s3  ;;  %s2506_s3 = sld [smem:[#allocation5 + $0x29]] }
 0x409   :  { %819 = vst.msk [vmem:[%s818_s23 - $0x1] sm:$0x2] %vm579_vm3, %v3437_v1  ;;  %s1035_s23 = scalar_lea.vmem [#allocation2], %s2494_s22  ;;  %s2503_s22 = sld [smem:[#allocation5 + $0x26]] }
 0x410   :  { %v832_v2 = vld [vmem:[%s831_s24] sm:$0x1]  ;;  %s1026_s24 = scalar_lea.vmem [#allocation2], %s2491_s2 }
 0x411   :  { %v823_v3 = vld [vmem:[%s822_s9] sm:$0x1]  ;;  %834 = vrot.lane.b32.xlu0 %v832_v2, %s3516_s7  ;;  %s2493_s9 = sld [smem:[#allocation5 + $0x1c]] }
 0x412   :  { %825 = vrot.lane.b32.xlu1 %v823_v3, %s3516_s7  ;;  %v830_v6 = vld [vmem:[%s829_s25] sm:$0x1]  ;;  %s1024_s25 = scalar_lea.vmem [#allocation2], %s2490_s13 }
 0x413   :  { %v821_v10 = vld [vmem:[%s820_s15] sm:$0x1]  ;;  %s2489_s15 = sld [smem:[#allocation5 + $0x18]] }
 0x417   :  { %s1033_s4 = scalar_lea.vmem [#allocation2], %s2493_s9  ;;  %s2502_s9 = sld [smem:[#allocation5 + $0x25]] }
 0x419   :  { %s1120_s26 = scalar_lea.vmem [#allocation2], %s2489_s15 }
 0x483   :  { %v835_v4 = vpop.permute.xlu0 %834 }
 0x484   :  { %v826_v7 = vpop.permute.xlu1 %825  ;;  %v837_v8 = vsel %vm623_vm10, %v830_v6, %v835_v4 }
 0x485   :  { %v839_v9 = vrot.slane %v837_v8, 7  ;;  %v828_v11 = vsel %vm623_vm10, %v821_v10, %v826_v7 }
 0x487   :  { %v841_v12 = vsel %vm637_vm11, %v828_v11, %v839_v9 }
 0x488   :  { %2914 = vmatmul.mubr.msk.f32.vlgmr.msra.gmra.mrb[4].mxu1 %vm206_vm0, %v841_v12 }
 0x489   :  { %3284 = vmatpush3.bf16.msra.mxu1 %v3766_v57  ;;  %2951 = vmatprep.mubr.msk.f32.mxu1 %vm3514_vm1, %v3515_v21 }
 0x48a   :  { %3285 = vmatprep.subr.bf16.mxu1 %v3513_v17 }
 0x48d   :  { %3287 = vmatpush3.bf16.msra.mxu1 %v3782_v63 }
 0x48e   :  { %3288 = vmatprep.subr.bf16.mxu1 %v3513_v17 }
 0x491   :  { %3290 = vmatpush3.bf16.msra.mxu1 %v3798_v5 }
 0x492   :  { %3291 = vmatprep.subr.bf16.mxu1 %v3513_v17 }
 0x495   :  { %3293 = vmatpush3.bf16.msra.mxu1 %v3891_v29 }
 0x496   :  { %3306 = vmatprep.subr.bf16.mxu1 %v3513_v17 }
 0x55b   :  { %v913_v14 = vpop.f32.mrb[4].mxu1 }
 0x55c   :  { %v914_v15 = vadd.f32 %v913_v14, %v842_v13  ;;  %v2915_v18 = vpop.f32.mrb[5].mxu1 }
 0x55d   :  { %v1336_v18 = vld [vmem:[%s4337_s12 + $0x8] sm:$0xff] }
 0x55e   :  { %3438 = vtanh.f32 %v914_v15  ;;  %v1335_v15 = vld [vmem:[%s4337_s12] sm:$0xff] }
 0x568   :  { %v3439_v20 = vpop.eup %3438 }
 0x569   :  { %919 = vst.msk [vmem:[%s918_s27] sm:$0x1] %vm576_vm2, %v3439_v20  ;;  %s1122_s27 = scalar_lea.vmem [#allocation2], %s2492_s14  ;;  %s2518_s14 = sld [smem:[#allocation6 + $0xc]] }
 0x56a   :  { %921 = vst.msk [vmem:[%s920_s28 - $0x1] sm:$0x2] %vm579_vm3, %v3439_v20  ;;  %s1135_s28 = scalar_lea.vmem [#allocation2], %s2500_s17  ;;  %v1337_v20 = vld [vmem:[%s4337_s12 + $0x10] sm:$0xff]  ;;  %s4167_s17 = sld [smem:[#allocation6 + $0x15]] }
 0x571   :  { %v934_v22 = vld [vmem:[%s933_s1] sm:$0x1]  ;;  %s1126_s1 = scalar_lea.vmem [#allocation2], %s2497_s5 }
 0x572   :  { %v925_v23 = vld [vmem:[%s924_s6] sm:$0x1]  ;;  %936 = vrot.lane.b32.xlu0 %v934_v22, %s3516_s7  ;;  %s2499_s6 = sld [smem:[#allocation5 + $0x22]]  ;;  %v3319_v22 = vpack.c.bf16 %v1336_v18, %v1335_v15 }
 0x573   :  { %927 = vrot.lane.b32.xlu1 %v925_v23, %s3516_s7  ;;  %v932_v25 = vld [vmem:[%s931_s30] sm:$0x1]  ;;  %s1124_s30 = scalar_lea.vmem [#allocation2], %s2496_s29  ;;  %v1338_v23 = vld [vmem:[%s4337_s12 + $0x18] sm:$0xff]  ;;  %s4048_s29 = sld [smem:[#allocation6 + $0x3]] }
 0x574   :  { %v923_v30 = vld [vmem:[%s922_s0] sm:$0x1]  ;;  %s2495_s0 = sld [smem:[#allocation5 + $0x1e]] }
 0x578   :  { %s1133_s11 = scalar_lea.vmem [#allocation2], %s2499_s6  ;;  %s2504_s6 = sld [smem:[#allocation5 + $0x27]] }
 0x57a   :  { %s1223_s2 = scalar_lea.vmem [#allocation2], %s2495_s0  ;;  %s4054_s0 = sld [smem:[#allocation6 + $0x9]] }
 0x5e4   :  { %v937_v24 = vpop.permute.xlu0 %936 }
 0x5e5   :  { %v928_v26 = vpop.permute.xlu1 %927  ;;  %v939_v27 = vsel %vm623_vm10, %v932_v25, %v937_v24  ;;  %v3322_v24 = vpack.c.bf16 %v1338_v23, %v1337_v20  ;;  %v1249_v25 = vrot.slane %v3832_v16, 4 }
 0x5e6   :  { %v941_v28 = vrot.slane %v939_v27, 7  ;;  %v930_v31 = vsel %vm623_vm10, %v923_v30, %v928_v26 }
 0x5e8   :  { %v943_v32 = vsel %vm637_vm11, %v930_v31, %v941_v28 }
 0x5e9   :  { %2933 = vmatmul.mubr.msk.f32.vlgmr.msra.gmra.mrb[8].mxu0 %vm206_vm0, %v943_v32 }
 0x5ea   :  { %3296 = vmatpush3.bf16.msra.mxu0 %v3766_v57  ;;  %2970 = vmatprep.mubr.msk.f32.mxu0 %vm3514_vm1, %v3515_v21 }
 0x5eb   :  { %3297 = vmatprep.subr.bf16.mxu0 %v3513_v17 }
 0x5ee   :  { %3299 = vmatpush3.bf16.msra.mxu0 %v3782_v63 }
 0x5ef   :  { %3300 = vmatprep.subr.bf16.mxu0 %v3513_v17 }
 0x5f2   :  { %3302 = vmatpush3.bf16.msra.mxu0 %v3798_v5 }
 0x5f3   :  { %3303 = vmatprep.subr.bf16.mxu0 %v3513_v17 }
 0x5f6   :  { %3305 = vmatpush3.bf16.msra.mxu0 %v3891_v29 }
 0x5f7   :  { %3336 = vmatprep.subr.bf16.mxu0 %v3513_v17 }
 0x6bc   :  { %v1015_v34 = vpop.f32.mrb[8].mxu0 }
 0x6bd   :  { %v1016_v35 = vadd.f32 %v1015_v34, %v944_v33  ;;  %v2934_v36 = vpop.f32.mrb[9].mxu0 }
 0x6bf   :  { %3440 = vtanh.f32 %v1016_v35 }
 0x6c9   :  { %v3441_v37 = vpop.eup %3440 }
 0x6ca   :  { %1021 = vst.msk [vmem:[%s1020_s10] sm:$0x1] %vm576_vm2, %v3441_v37  ;;  %s1225_s10 = scalar_lea.vmem [#allocation2], %s2498_s21  ;;  %s1426_s21 = scalar_lea.vmem [#allocation2], %s4048_s29 }
 0x6cb   :  { %1023 = vst.msk [vmem:[%s1022_s8 - $0x1] sm:$0x2] %vm579_vm3, %v3441_v37  ;;  %s1238_s8 = scalar_lea.vmem [#allocation2], %s2506_s3  ;;  %v181_v37 = vld [vmem:[%s4341_s16] sm:$0xff] }
 0x6d2   :  { %v1036_v38 = vld [vmem:[%s1035_s23] sm:$0x1]  ;;  %s1229_s23 = scalar_lea.vmem [#allocation2], %s2503_s22  ;;  %s1534_s22 = scalar_lea.vmem [#allocation2], %s4054_s0 }
 0x6d3   :  { %v1027_v39 = vld [vmem:[%s1026_s24] sm:$0x1]  ;;  %1038 = vrot.lane.b32.xlu0 %v1036_v38, %s3516_s7  ;;  %s2505_s24 = sld [smem:[#allocation5 + $0x28]]  ;;  %v182_v38 = vld [vmem:[%s4341_s16 + $0x8] sm:$0xff] }
 0x6d4   :  { %1029 = vrot.lane.b32.xlu1 %v1027_v39, %s3516_s7  ;;  %v1034_v44 = vld [vmem:[%s1033_s4] sm:$0x1]  ;;  %s1227_s4 = scalar_lea.vmem [#allocation2], %s2502_s9  ;;  %v4072_v39 = vpack.c.bf16 %v182_v38, %v181_v37 }
 0x6d5   :  { %v1025_v48 = vld [vmem:[%s1024_s25] sm:$0x1]  ;;  %s1532_s25 = scalar_lea.vmem [#allocation3], %s4054_s0  ;;  %s2513_s0 = sld [smem:[#allocation6 + $0x7]] }
 0x6d9   :  { %s1236_s13 = scalar_lea.vmem [#allocation2], %s2505_s24  ;;  %s2511_s24 = sld [smem:[#allocation6 + $0x5]] }
 0x6db   :  { %s1622_s5 = scalar_lea.vmem [#allocation3], %s2513_s0 }
 0x745   :  { %v1039_v41 = vpop.permute.xlu0 %1038 }
 0x746   :  { %v1030_v45 = vpop.permute.xlu1 %1029  ;;  %v1041_v46 = vsel %vm623_vm10, %v1034_v44, %v1039_v41  ;;  %v183_v41 = vld [vmem:[%s4341_s16 + $0x10] sm:$0xff]  ;;  %v184_v44 = vld [vmem:[%s4341_s16 + $0x18] sm:$0xff] }
 0x747   :  { %v1043_v47 = vrot.slane %v1041_v46, 7  ;;  %v1032_v49 = vsel %vm623_vm10, %v1025_v48, %v1030_v45  ;;  %v4084_v45 = vpack.c.bf16 %v184_v44, %v183_v41  ;;  %v185_v46 = vld [vmem:[%s4341_s16 + $0x20] sm:$0xff] }
 0x749   :  { %v1045_v50 = vsel %vm637_vm11, %v1032_v49, %v1043_v47  ;;  %v186_v47 = vld [vmem:[%s4341_s16 + $0x28] sm:$0xff]  ;;  %v187_v49 = vld [vmem:[%s4341_s16 + $0x30] sm:$0xff] }
 0x74a   :  { %2952 = vmatmul.mubr.msk.f32.vlgmr.msra.gmra.mrb[6].mxu1 %vm206_vm0, %v1045_v50  ;;  %v4096_v48 = vpack.c.bf16 %v186_v47, %v185_v46  ;;  %v188_v50 = vld [vmem:[%s4341_s16 + $0x38] sm:$0xff] }
 0x74b   :  { %3308 = vmatpush3.bf16.msra.mxu1 %v3766_v57  ;;  %2989 = vmatprep.mubr.msk.f32.mxu1 %vm3514_vm1, %v3515_v21 }
 0x74c   :  { %3309 = vmatprep.subr.bf16.mxu1 %v3513_v17 }
 0x74f   :  { %3311 = vmatpush3.bf16.msra.mxu1 %v3782_v63 }
 0x750   :  { %3312 = vmatprep.subr.bf16.mxu1 %v3513_v17 }
 0x753   :  { %3314 = vmatpush3.bf16.msra.mxu1 %v3798_v5 }
 0x754   :  { %3315 = vmatprep.subr.bf16.mxu1 %v3513_v17 }
 0x757   :  { %3317 = vmatpush3.bf16.msra.mxu1 %v3891_v29 }
 0x758   :  { %3318 = vmatprep.subr.bf16.mxu1 %v3513_v17 }
 0x81d   :  { %v1115_v51 = vpop.f32.mrb[6].mxu1 }
 0x81e   :  { %v1116_v57 = vadd.f32 %v1115_v51, %v3832_v16  ;;  %v2953_v52 = vpop.f32.mrb[7].mxu1  ;;  %v4108_v51 = vpack.c.bf16 %v188_v50, %v187_v49 }
 0x820   :  { %3442 = vtanh.f32 %v1116_v57 }
 0x82a   :  { %v3443_v63 = vpop.eup %3442 }
 0x82b   :  { %1121 = vst.msk [vmem:[%s1120_s26] sm:$0x1] %vm576_vm2, %v3443_v63  ;;  %s1636_s26 = scalar_lea.vmem [#allocation2], %s2518_s14 }
 0x82c   :  { %1123 = vst.msk [vmem:[%s1122_s27 - $0x1] sm:$0x2] %vm579_vm3, %v3443_v63  ;;  %s1755_s27 = scalar_lea.vmem [#allocation2], %s4167_s17 }
 0x833   :  { %v1136_v5 = vld [vmem:[%s1135_s28] sm:$0x1]  ;;  %s2514_s28 = sld [smem:[#allocation6 + $0x8]] }
 0x834   :  { %v1127_v29 = vld [vmem:[%s1126_s1] sm:$0x1]  ;;  %1138 = vrot.lane.b32.xlu0 %v1136_v5, %s3516_s7  ;;  %s2501_s1 = sld [smem:[#allocation5 + $0x24]] }
 0x835   :  { %1129 = vrot.lane.b32.xlu1 %v1127_v29, %s3516_s7  ;;  %v1134_v54 = vld [vmem:[%s1133_s11] sm:$0x1]  ;;  %s4050_s11 = sld [smem:[#allocation6]] }
 0x836   :  { %v1125_v59 = vld [vmem:[%s1124_s30] sm:$0x1]  ;;  %s1327_s30 = scalar_lea.vmem [#allocation2], %s2504_s6  ;;  %s2517_s6 = sld [smem:[#allocation6 + $0xb]] }
 0x83a   :  { %s1325_s12 = scalar_lea.vmem [#allocation2], %s2501_s1  ;;  %s2516_s1 = sld [smem:[#allocation6 + $0xa]] }
 0x83b   :  { %s1417_s3 = scalar_lea.vmem [#allocation2], %s4050_s11  ;;  %s1415_s16 = scalar_lea.vmem [#allocation3], %s4050_s11 }
 0x83c   :  { %s2512_s11 = sld [smem:[#allocation6 + $0x6]] }
 0x842   :  { %s1523_s15 = scalar_lea.vmem [#allocation3], %s2512_s11 }
 0x8a6   :  { %v1139_v53 = vpop.permute.xlu0 %1138 }
 0x8a7   :  { %v1130_v55 = vpop.permute.xlu1 %1129  ;;  %v1141_v56 = vsel %vm623_vm10, %v1134_v54, %v1139_v53 }
 0x8a8   :  { %v1143_v58 = vrot.slane %v1141_v56, 7  ;;  %v1132_v60 = vsel %vm623_vm10, %v1125_v59, %v1130_v55 }
 0x8aa   :  { %v1145_v61 = vsel %vm637_vm11, %v1132_v60, %v1143_v58 }
 0x8ab   :  { %2971 = vmatmul.mubr.msk.f32.vlgmr.msra.gmra.mrb[10].mxu0 %vm206_vm0, %v1145_v61 }
 0x8ac   :  { %3038 = vmatprep.mubr.msk.f32.mxu0 %vm3514_vm1, %v3515_v21  ;;  %3338 = vmatpush3.bf16.msra.mxu0 %v4072_v39 }
 0x8ad   :  { %3339 = vmatprep.subr.bf16.mxu0 %v3513_v17 }
 0x8b0   :  { %3341 = vmatpush3.bf16.msra.mxu0 %v4084_v45 }
 0x8b1   :  { %3342 = vmatprep.subr.bf16.mxu0 %v3513_v17 }
 0x8b4   :  { %3344 = vmatpush3.bf16.msra.mxu0 %v4096_v48 }
 0x8b5   :  { %3345 = vmatprep.subr.bf16.mxu0 %v3513_v17 }
 0x8b8   :  { %3347 = vmatpush3.bf16.msra.mxu0 %v4108_v51 }
 0x8b9   :  { %3360 = vmatprep.subr.bf16.mxu0 %v3513_v17 }
 0x97e   :  { %v1218_v0 = vpop.f32.mrb[10].mxu0 }
 0x97f   :  { %v1219_v1 = vadd.f32 %v1218_v0, %v1147_v62  ;;  %v2972_v2 = vpop.f32.mrb[11].mxu0  ;;  %v4138_v62 = vadd.f32 %v3913_v40, %v3922_v43 }
 0x981   :  { %3444 = vtanh.f32 %v1219_v1 }
 0x98b   :  { %v3445_v3 = vpop.eup %3444 }
 0x98c   :  { %1224 = vst.msk [vmem:[%s1223_s2] sm:$0x1] %vm576_vm2, %v3445_v3  ;;  %s1525_s2 = scalar_lea.vmem [#allocation2], %s2512_s11  ;;  %s1634_s11 = scalar_lea.vmem [#allocation3], %s2518_s14 }
 0x98d   :  { %1226 = vst.msk [vmem:[%s1225_s10 - $0x1] sm:$0x2] %vm579_vm3, %v3445_v3  ;;  %s1753_s14 = scalar_lea.vmem [#allocation3], %s4167_s17  ;;  %s2525_s17 = sld [smem:[#allocation6 + $0x13]] }
 0x994   :  { %v1239_v4 = vld [vmem:[%s1238_s8] sm:$0x1]  ;;  %s2508_s8 = sld [smem:[#allocation6 + $0x2]] }
 0x995   :  { %v1230_v6 = vld [vmem:[%s1229_s23] sm:$0x1]  ;;  %1241 = vrot.lane.b32.xlu0 %v1239_v4, %s3516_s7  ;;  %s2510_s23 = sld [smem:[#allocation6 + $0x4]] }
 0x996   :  { %1232 = vrot.lane.b32.xlu1 %v1230_v6, %s3516_s7  ;;  %v1237_v8 = vld [vmem:[%s1236_s13] sm:$0x1] }
 0x997   :  { %v1228_v12 = vld [vmem:[%s1227_s4] sm:$0x1]  ;;  %s1521_s4 = scalar_lea.vmem [#allocation3], %s2511_s24  ;;  %s2520_s24 = sld [smem:[#allocation6 + $0xe]] }
 0x99a   :  { %s1517_s9 = scalar_lea.vmem [#allocation3], %s2508_s8 }
 0x99b   :  { %s1519_s13 = scalar_lea.vmem [#allocation3], %s2510_s23 }
 0xa07   :  { %v1242_v7 = vpop.permute.xlu0 %1241 }
 0xa08   :  { %v1233_v9 = vpop.permute.xlu1 %1232  ;;  %v1244_v10 = vsel %vm623_vm10, %v1237_v8, %v1242_v7 }
 0xa09   :  { %v1246_v11 = vrot.slane %v1244_v10, 7  ;;  %v1235_v13 = vsel %vm623_vm10, %v1228_v12, %v1233_v9 }
 0xa0b   :  { %v1248_v14 = vsel %vm637_vm11, %v1235_v13, %v1246_v11 }
 0xa0c   :  { %2990 = vmatmul.mubr.msk.f32.vlgmr.msra.gmra.mrb[8].mxu1 %vm206_vm0, %v1248_v14  ;;  %v1546_v14 = vrot.slane %v4138_v62, 2 }
 0xa0d   :  { %3000 = vmatprep.mubr.msk.f32.mxu1 %vm3514_vm1, %v3515_v21  ;;  %3320 = vmatpush3.bf16.msra.mxu1 %v3319_v22 }
 0xa0e   :  { %3321 = vmatprep.subr.bf16.mxu1 %v3513_v17 }
 0xa11   :  { %3323 = vmatpush3.bf16.msra.mxu1 %v3322_v24 }
 0xa12   :  { %3324 = vmatprep.subr.bf16.mxu1 %v3513_v17 }
 0xadf   :  { %v1320_v26 = vpop.f32.mrb[8].mxu1 }
 0xae0   :  { %v1321_v27 = vadd.f32 %v1320_v26, %v1249_v25  ;;  %v2991_v28 = vpop.f32.mrb[9].mxu1 }
 0xae2   :  { %3446 = vtanh.f32 %v1321_v27 }
 0xaec   :  { %v3447_v30 = vpop.eup %3446 }
 0xaed   :  { %1326 = vst.msk [vmem:[%s1325_s12] sm:$0x1] %vm576_vm2, %v3447_v30  ;;  %s4362_s12 = sld [smem:[#allocation14_spill]] }
 0xaee   :  { %1328 = vst.msk [vmem:[%s1327_s30 - $0x1] sm:$0x2] %vm579_vm3, %v3447_v30  ;;  %s1424_s30 = scalar_lea.vmem [#allocation3], %s4048_s29  ;;  %s2507_s29 = sld [smem:[#allocation6 + $0x1]] }
 0xaf3   :  { %v2552_v57 = vld [vmem:[%s4362_s12] ss:$0 sm:$0xff]  ;;  %s1628_s12 = scalar_lea.vmem [#allocation3], %s2514_s28 }
 0xaf4   :  { %v474_v52 = vadd.f32 %v2552_v57, %v3836_v19 }
 0xaf5   :  { %v1427_v16 = vld [vmem:[%s1426_s21] sm:$0x1]  ;;  %v1330_v32 = vld [vmem:[#allocation2 + $0xf] sm:$0x1]  ;;  %s4141_s21 = sld [smem:[#allocation6 + $0xf]] }
 0xaf6   :  { %v1418_v31 = vld [vmem:[%s1417_s3] sm:$0x1]  ;;  %1429 = vrot.lane.b32.xlu0 %v1427_v16, %s3516_s7  ;;  %v1332_v33 = vrot.slane %v1330_v32, 7  ;;  %s1511_s3 = scalar_lea.vmem [#allocation3], %s2507_s29 }
 0xaf7   :  { %1420 = vrot.lane.b32.xlu1 %v1418_v31, %s3516_s7  ;;  %v1329_v34 = vld [vmem:[#allocation2] sm:$0x1] }
 0xaf8   :  { %v1334_v35 = vsel %vm637_vm11, %v1329_v34, %v1332_v33  ;;  %v1535_v36 = vld [vmem:[%s1534_s22] sm:$0x1]  ;;  %s3517_s22 = smov 96   ;;  %v1656_v34 = vrot.slane %v4138_v62, 4 }
 0xaf9   :  { %3001 = vmatmul.mubr.msk.f32.vlgmr.msra.gmra.mrb[10].mxu1 %vm623_vm10, %v1334_v35  ;;  %v1526_v40 = vld [vmem:[%s1525_s2] sm:$0x1]  ;;  %s4193_s2 = sld [smem:[#allocation6 + $0x1b]] }
 0xafa   :  { %3019 = vmatprep.mubr.msk.f32.mxu1 %vm3514_vm1, %v3515_v21  ;;  %3326 = vmatpush3.bf16.msra.mxu1 %v4072_v39  ;;  %v1637_v23 = vld [vmem:[%s1636_s26] sm:$0x1]  ;;  %s4218_s26 = sld [smem:[#allocation6 + $0x21]] }
 0xafb   :  { %1537 = vrot.lane.b32.xlu1 %v1535_v36, %s3516_s7  ;;  %3327 = vmatprep.subr.bf16.mxu1 %v3513_v17  ;;  %s1645_s10 = scalar_lea.vmem [#allocation2], %s4141_s21  ;;  %v1756_v24 = vld [vmem:[%s1755_s27] sm:$0x1]  ;;  %s1643_s29 = scalar_lea.vmem [#allocation3], %s4141_s21 }
 0xafc   :  { %v1646_v43 = vld [vmem:[%s1645_s10] sm:$0x1]  ;;  %s2519_s21 = sld [smem:[#allocation6 + $0xd]]  ;;  %s1842_s27 = scalar_lea.vmem [#allocation3], %s2525_s17 }
 0xafe   :  { %3329 = vmatpush3.bf16.msra.mxu1 %v4084_v45 }
 0xaff   :  { %3330 = vmatprep.subr.bf16.mxu1 %v3513_v17  ;;  %s1865_s23 = scalar_lea.vmem [#allocation2], %s4193_s2 }
 0xb00   :  { %v1866_v44 = vld [vmem:[%s1865_s23] sm:$0x1] }
 0xb02   :  { %3332 = vmatpush3.bf16.msra.mxu1 %v4096_v48  ;;  %s1732_s10 = scalar_lea.vmem [#allocation3], %s2519_s21 }
 0xb03   :  { %3333 = vmatprep.subr.bf16.mxu1 %v3513_v17 }
 0xb06   :  { %3335 = vmatpush3.bf16.msra.mxu1 %v4108_v51 }
 0xb07   :  { %3348 = vmatprep.subr.bf16.mxu1 %v3513_v17 }
 0xb68   :  { %v1430_v54 = vpop.permute.xlu0 %1429 }
 0xb69   :  { %v1421_v59 = vpop.permute.xlu1 %1420 }
 0xb6d   :  { %v1538_v6 = vpop.permute.xlu1 %1537 }
 0xbcc   :  { %v1408_v63 = vpop.f32.mrb[10].mxu1 }
 0xbcd   :  { %v1409_v5 = vadd.f32 %v1408_v63, %v474_v52  ;;  %v3002_v29 = vpop.f32.mrb[11].mxu1 }
 0xbcf   :  { %3448 = vtanh.f32 %v1409_v5 }
 0xbd9   :  { %v3449_v53 = vpop.eup %3448 }
 0xbda   :  { %1413 = vst.msk [vmem:[#allocation3] sm:$0x1] %vm576_vm2, %v3449_v53 }
 0xbdb   :  { %1414 = vst.msk [vmem:[#allocation3 + $0xe] sm:$0x2] %vm579_vm3, %v3449_v53  ;;  %v1766_v53 = vrot.slane %v4138_v62, 6 }
 0xbe2   :  { %v1416_v55 = vld [vmem:[%s1415_s16] sm:$0x1]  ;;  %s1630_s16 = scalar_lea.vmem [#allocation3], %s2516_s1  ;;  %s1973_s1 = scalar_lea.vmem [#allocation2], %s4218_s26 }
 0xbe3   :  { %v1425_v56 = vld [vmem:[%s1424_s30] sm:$0x1]  ;;  %v1423_v19 = vsel %vm623_vm10, %v1416_v55, %v1421_v59  ;;  %s1632_s30 = scalar_lea.vmem [#allocation3], %s2517_s6  ;;  %s2526_s6 = sld [smem:[#allocation6 + $0x14]] }
 0xbe4   :  { %v1432_v58 = vsel %vm623_vm10, %v1425_v56, %v1430_v54 }
 0xbe5   :  { %v1434_v60 = vrot.slane %v1432_v58, 7 }
 0xbe7   :  { %v1436_v61 = vsel %vm637_vm11, %v1423_v19, %v1434_v60  ;;  %v1974_v60 = vld [vmem:[%s1973_s1] sm:$0x1] }
 0xbe8   :  { %3020 = vmatmul.mubr.msk.f32.vlgmr.msra.gmra.mrb[12].mxu1 %vm206_vm0, %v1436_v61 }
 0xbe9   :  { %3350 = vmatpush3.bf16.msra.mxu1 %v4072_v39  ;;  %3057 = vmatprep.mubr.msk.f32.mxu1 %vm3514_vm1, %v3515_v21 }
 0xbea   :  { %3351 = vmatprep.subr.bf16.mxu1 %v3513_v17 }
 0xbed   :  { %3353 = vmatpush3.bf16.msra.mxu1 %v4084_v45 }
 0xbee   :  { %3354 = vmatprep.subr.bf16.mxu1 %v3513_v17 }
 0xbf1   :  { %3356 = vmatpush3.bf16.msra.mxu1 %v4096_v48 }
 0xbf2   :  { %3357 = vmatprep.subr.bf16.mxu1 %v3513_v17 }
 0xbf5   :  { %3359 = vmatpush3.bf16.msra.mxu1 %v4108_v51 }
 0xbf6   :  { %3372 = vmatprep.subr.bf16.mxu1 %v3513_v17 }
 0xcbb   :  { %v1506_v0 = vpop.f32.mrb[12].mxu1 }
 0xcbc   :  { %v1507_v1 = vadd.f32 %v1506_v0, %v4138_v62  ;;  %v3021_v2 = vpop.f32.mrb[13].mxu1 }
 0xcbe   :  { %3450 = vtanh.f32 %v1507_v1 }
 0xcc8   :  { %v3451_v3 = vpop.eup %3450 }
 0xcc9   :  { %1512 = vst.msk [vmem:[%s1511_s3] sm:$0x1] %vm576_vm2, %v3451_v3  ;;  %1514 = vrot.lane.b32.xlu0 %v3451_v3, %s3517_s22  ;;  %s2524_s3 = sld [smem:[#allocation6 + $0x12]] }
 0xccd   :  { %1528 = vrot.lane.b32.xlu0 %v1526_v40, %s3516_s7 }
 0xccf   :  { %s1746_s8 = scalar_lea.vmem [#allocation2], %s2524_s3  ;;  %s1744_s0 = scalar_lea.vmem [#allocation3], %s2524_s3 }
 0xcd0   :  { %v1747_v41 = vld [vmem:[%s1746_s8] sm:$0x1]  ;;  %s1863_s3 = scalar_lea.vmem [#allocation3], %s4193_s2  ;;  %s2531_s2 = sld [smem:[#allocation6 + $0x19]] }
 0xcd1   :  { %1648 = vrot.lane.b32.xlu0 %v1646_v43, %s3516_s7  ;;  %s4243_s8 = sld [smem:[#allocation6 + $0x27]] }
 0xcd6   :  { %s1950_s23 = scalar_lea.vmem [#allocation3], %s2531_s2 }
 0xd3b   :  { %v1515_v4 = vpop.permute.xlu0 %1514 }
 0xd3c   :  { %1518 = vst.msk [vmem:[%s1517_s9] sm:$0x1] %vm576_vm2, %v1515_v4  ;;  %s2522_s9 = sld [smem:[#allocation6 + $0x10]] }
 0xd3d   :  { %1520 = vst.msk [vmem:[%s1519_s13 - $0x1] sm:$0x2] %vm579_vm3, %v3451_v3  ;;  %s2523_s13 = sld [smem:[#allocation6 + $0x11]] }
 0xd3e   :  { %1522 = vst.msk [vmem:[%s1521_s4 - $0x1] sm:$0x2] %vm579_vm3, %v1515_v4  ;;  %s1738_s4 = scalar_lea.vmem [#allocation3], %s2520_s24 }
 0xd3f   :  { %v1529_v11 = vpop.permute.xlu0 %1528 }
 0xd43   :  { %v1649_v26 = vpop.permute.xlu0 %1648 }
 0xd45   :  { %v1533_v7 = vld [vmem:[%s1532_s25] sm:$0x1]  ;;  %s1740_s25 = scalar_lea.vmem [#allocation3], %s2522_s9  ;;  %s2084_s9 = scalar_lea.vmem [#allocation2], %s4243_s8 }
 0xd46   :  { %v1524_v8 = vld [vmem:[%s1523_s15] sm:$0x1]  ;;  %v1540_v9 = vsel %vm623_vm10, %v1533_v7, %v1538_v6  ;;  %s1742_s15 = scalar_lea.vmem [#allocation3], %s2523_s13  ;;  %s2532_s13 = sld [smem:[#allocation6 + $0x1a]] }
 0xd47   :  { %v1542_v10 = vrot.slane %v1540_v9, 7  ;;  %v1531_v12 = vsel %vm623_vm10, %v1524_v8, %v1529_v11 }
 0xd49   :  { %v1544_v13 = vsel %vm637_vm11, %v1531_v12, %v1542_v10 }
 0xd4a   :  { %3039 = vmatmul.mubr.msk.f32.vlgmr.msra.gmra.mrb[12].mxu0 %vm206_vm0, %v1544_v13 }
 0xd4b   :  { %3362 = vmatpush3.bf16.msra.mxu0 %v4072_v39  ;;  %3076 = vmatprep.mubr.msk.f32.mxu0 %vm3514_vm1, %v3515_v21 }
 0xd4c   :  { %3363 = vmatprep.subr.bf16.mxu0 %v3513_v17 }
 0xd4f   :  { %3365 = vmatpush3.bf16.msra.mxu0 %v4084_v45 }
 0xd50   :  { %3366 = vmatprep.subr.bf16.mxu0 %v3513_v17 }
 0xd53   :  { %3368 = vmatpush3.bf16.msra.mxu0 %v4096_v48 }
 0xd54   :  { %3369 = vmatprep.subr.bf16.mxu0 %v3513_v17 }
 0xd57   :  { %3371 = vmatpush3.bf16.msra.mxu0 %v4108_v51 }
 0xd58   :  { %3384 = vmatprep.subr.bf16.mxu0 %v3513_v17 }
 0xe1d   :  { %v1617_v15 = vpop.f32.mrb[12].mxu0 }
 0xe1e   :  { %v1618_v18 = vadd.f32 %v1617_v15, %v1546_v14  ;;  %v3040_v20 = vpop.f32.mrb[13].mxu0  ;;  %v1985_v14 = vrot.slane %v3920_v42, 2 }
 0xe20   :  { %3452 = vtanh.f32 %v1618_v18 }
 0xe2a   :  { %v3453_v22 = vpop.eup %3452 }
 0xe2b   :  { %1625 = vrot.lane.b32.xlu1 %v3453_v22, %s3517_s22  ;;  %1623 = vst.msk [vmem:[%s1622_s5] sm:$0x1] %vm576_vm2, %v3453_v22  ;;  %s2530_s5 = sld [smem:[#allocation6 + $0x18]] }
 0xe2f   :  { %1639 = vrot.lane.b32.xlu1 %v1637_v23, %s3516_s7 }
 0xe31   :  { %s1856_s28 = scalar_lea.vmem [#allocation2], %s2530_s5  ;;  %s1854_s21 = scalar_lea.vmem [#allocation3], %s2530_s5 }
 0xe32   :  { %v1857_v59 = vld [vmem:[%s1856_s28] sm:$0x1]  ;;  %s1971_s5 = scalar_lea.vmem [#allocation3], %s4218_s26  ;;  %s2542_s28 = sld [smem:[#allocation6 + $0x24]] }
 0xe33   :  { %1758 = vrot.lane.b32.xlu1 %v1756_v24, %s3516_s7  ;;  %v2187_v24 = vld [vmem:[#allocation2] sm:$0xff] }
 0xe38   :  { %s2075_s1 = scalar_lea.vmem [#allocation2], %s2542_s28 }
 0xe39   :  { %v2076_v23 = vld [vmem:[%s2075_s1] sm:$0x1] }
 0xe9d   :  { %v1626_v25 = vpop.permute.xlu1 %1625 }
 0xe9e   :  { %1629 = vst.msk [vmem:[%s1628_s12] sm:$0x1] %vm576_vm2, %v1626_v25  ;;  %s2528_s12 = sld [smem:[#allocation6 + $0x16]] }
 0xe9f   :  { %1631 = vst.msk [vmem:[%s1630_s16 - $0x1] sm:$0x2] %vm579_vm3, %v3453_v22  ;;  %s2529_s16 = sld [smem:[#allocation6 + $0x17]] }
 0xea0   :  { %1633 = vst.msk [vmem:[%s1632_s30 - $0x1] sm:$0x2] %vm579_vm3, %v1626_v25  ;;  %s1848_s30 = scalar_lea.vmem [#allocation3], %s2526_s6  ;;  %v2189_v25 = vld [vmem:[#allocation2 + $0x10] sm:$0xff]  ;;  %s2538_s6 = sld [smem:[#allocation6 + $0x20]] }
 0xea1   :  { %v1640_v31 = vpop.permute.xlu1 %1639 }
 0xea5   :  { %v1759_v47 = vpop.permute.xlu1 %1758 }
 0xea7   :  { %v1644_v27 = vld [vmem:[%s1643_s29] sm:$0x1]  ;;  %s1850_s29 = scalar_lea.vmem [#allocation3], %s2528_s12  ;;  %s2540_s12 = sld [smem:[#allocation6 + $0x22]] }
 0xea8   :  { %v1635_v28 = vld [vmem:[%s1634_s11] sm:$0x1]  ;;  %v1651_v30 = vsel %vm623_vm10, %v1644_v27, %v1649_v26  ;;  %s1852_s11 = scalar_lea.vmem [#allocation3], %s2529_s16  ;;  %s2541_s16 = sld [smem:[#allocation6 + $0x23]] }
 0xea9   :  { %v1653_v16 = vrot.slane %v1651_v30, 7  ;;  %v1642_v32 = vsel %vm623_vm10, %v1635_v28, %v1640_v31 }
 0xeab   :  { %v1655_v33 = vsel %vm637_vm11, %v1642_v32, %v1653_v16 }
 0xeac   :  { %3058 = vmatmul.mubr.msk.f32.vlgmr.msra.gmra.mrb[14].mxu1 %vm206_vm0, %v1655_v33 }
 0xead   :  { %3374 = vmatpush3.bf16.msra.mxu1 %v4072_v39  ;;  %3095 = vmatprep.mubr.msk.f32.mxu1 %vm3514_vm1, %v3515_v21 }
 0xeae   :  { %3375 = vmatprep.subr.bf16.mxu1 %v3513_v17 }
 0xeb1   :  { %3377 = vmatpush3.bf16.msra.mxu1 %v4084_v45 }
 0xeb2   :  { %3378 = vmatprep.subr.bf16.mxu1 %v3513_v17 }
 0xeb5   :  { %3380 = vmatpush3.bf16.msra.mxu1 %v4096_v48 }
 0xeb6   :  { %3381 = vmatprep.subr.bf16.mxu1 %v3513_v17 }
 0xeb9   :  { %3383 = vmatpush3.bf16.msra.mxu1 %v4108_v51 }
 0xeba   :  { %3396 = vmatprep.subr.bf16.mxu1 %v3513_v17 }
 0xf7f   :  { %v1727_v35 = vpop.f32.mrb[14].mxu1 }
 0xf80   :  { %v1728_v36 = vadd.f32 %v1727_v35, %v1656_v34  ;;  %v3059_v37 = vpop.f32.mrb[15].mxu1  ;;  %v2211_v35 = vld [vmem:[%s4343_s18] sm:$0xff] }
 0xf82   :  { %3454 = vtanh.f32 %v1728_v36  ;;  %v2212_v36 = vld [vmem:[%s4343_s18 + $0x8] sm:$0xff] }
 0xf83   :  { %v3408_v37 = vpack.c.bf16 %v2212_v36, %v2211_v35 }
 0xf8c   :  { %v3455_v38 = vpop.eup %3454 }
 0xf8d   :  { %1735 = vrot.lane.b32.xlu0 %v3455_v38, %s3517_s22  ;;  %1733 = vst.msk [vmem:[%s1732_s10] sm:$0x1] %vm576_vm2, %v3455_v38  ;;  %s2536_s10 = sld [smem:[#allocation6 + $0x1e]] }
 0xf91   :  { %1749 = vrot.lane.b32.xlu0 %v1747_v41, %s3516_s7 }
 0xf93   :  { %s1964_s24 = scalar_lea.vmem [#allocation2], %s2536_s10  ;;  %s1962_s17 = scalar_lea.vmem [#allocation3], %s2536_s10 }
 0xf95   :  { %1868 = vrot.lane.b32.xlu0 %v1866_v44, %s3516_s7  ;;  %v2213_v44 = vld [vmem:[%s4343_s18 + $0x10] sm:$0xff] }
 0xfff   :  { %v1736_v46 = vpop.permute.xlu0 %1735 }
0x1000   :  { %1739 = vst.msk [vmem:[%s1738_s4] sm:$0x1] %vm576_vm2, %v1736_v46  ;;  %s2534_s4 = sld [smem:[#allocation6 + $0x1c]] }
0x1001   :  { %1741 = vst.msk [vmem:[%s1740_s25 - $0x1] sm:$0x2] %vm579_vm3, %v3455_v38  ;;  %s2535_s25 = sld [smem:[#allocation6 + $0x1d]]  ;;  %v2095_v38 = vrot.slane %v3920_v42, 4 }
0x1002   :  { %1743 = vst.msk [vmem:[%s1742_s15 - $0x1] sm:$0x2] %vm579_vm3, %v1736_v46  ;;  %s1956_s15 = scalar_lea.vmem [#allocation3], %s2532_s13  ;;  %v2214_v46 = vld [vmem:[%s4343_s18 + $0x18] sm:$0xff] }
0x1003   :  { %v1750_v52 = vpop.permute.xlu0 %1749 }
0x1007   :  { %v1869_v61 = vpop.permute.xlu0 %1868 }
0x1009   :  { %v1745_v49 = vld [vmem:[%s1744_s0] sm:$0x1]  ;;  %s1958_s0 = scalar_lea.vmem [#allocation3], %s2534_s4 }
0x100a   :  { %v1754_v50 = vld [vmem:[%s1753_s14] sm:$0x1]  ;;  %v1752_v5 = vsel %vm623_vm10, %v1745_v49, %v1750_v52  ;;  %s1960_s14 = scalar_lea.vmem [#allocation3], %s2535_s25  ;;  %s2543_s25 = sld [smem:[#allocation6 + $0x25]] }
0x100b   :  { %v1761_v57 = vsel %vm623_vm10, %v1754_v50, %v1759_v47  ;;  %v3412_v50 = vpack.c.bf16 %v2214_v46, %v2213_v44 }
0x100c   :  { %v1763_v63 = vrot.slane %v1761_v57, 7  ;;  %v2216_v57 = vld [vmem:[%s4343_s18 + $0x28] sm:$0xff] }
0x100e   :  { %v1765_v29 = vsel %vm637_vm11, %v1752_v5, %v1763_v63  ;;  %v2217_v63 = vld [vmem:[%s4343_s18 + $0x30] sm:$0xff]  ;;  %v2218_v5 = vld [vmem:[%s4343_s18 + $0x38] sm:$0xff] }
0x100f   :  { %3077 = vmatmul.mubr.msk.f32.vlgmr.msra.gmra.mrb[14].mxu0 %vm206_vm0, %v1765_v29  ;;  %v3420_v29 = vpack.c.bf16 %v2218_v5, %v2217_v63 }
0x1010   :  { %3386 = vmatpush3.bf16.msra.mxu0 %v4072_v39  ;;  %3114 = vmatprep.mubr.msk.f32.mxu0 %vm3514_vm1, %v3515_v21  ;;  %s2171_s1 = scalar_lea.vmem [#allocation3], %s2543_s25 }
0x1011   :  { %3387 = vmatprep.subr.bf16.mxu0 %v3513_v17 }
0x1014   :  { %3389 = vmatpush3.bf16.msra.mxu0 %v4084_v45 }
0x1015   :  { %3390 = vmatprep.subr.bf16.mxu0 %v3513_v17 }
0x1018   :  { %3392 = vmatpush3.bf16.msra.mxu0 %v4096_v48 }
0x1019   :  { %3393 = vmatprep.subr.bf16.mxu0 %v3513_v17 }
0x101c   :  { %3395 = vmatpush3.bf16.msra.mxu0 %v4108_v51 }
0x101d   :  { %3409 = vmatprep.subr.bf16.mxu0 %v3408_v37 }
0x10e2   :  { %v1837_v54 = vpop.f32.mrb[14].mxu0 }
0x10e3   :  { %v1838_v55 = vadd.f32 %v1837_v54, %v1766_v53  ;;  %v3078_v56 = vpop.f32.mrb[15].mxu0  ;;  %v2188_v54 = vld [vmem:[#allocation2 + $0x8] sm:$0xff] }
0x10e5   :  { %3456 = vtanh.f32 %v1838_v55  ;;  %v2190_v55 = vld [vmem:[#allocation2 + $0x18] sm:$0x3f] }
0x10ef   :  { %v3457_v58 = vpop.eup %3456 }
0x10f0   :  { %1845 = vrot.lane.b32.xlu1 %v3457_v58, %s3517_s22  ;;  %1843 = vst.msk [vmem:[%s1842_s27] sm:$0x1] %vm576_vm2, %v3457_v58  ;;  %s2537_s27 = sld [smem:[#allocation6 + $0x1f]] }
0x10f4   :  { %1859 = vrot.lane.b32.xlu1 %v1857_v59, %s3516_s7 }
0x10f6   :  { %s2061_s26 = scalar_lea.vmem [#allocation3], %s2537_s27 }
0x10f8   :  { %1976 = vrot.lane.b32.xlu1 %v1974_v60, %s3516_s7 }
0x1162   :  { %v1846_v19 = vpop.permute.xlu1 %1845 }
0x1163   :  { %1849 = vst.msk [vmem:[%s1848_s30] sm:$0x1] %vm576_vm2, %v1846_v19  ;;  %s2067_s30 = scalar_lea.vmem [#allocation3], %s2538_s6  ;;  %s2544_s6 = sld [smem:[#allocation6 + $0x26]] }
0x1164   :  { %1851 = vst.msk [vmem:[%s1850_s29 - $0x1] sm:$0x2] %vm579_vm3, %v3457_v58  ;;  %s2069_s29 = scalar_lea.vmem [#allocation3], %s2540_s12  ;;  %s2546_s12 = sld [smem:[#allocation6 + $0x28]] }
0x1165   :  { %1853 = vst.msk [vmem:[%s1852_s11 - $0x1] sm:$0x2] %vm579_vm3, %v1846_v19  ;;  %s2071_s11 = scalar_lea.vmem [#allocation3], %s2541_s16  ;;  %s2547_s16 = sld [smem:[#allocation6 + $0x29]] }
0x1166   :  { %v1860_v2 = vpop.permute.xlu1 %1859 }
0x116c   :  { %v1855_v62 = vld [vmem:[%s1854_s21] sm:$0x1]  ;;  %s2073_s21 = scalar_lea.vmem [#allocation3], %s2542_s28 }
0x116d   :  { %v1864_v0 = vld [vmem:[%s1863_s3] sm:$0x1]  ;;  %v1862_v40 = vsel %vm623_vm10, %v1855_v62, %v1860_v2  ;;  %s2082_s3 = scalar_lea.vmem [#allocation3], %s4243_s8 }
0x116e   :  { %v1871_v1 = vsel %vm623_vm10, %v1864_v0, %v1869_v61 }
0x116f   :  { %v1873_v3 = vrot.slane %v1871_v1, 7 }
0x1171   :  { %v1875_v43 = vsel %vm637_vm11, %v1862_v40, %v1873_v3 }
0x1172   :  { %3096 = vmatmul.mubr.msk.f32.vlgmr.msra.gmra.mrb[16].mxu1 %vm206_vm0, %v1875_v43 }
0x1173   :  { %3398 = vmatpush3.bf16.msra.mxu1 %v4072_v39  ;;  %3133 = vmatprep.mubr.msk.f32.mxu1 %vm3514_vm1, %v3515_v21  ;;  %v2085_v39 = vld [vmem:[%s2084_s9] sm:$0x1] }
0x1174   :  { %3399 = vmatprep.subr.bf16.mxu1 %v3513_v17 }
0x1177   :  { %3401 = vmatpush3.bf16.msra.mxu1 %v4084_v45 }
0x1178   :  { %3402 = vmatprep.subr.bf16.mxu1 %v3513_v17 }
0x117b   :  { %3404 = vmatpush3.bf16.msra.mxu1 %v4096_v48  ;;  %v1977_v48 = vpop.permute.xlu1 %1976 }
0x117c   :  { %3405 = vmatprep.subr.bf16.mxu1 %v3513_v17  ;;  %v1965_v17 = vld [vmem:[%s1964_s24] sm:$0x1] }
0x117f   :  { %3407 = vmatpush3.bf16.msra.mxu1 %v4108_v51 }
0x1245   :  { %v1945_v4 = vpop.f32.mrb[16].mxu1 }
0x1246   :  { %v1946_v6 = vadd.f32 %v1945_v4, %v3920_v42  ;;  %v3097_v7 = vpop.f32.mrb[17].mxu1  ;;  %v2215_v42 = vld [vmem:[%s4343_s18 + $0x20] sm:$0xff]  ;;  %s2177_s18 = scalar_lea.vmem [#allocation3], %s2544_s6 }
0x1247   :  { %v3416_v52 = vpack.c.bf16 %v2216_v57, %v2215_v42  ;;  %v2572_v4 = vld [vmem:[%s4344_s19] ss:$0 sm:$0xff] }
0x1248   :  { %3458 = vtanh.f32 %v1946_v6 }
0x1252   :  { %v3459_v21 = vpop.eup %3458 }
0x1253   :  { %1953 = vrot.lane.b32.xlu0 %v3459_v21, %s3517_s22  ;;  %1951 = vst.msk [vmem:[%s1950_s23] sm:$0x1] %vm576_vm2, %v3459_v21 }
0x1257   :  { %1967 = vrot.lane.b32.xlu0 %v1965_v17, %s3516_s7 }
0x125b   :  { %2087 = vrot.lane.b32.xlu0 %v2085_v39, %s3516_s7 }
0x12c5   :  { %v1954_v45 = vpop.permute.xlu0 %1953 }
0x12c6   :  { %1957 = vst.msk [vmem:[%s1956_s15] sm:$0x1] %vm576_vm2, %v1954_v45 }
0x12c7   :  { %1959 = vst.msk [vmem:[%s1958_s0 - $0x1] sm:$0x2] %vm579_vm3, %v3459_v21 }
0x12c8   :  { %1961 = vst.msk [vmem:[%s1960_s14 - $0x1] sm:$0x2] %vm579_vm3, %v1954_v45 }
0x12c9   :  { %v1968_v10 = vpop.permute.xlu0 %1967 }
0x12cd   :  { %v2088_v27 = vpop.permute.xlu0 %2087 }
0x12cf   :  { %v1963_v51 = vld [vmem:[%s1962_s17] sm:$0x1] }
0x12d0   :  { %v1972_v8 = vld [vmem:[%s1971_s5] sm:$0x1]  ;;  %v1970_v12 = vsel %vm623_vm10, %v1963_v51, %v1968_v10 }
0x12d1   :  { %v1979_v9 = vsel %vm623_vm10, %v1972_v8, %v1977_v48 }
0x12d2   :  { %v1981_v11 = vrot.slane %v1979_v9, 7 }
0x12d4   :  { %v1983_v13 = vsel %vm637_vm11, %v1970_v12, %v1981_v11 }
0x12d5   :  { %3115 = vmatmul.mubr.msk.f32.vlgmr.msra.gmra.mrb[16].mxu0 %vm206_vm0, %v1983_v13 }
0x12d6   :  { %3411 = vmatpush3.bf16.msra.mxu0 %v3408_v37 }
0x12d7   :  { %3413 = vmatprep.subr.bf16.mxu0 %v3412_v50 }
0x12da   :  { %3415 = vmatpush3.bf16.msra.mxu0 %v3412_v50 }
0x12db   :  { %3417 = vmatprep.subr.bf16.mxu0 %v3416_v52 }
0x12de   :  { %3419 = vmatpush3.bf16.msra.mxu0 %v3416_v52 }
0x12df   :  { %3421 = vmatprep.subr.bf16.mxu0 %v3420_v29 }
0x12e2   :  { %3423 = vmatpush3.bf16.msra.mxu0 %v3420_v29 }
0x13a8   :  { %v2056_v15 = vpop.f32.mrb[16].mxu0 }
0x13a9   :  { %v2057_v18 = vadd.f32 %v2056_v15, %v1985_v14  ;;  %v3116_v20 = vpop.f32.mrb[17].mxu0 }
0x13ab   :  { %3460 = vtanh.f32 %v2057_v18 }
0x13b5   :  { %v3461_v22 = vpop.eup %3460 }
0x13b6   :  { %2064 = vrot.lane.b32.xlu1 %v3461_v22, %s3517_s22  ;;  %2062 = vst.msk [vmem:[%s2061_s26] sm:$0x1] %vm576_vm2, %v3461_v22 }
0x13ba   :  { %2078 = vrot.lane.b32.xlu1 %v2076_v23, %s3516_s7 }
0x13be   :  { %2195 = vrot.lane.b32.xlu1 %v2187_v24, %s3516_s7 }
0x13c2   :  { %2199 = vrot.lane.b32.xlu1 %v2189_v25, %s3516_s7 }
0x1428   :  { %v2065_v26 = vpop.permute.xlu1 %2064 }
0x1429   :  { %2068 = vst.msk [vmem:[%s2067_s30] sm:$0x1] %vm576_vm2, %v2065_v26  ;;  %s2179_s30 = scalar_lea.vmem [#allocation3], %s2546_s12 }
0x142a   :  { %2070 = vst.msk [vmem:[%s2069_s29 - $0x1] sm:$0x2] %vm579_vm3, %v3461_v22 }
0x142b   :  { %2072 = vst.msk [vmem:[%s2071_s11 - $0x1] sm:$0x2] %vm579_vm3, %v2065_v26 }
0x142c   :  { %v2079_v31 = vpop.permute.xlu1 %2078 }
0x1430   :  { %v2196_v58 = vpop.permute.xlu1 %2195 }
0x1432   :  { %v2074_v28 = vld [vmem:[%s2073_s21] sm:$0x1] }
0x1433   :  { %v2083_v30 = vld [vmem:[%s2082_s3] sm:$0x1]  ;;  %v2081_v33 = vsel %vm623_vm10, %v2074_v28, %v2079_v31 }
0x1434   :  { %v2090_v16 = vsel %vm623_vm10, %v2083_v30, %v2088_v27  ;;  %v2200_v1 = vpop.permute.xlu1 %2199 }
0x1435   :  { %v2092_v32 = vrot.slane %v2090_v16, 7 }
0x1437   :  { %v2094_v34 = vsel %vm637_vm11, %v2081_v33, %v2092_v32 }
0x1438   :  { %3134 = vmatmul.mubr.msk.f32.vlgmr.msra.gmra.mrb[18].mxu1 %vm206_vm0, %v2094_v34 }
0x150b   :  { %v2166_v41 = vpop.f32.mrb[18].mxu1 }
0x150c   :  { %v2167_v47 = vadd.f32 %v2166_v41, %v2095_v38  ;;  %v3135_v49 = vpop.f32.mrb[19].mxu1 }
0x150e   :  { %3462 = vtanh.f32 %v2167_v47 }
0x1518   :  { %v3463_v53 = vpop.eup %3462 }
0x1519   :  { %2174 = vrot.lane.b32.xlu0 %v3463_v53, %s3517_s22  ;;  %2172 = vst.msk [vmem:[%s2171_s1] sm:$0x1] %vm576_vm2, %v3463_v53  ;;  %s2181_s22 = scalar_lea.vmem [#allocation3], %s2547_s16 }
0x151d   :  { %2197 = vrot.lane.b32.xlu0 %v2188_v54, %s3516_s7 }
0x1521   :  { %2201 = vrot.lane.b32.xlu0 %v2190_v55, %s3516_s7 }
0x158b   :  { %v2175_v56 = vpop.permute.xlu0 %2174 }
0x158c   :  { %2178 = vst.msk [vmem:[%s2177_s18] sm:$0x1] %vm576_vm2, %v2175_v56 }
0x158d   :  { %2180 = vst.msk [vmem:[%s2179_s30 - $0x1] sm:$0x2] %vm579_vm3, %v3463_v53 }
0x158e   :  { %2182 = vst.msk [vmem:[%s2181_s22 - $0x1] sm:$0x2] %vm579_vm3, %v2175_v56 }
0x158f   :  { %v2198_v59 = vpop.permute.xlu0 %2197 }
0x1593   :  { %v2202_v40 = vpop.permute.xlu0 %2201 }
0x1595   :  { %v2184_v60 = vld [vmem:[#allocation3 + $0x8] sm:$0xff]  ;;  %v2183_v19 = vld [vmem:[#allocation3] sm:$0xff]  ;;  %v2185_v0 = vld [vmem:[#allocation3 + $0x10] sm:$0xff] }
0x1596   :  { %v2208_v61 = vsel %vm623_vm10, %v2184_v60, %v2198_v59  ;;  %v2207_v62 = vsel %vm623_vm10, %v2183_v19, %v2196_v58  ;;  %v2186_v2 = vld [vmem:[#allocation3 + $0x18] sm:$0x3f]  ;;  %v2209_v3 = vsel %vm623_vm10, %v2185_v0, %v2200_v1 }
0x1597   :  { %3152 = vmatprep.mubr.msk.f32.mxu0 %vm206_vm0, %v2207_v62  ;;  %v2210_v43 = vsel %vm623_vm10, %v2186_v2, %v2202_v40 }
0x1598   :  { %3153 = vmatmul.mubr.msk.f32.vlgmr.msra.gmra.mrb[18].mxu0 %vm206_vm0, %v2208_v61 }
0x1599   :  { %3155 = vmatprep.mubr.msk.f32.mxu0 %vm206_vm0, %v2209_v3 }
0x159c   :  { %3156 = vmatmul.mubr.msk.f32.gmra.mrb[20].mxu0 %vm206_vm0, %v2210_v43 }
0x166b   :  { %v3154_v6 = vpop.f32.mrb[18].mxu0 }
0x166c   :  { %v2310_v7 = vadd.f32 %v3154_v6, %v2572_v4  ;;  %v2304_v21 = vpop.f32.mrb[19].mxu0 }
0x166d   :  { %v2305_v17 = vadd.f32 %v2572_v4, %v2304_v21 }
0x166e   :  { %3464 = vtanh.f32 %v2310_v7 }
0x166f   :  { %3466 = vtanh.f32 %v2305_v17  ;;  %v3157_v39 = vpop.f32.mrb[20].mxu0 }
0x1670   :  { %v2320_v45 = vadd.f32 %v3157_v39, %v2572_v4  ;;  %v2314_v48 = vpop.f32.mrb[21].mxu0 }
0x1671   :  { %v2315_v51 = vadd.f32 %v2572_v4, %v2314_v48 }
0x1672   :  { %3468 = vtanh.f32 %v2320_v45 }
0x1673   :  { %3470 = vtanh.f32 %v2315_v51 }
0x1678   :  { %v3465_v8 = vpop.eup %3464 }
0x1679   :  { %v3467_v9 = vpop.eup %3466  ;;  %2329 = vst.msk [vmem:[%s4345_s20 + $0x8] sm:$0xff] %vm2327_vm12, %v3465_v8 }
0x167a   :  { %2328 = vst.msk [vmem:[%s4345_s20] sm:$0xff] %vm2327_vm12, %v3467_v9 }
0x167c   :  { %v3469_v10 = vpop.eup %3468 }
0x167d   :  { %v3471_v11 = vpop.eup %3470  ;;  %2332 = vst.msk [vmem:[%s4345_s20 + $0x18] sm:$0x3f] %vm2331_vm13, %v3469_v10 }
0x167e   :  { %2330 = vst.msk [vmem:[%s4345_s20 + $0x10] sm:$0xff] %vm2327_vm12, %v3471_v11 }

</bundles_post_ra>
